<compile_context>
chip_gen: v7x
topology: tpu7x:2x2x1
jax: 0.10.0
libtpu: 0.0.40
codegen_flags: <defaults>
</compile_context>

<pallas_src>
import functools
import math

import jax
import jax.numpy as jnp
from jax.experimental import pallas as pl
from jax.experimental.pallas import tpu as pltpu


# ----------------------------------------------------------------------------
# Glue: positional-embedding bilinear upsample (torch F.interpolate,
# mode='bilinear', align_corners=False).  One-off parameter preprocessing.
# TODO(synk): kept in plain JAX (gather-heavy, tiny, not worth a kernel).
# ----------------------------------------------------------------------------
def upsample_pos_emb(emb, new_size):
    first, rest = emb[:1], emb[1:]
    n, d = rest.shape
    s = int(round(math.sqrt(n)))
    grid = rest.reshape(s, s, d)
    new_h, new_w = new_size

    def src_coords(out_size, in_size):
        scale = in_size / out_size
        c = (jnp.arange(out_size, dtype=jnp.float32) + 0.5) * scale - 0.5
        return jnp.maximum(c, 0.0)

    ys = src_coords(new_h, s)
    xs = src_coords(new_w, s)
    y0 = jnp.floor(ys).astype(jnp.int32)
    x0 = jnp.floor(xs).astype(jnp.int32)
    y1 = jnp.minimum(y0 + 1, s - 1)
    x1 = jnp.minimum(x0 + 1, s - 1)
    wy = (ys - y0.astype(jnp.float32))[:, None, None]
    wx = (xs - x0.astype(jnp.float32))[None, :, None]

    top = grid[y0][:, x0] * (1.0 - wx) + grid[y0][:, x1] * wx
    bot = grid[y1][:, x0] * (1.0 - wx) + grid[y1][:, x1] * wx
    out = top * (1.0 - wy) + bot * wy                      # (new_h, new_w, d)
    return jnp.concatenate([first, out.reshape(new_h * new_w, d)], axis=0)


# ----------------------------------------------------------------------------
# Pallas kernel: `batch_block` images per grid step, fully batched body.
# ----------------------------------------------------------------------------
def _attn_pool_kernel(x_ref, pos_cls_ref, pos_kv_ref, cls_kv_off_ref,
                      wq_ref, bq_ref, wkv_ref, wc_ref, bc_ref,
                      seg_ref, segt_ref, out_ref, *, transpose_in_kernel: bool):
    f32 = jnp.float32
    cd = wkv_ref.dtype                          # MXU compute dtype (bf16 or f32)

    if transpose_in_kernel:                     # x block is (B, C, L0): HBM layout
        B, C, L0 = x_ref.shape                  # is a free reshape of NCHW; the
        xT = jnp.swapaxes(x_ref[...], 1, 2)     # lane<->sublane swap stays in VMEM.
    else:                                       # conservative fallback layout
        B, L0, C = x_ref.shape
        xT = x_ref[...]                         # (B, L0, C)

    # --- CLS (query) row per image: mean over tokens + pos[0], in f32. -------
    cls = jnp.mean(xT.astype(f32), axis=1) + pos_cls_ref[...]           # (B, C)
    q = jnp.dot(cls.astype(cd), wq_ref[...],                            # scale is
                preferred_element_type=f32) + bq_ref[...]               # pre-folded

    # --- Fused K/V projection of all B*L0 tokens (dominant MXU work). --------
    # pos[1:] @ Wkv + b_kv is pre-folded into pos_kv_ref (wrapper constant).
    x_tok = xT.reshape(B * L0, C).astype(cd)
    kv = jnp.dot(x_tok, wkv_ref[...], preferred_element_type=f32)       # (B*L0, 2C)
    kv3 = kv.reshape(B, L0, 2 * C) + pos_kv_ref[...][None, :, :]        # (B, L0, 2C)

    # CLS key/value without an extra matmul (linearity):
    #   (mean(x) + pos0) @ Wkv + b == mean(x @ Wkv) + (pos0 @ Wkv + b).
    kv_c = jnp.mean(kv3, axis=1) + cls_kv_off_ref[...]                  # (B, 2C)

    k_t, v_t = kv3[..., :C], kv3[..., C:]                               # (B, L0, C)
    k_c, v_c = kv_c[:, :C], kv_c[:, C:]                                 # (B, C)

    seg = seg_ref[...]                                                  # (C, nh)
    segt = segt_ref[...]                                                # (nh, C)

    # --- Per-head scores: segment-sum of q*k over each head's channels. ------
    qk_t = (q[:, None, :] * k_t).reshape(B * L0, C)
    s_t = jnp.dot(qk_t.astype(cd), seg,
                  preferred_element_type=f32).reshape(B, L0, -1)        # (B, L0, nh)
    s_c = jnp.dot((q * k_c).astype(cd), seg,
                  preferred_element_type=f32)                           # (B, nh)

    # --- Numerically stable softmax over the L0+1 keys, per (image, head). ---
    m = jnp.maximum(jnp.max(s_t, axis=1), s_c)                          # (B, nh)
    p_t = jnp.exp(s_t - m[:, None, :])                                  # (B, L0, nh)
    p_c = jnp.exp(s_c - m)                                              # (B, nh)
    inv = pl.reciprocal(p_c + jnp.sum(p_t, axis=1), approx=True)        # EUP slot

    # --- Broadcast per-head weights over head channels and reduce over keys. -
    pw_t = jnp.dot(p_t.reshape(B * L0, -1).astype(cd), segt,
                   preferred_element_type=f32).reshape(B, L0, C)
    pw_c = jnp.dot(p_c.astype(cd), segt, preferred_element_type=f32)    # (B, C)
    inv_b = jnp.dot(inv.astype(cd), segt, preferred_element_type=f32)   # (B, C)
    att = (jnp.sum(pw_t * v_t, axis=1) + pw_c * v_c) * inv_b            # (B, C)

    # --- Output projection, CLS rows only. ------------------------------------
    out = jnp.dot(att.astype(cd), wc_ref[...],
                  preferred_element_type=f32) + bc_ref[...]             # (B, Cout)
    out_ref[...] = out.astype(out_ref.dtype)


def _pick_batch_block(n, l0, rows_target=1024):
    """Smallest divisor of n giving >= rows_target token rows, keeping grid>=2."""
    divisors = [d for d in range(1, n + 1) if n % d == 0]
    preferred = [d for d in divisors if n // d >= 2] or divisors
    for d in preferred:
        if d * l0 >= rows_target:
            return d
    return preferred[-1]


def attention_pool2d(x_nchw, params, H, W, num_heads, *,
                     batch_block=None, compute_dtype=jnp.bfloat16):
    n, c, fh, fw = x_nchw.shape
    assert c % num_heads == 0, "embed_dim must be divisible by num_heads"
    l0 = fh * fw
    assert (H // 32) * (W // 32) == l0, "pos-emb grid must match feature map"
    c_out = params["wc"].shape[0]
    hd = c // num_heads
    scale = float(hd) ** -0.5
    if batch_block is None:
        batch_block = _pick_batch_block(n, l0)
    assert n % batch_block == 0, "batch must be divisible by batch_block"
    bb = batch_block
    cd = compute_dtype
    f32 = jnp.float32

    # ---- constant preprocessing (tiny, all f32) ------------------------------
    pos = upsample_pos_emb(params["pos"].astype(f32), (H // 32, W // 32))
    pos_cls, pos_tok = pos[:1], pos[1:]                                # (1,C),(L0,C)

    wkv_f32 = jnp.concatenate([params["wk"].T, params["wv"].T], axis=1)  # (C, 2C)
    bkv_f32 = jnp.concatenate([params["bk"], params["bv"]])[None, :]     # (1, 2C)
    pos_kv = pos_tok @ wkv_f32 + bkv_f32                                 # (L0, 2C)
    cls_kv_off = (pos_cls @ wkv_f32 + bkv_f32
                  - jnp.mean(pos_kv, axis=0, keepdims=True))             # (1, 2C)

    wq = (params["wq"].T * scale).astype(cd)                             # (C, C)
    bq = (params["bq"] * scale)[None, :].astype(f32)                     # (1, C)
    wkv = wkv_f32.astype(cd)                                             # (C, 2C)
    wc = params["wc"].T.astype(cd)                                       # (C, Cout)
    bc = params["bc"][None, :].astype(f32)                               # (1, Cout)

    seg_f32 = jnp.repeat(jnp.eye(num_heads, dtype=f32), hd, axis=0)      # (C, nh)
    seg = seg_f32.astype(cd)
    seg_t = seg_f32.T.astype(cd)                                         # (nh, C)

    consts = (pos_cls, pos_kv, cls_kv_off, wq, bq, wkv, wc, bc, seg, seg_t)

    # ---- VMEM budget: real buffer counts, generation-aware cap ---------------
    try:
        vmem_cap = int(pltpu.get_tpu_info().vmem_capacity_bytes)
    except Exception:  # pragma: no cover - conservative default (v7x per-TC)
        vmem_cap = 64 << 20
    x_itemsize = jnp.dtype(x_nchw.dtype).itemsize
    x_blk = bb * c * l0 * x_itemsize
    out_blk = bb * c_out * 4
    const_bytes = sum(int(a.size) * a.dtype.itemsize for a in consts)
    tmp_bytes = 3 * bb * l0 * c * 4 + 2 * bb * l0 * 2 * c * 4  # xT/cast/kv temps

    def _call(transpose_in_kernel, single_buffer):
        if transpose_in_kernel:
            x_in = x_nchw.reshape(n, c, l0)                 # free reshape, C-major
            x_spec = pl.BlockSpec((bb, c, l0), lambda i: (i, 0, 0))
        else:
            x_in = jnp.transpose(x_nchw.reshape(n, c, l0), (0, 2, 1))
            x_spec = pl.BlockSpec((bb, l0, c), lambda i: (i, 0, 0))

        def const_spec(a):
            if single_buffer:
                return pl.BlockSpec(a.shape, lambda i: (0, 0),
                                    pipeline_mode=pl.Buffered(1))
            return pl.BlockSpec(a.shape, lambda i: (0, 0))

        n_buf = 1 if single_buffer else 2
        est = 2 * x_blk + n_buf * const_bytes + 2 * out_blk + tmp_bytes
        vmem_limit = int(min(vmem_cap * 7 // 8, max(32 << 20, 2 * est)))

        kernel = functools.partial(_attn_pool_kernel,
                                   transpose_in_kernel=transpose_in_kernel)
        fn = pl.pallas_call(
            kernel,
            out_shape=jax.ShapeDtypeStruct((n, c_out), jnp.float32),
            grid=(n // bb,),
            in_specs=[x_spec] + [const_spec(a) for a in consts],
            out_specs=pl.BlockSpec((bb, c_out), lambda i: (i, 0)),
            compiler_params=pltpu.CompilerParams(
                dimension_semantics=("parallel",),
                vmem_limit_bytes=vmem_limit,
            ),
        )
        return fn(x_in, *consts)

    # Preferred: C-major x (no extra HBM transpose pass) + single-buffered
    # constants.  Conservative retry keeps the script runnable if this
    # JAX/Mosaic build rejects the in-kernel 3-D transpose or Buffered(1).
    try:
        return _call(True, True)
    except Exception:  # pragma: no cover
        return _call(False, False)


# ----------------------------------------------------------------------------
# Pure-JAX reference (mirrors F.multi_head_attention_forward semantics).
# ----------------------------------------------------------------------------
def reference_forward(x_nchw, params, H, W, num_heads):
    n, c, fh, fw = x_nchw.shape
    x = jnp.transpose(x_nchw.reshape(n, c, fh * fw), (2, 0, 1))       # (HW, N, C)
    x = jnp.concatenate([x.mean(axis=0, keepdims=True), x], axis=0)   # (L, N, C)
    pos = upsample_pos_emb(params["pos"], (H // 32, W // 32))
    x = x + pos[:, None, :]
    L = x.shape[0]
    hd = c // num_heads
    q = (x @ params["wq"].T + params["bq"]) * (hd ** -0.5)
    k = x @ params["wk"].T + params["bk"]
    v = x @ params["wv"].T + params["bv"]

    def split(t):
        return t.reshape(L, n, num_heads, hd).transpose(1, 2, 0, 3)

    qh, kh, vh = split(q), split(k), split(v)
    s = jnp.einsum("nhld,nhmd->nhlm", qh, kh)
    p = jax.nn.softmax(s, axis=-1)
    o = jnp.einsum("nhlm,nhmd->nhld", p, vh)
    o = o.transpose(2, 0, 1, 3).reshape(L, n, c)
    out = o @ params["wc"].T + params["bc"]
    return out[0]


# ----------------------------------------------------------------------------
# Deterministic parameter init (shapes from the module __init__).
# ----------------------------------------------------------------------------
def init_params(key, spacial_dim, embed_dim, output_dim=None):
    out_dim = output_dim or embed_dim
    ks = jax.random.split(key, 9)

    def lin(kw, kb, out_f, in_f):
        bound = 1.0 / math.sqrt(in_f)
        w = jax.random.uniform(kw, (out_f, in_f), jnp.float32, -bound, bound)
        b = jax.random.uniform(kb, (out_f,), jnp.float32, -bound, bound)
        return w, b

    pos = jax.random.normal(ks[0], (spacial_dim ** 2 + 1, embed_dim),
                            jnp.float32) / (embed_dim ** 0.5)
    wq, bq = lin(ks[1], ks[2], embed_dim, embed_dim)
    wk, bk = lin(ks[3], ks[4], embed_dim, embed_dim)
    wv, bv = lin(ks[5], ks[6], embed_dim, embed_dim)
    wc, bc = lin(ks[7], ks[8], out_dim, embed_dim)
    return dict(pos=pos, wq=wq, bq=bq, wk=wk, bk=bk, wv=wv, bv=bv, wc=wc, bc=bc)


if __name__ == "__main__":
    key = jax.random.PRNGKey(0)
    k_par, k_x = jax.random.split(key)

    spacial_dim = 7       # native pos-emb grid (bilinearly resized to H//32 x W//32)
    embed_dim = 32
    num_heads = 4
    output_dim = 64
    batch, fh, fw = 16, 4, 4
    H, W = fh * 32, fw * 32

    params = init_params(k_par, spacial_dim, embed_dim, output_dim)
    x = jax.random.normal(k_x, (batch, embed_dim, fh, fw), jnp.float32)

    ref = reference_forward(x, params, H, W, num_heads)

    # f32 MXU path: tight parity with the pure-JAX reference (tolerance leaves
    # room for the EUP approx-reciprocal in the softmax normalization).
    out_f32 = attention_pool2d(x, params, H, W, num_heads,
                               batch_block=8, compute_dtype=jnp.float32)
    out_f32 = jax.block_until_ready(out_f32)
    assert out_f32.shape == (batch, output_dim), out_f32.shape
    assert jnp.allclose(out_f32, ref, atol=3e-3, rtol=3e-3), \
        float(jnp.max(jnp.abs(out_f32 - ref)))

    # Default bf16 MXU-operand path (f32 accumulation & softmax): loose parity.
    out_bf16 = attention_pool2d(x, params, H, W, num_heads, batch_block=8)
    out_bf16 = jax.block_until_ready(out_bf16)
    assert out_bf16.shape == (batch, output_dim), out_bf16.shape
    assert bool(jnp.all(jnp.isfinite(out_bf16)))
    assert float(jnp.max(jnp.abs(out_bf16 - ref))) < 0.25, \
        float(jnp.max(jnp.abs(out_bf16 - ref)))

    print("KERNEL_OK")
</pallas_src>

<mosaic_0001>
module attributes {stable_mosaic.version = 11 : i64} {
  func.func @_attn_pool_kernel(%arg0: i32, %arg1: memref<8x32x16xf32, #tpu.memory_space<vmem>>, %arg2: memref<1x32xf32, #tpu.memory_space<vmem>>, %arg3: memref<16x64xf32, #tpu.memory_space<vmem>>, %arg4: memref<1x64xf32, #tpu.memory_space<vmem>>, %arg5: memref<32x32xf32, #tpu.memory_space<vmem>>, %arg6: memref<1x32xf32, #tpu.memory_space<vmem>>, %arg7: memref<32x64xf32, #tpu.memory_space<vmem>>, %arg8: memref<32x64xf32, #tpu.memory_space<vmem>>, %arg9: memref<1x64xf32, #tpu.memory_space<vmem>>, %arg10: memref<32x4xf32, #tpu.memory_space<vmem>>, %arg11: memref<4x32xf32, #tpu.memory_space<vmem>>, %arg12: memref<8x64xf32, #tpu.memory_space<vmem>>) attributes {dimension_semantics = [#tpu.dimension_semantics<parallel>], iteration_bounds = array<i64: 2>, scalar_prefetch = 0 : i64, scratch_operands = 0 : i64, tpu.core_type = #tpu.core_type<tc>, window_params = [{transform_indices = @transform_0, window_bounds = array<i64: 8, 32, 16>}, {pipeline_mode = #tpu.pipeline_mode<synchronous>, transform_indices = @transform_1, window_bounds = array<i64: 1, 32>}, {pipeline_mode = #tpu.pipeline_mode<synchronous>, transform_indices = @transform_2, window_bounds = array<i64: 16, 64>}, {pipeline_mode = #tpu.pipeline_mode<synchronous>, transform_indices = @transform_3, window_bounds = array<i64: 1, 64>}, {pipeline_mode = #tpu.pipeline_mode<synchronous>, transform_indices = @transform_4, window_bounds = array<i64: 32, 32>}, {pipeline_mode = #tpu.pipeline_mode<synchronous>, transform_indices = @transform_5, window_bounds = array<i64: 1, 32>}, {pipeline_mode = #tpu.pipeline_mode<synchronous>, transform_indices = @transform_6, window_bounds = array<i64: 32, 64>}, {pipeline_mode = #tpu.pipeline_mode<synchronous>, transform_indices = @transform_7, window_bounds = array<i64: 32, 64>}, {pipeline_mode = #tpu.pipeline_mode<synchronous>, transform_indices = @transform_8, window_bounds = array<i64: 1, 64>}, {pipeline_mode = #tpu.pipeline_mode<synchronous>, transform_indices = @transform_9, window_bounds = array<i64: 32, 4>}, {pipeline_mode = #tpu.pipeline_mode<synchronous>, transform_indices = @transform_10, window_bounds = array<i64: 4, 32>}, {transform_indices = @transform_11, window_bounds = array<i64: 8, 64>}]} {
    %c0 = arith.constant 0 : index
    %c0_0 = arith.constant 0 : index
    %c0_1 = arith.constant 0 : index
    %0 = vector.load %arg1[%c0, %c0_0, %c0_1] : memref<8x32x16xf32, #tpu.memory_space<vmem>>, vector<8x32x16xf32>
    %1 = tpu.transpose %0, [0, 2, 1] : vector<8x32x16xf32> -> vector<8x16x32xf32>
    %cst = arith.constant dense<0.000000e+00> : vector<8x32xf32>
    %2 = vector.multi_reduction <add>, %1, %cst [1] : vector<8x16x32xf32> to vector<8x32xf32>
    %cst_2 = arith.constant 1.600000e+01 : f32
    %3 = vector.broadcast %cst_2 : f32 to vector<8x32xf32>
    %4 = arith.divf %2, %3 : vector<8x32xf32>
    %c0_3 = arith.constant 0 : index
    %c0_4 = arith.constant 0 : index
    %5 = vector.load %arg2[%c0_3, %c0_4] : memref<1x32xf32, #tpu.memory_space<vmem>>, vector<1x32xf32>
    %6 = vector.broadcast %5 : vector<1x32xf32> to vector<8x32xf32>
    %7 = arith.addf %4, %6 : vector<8x32xf32>
    %c0_5 = arith.constant 0 : index
    %c0_6 = arith.constant 0 : index
    %8 = vector.load %arg5[%c0_5, %c0_6] : memref<32x32xf32, #tpu.memory_space<vmem>>, vector<32x32xf32>
    %cst_7 = arith.constant dense<0.000000e+00> : vector<8x32xf32>
    %9 = tpu.matmul %7, %8, %cst_7 {dimension_numbers = #tpu.dot_dimension_numbers<[1], [0], [0], [1], [0, 0, 1, 1], [], []>} : vector<8x32xf32>, vector<32x32xf32>, vector<8x32xf32> -> vector<8x32xf32>
    %c0_8 = arith.constant 0 : index
    %c0_9 = arith.constant 0 : index
    %10 = vector.load %arg6[%c0_8, %c0_9] : memref<1x32xf32, #tpu.memory_space<vmem>>, vector<1x32xf32>
    %11 = vector.broadcast %10 : vector<1x32xf32> to vector<8x32xf32>
    %12 = arith.addf %9, %11 : vector<8x32xf32>
    %13 = vector.shape_cast %1 : vector<8x16x32xf32> to vector<128x32xf32>
    %c0_10 = arith.constant 0 : index
    %c0_11 = arith.constant 0 : index
    %14 = vector.load %arg7[%c0_10, %c0_11] : memref<32x64xf32, #tpu.memory_space<vmem>>, vector<32x64xf32>
    %cst_12 = arith.constant dense<0.000000e+00> : vector<128x64xf32>
    %15 = tpu.matmul %13, %14, %cst_12 {dimension_numbers = #tpu.dot_dimension_numbers<[1], [0], [0], [1], [0, 0, 1, 1], [], []>} : vector<128x32xf32>, vector<32x64xf32>, vector<128x64xf32> -> vector<128x64xf32>
    %16 = vector.shape_cast %15 : vector<128x64xf32> to vector<8x16x64xf32>
    %c0_13 = arith.constant 0 : index
    %c0_14 = arith.constant 0 : index
    %17 = vector.load %arg3[%c0_13, %c0_14] : memref<16x64xf32, #tpu.memory_space<vmem>>, vector<16x64xf32>
    %18 = vector.shape_cast %17 : vector<16x64xf32> to vector<1x16x64xf32>
    %19 = vector.broadcast %18 : vector<1x16x64xf32> to vector<8x16x64xf32>
    %20 = arith.addf %16, %19 : vector<8x16x64xf32>
    %cst_15 = arith.constant dense<0.000000e+00> : vector<8x64xf32>
    %21 = vector.multi_reduction <add>, %20, %cst_15 [1] : vector<8x16x64xf32> to vector<8x64xf32>
    %cst_16 = arith.constant 1.600000e+01 : f32
    %22 = vector.broadcast %cst_16 : f32 to vector<8x64xf32>
    %23 = arith.divf %21, %22 : vector<8x64xf32>
    %c0_17 = arith.constant 0 : index
    %c0_18 = arith.constant 0 : index
    %24 = vector.load %arg4[%c0_17, %c0_18] : memref<1x64xf32, #tpu.memory_space<vmem>>, vector<1x64xf32>
    %25 = vector.broadcast %24 : vector<1x64xf32> to vector<8x64xf32>
    %26 = arith.addf %23, %25 : vector<8x64xf32>
    %27 = vector.extract_strided_slice %20 {offsets = [0, 0, 0], sizes = [8, 16, 32], strides = [1, 1, 1]} : vector<8x16x64xf32> to vector<8x16x32xf32>
    %28 = vector.extract_strided_slice %20 {offsets = [0, 0, 32], sizes = [8, 16, 32], strides = [1, 1, 1]} : vector<8x16x64xf32> to vector<8x16x32xf32>
    %29 = vector.extract_strided_slice %26 {offsets = [0, 0], sizes = [8, 32], strides = [1, 1]} : vector<8x64xf32> to vector<8x32xf32>
    %30 = vector.extract_strided_slice %26 {offsets = [0, 32], sizes = [8, 32], strides = [1, 1]} : vector<8x64xf32> to vector<8x32xf32>
    %c0_19 = arith.constant 0 : index
    %c0_20 = arith.constant 0 : index
    %31 = vector.load %arg10[%c0_19, %c0_20] : memref<32x4xf32, #tpu.memory_space<vmem>>, vector<32x4xf32>
    %c0_21 = arith.constant 0 : index
    %c0_22 = arith.constant 0 : index
    %32 = vector.load %arg11[%c0_21, %c0_22] : memref<4x32xf32, #tpu.memory_space<vmem>>, vector<4x32xf32>
    %33 = vector.shape_cast %12 : vector<8x32xf32> to vector<8x1x32xf32>
    %34 = vector.broadcast %33 : vector<8x1x32xf32> to vector<8x16x32xf32>
    %35 = arith.mulf %34, %27 : vector<8x16x32xf32>
    %36 = vector.shape_cast %35 : vector<8x16x32xf32> to vector<128x32xf32>
    %cst_23 = arith.constant dense<0.000000e+00> : vector<128x4xf32>
    %37 = tpu.matmul %36, %31, %cst_23 {dimension_numbers = #tpu.dot_dimension_numbers<[1], [0], [0], [1], [0, 0, 1, 1], [], []>} : vector<128x32xf32>, vector<32x4xf32>, vector<128x4xf32> -> vector<128x4xf32>
    %38 = vector.shape_cast %37 : vector<128x4xf32> to vector<8x16x4xf32>
    %39 = arith.mulf %12, %29 : vector<8x32xf32>
    %cst_24 = arith.constant dense<0.000000e+00> : vector<8x4xf32>
    %40 = tpu.matmul %39, %31, %cst_24 {dimension_numbers = #tpu.dot_dimension_numbers<[1], [0], [0], [1], [0, 0, 1, 1], [], []>} : vector<8x32xf32>, vector<32x4xf32>, vector<8x4xf32> -> vector<8x4xf32>
    %cst_25 = arith.constant dense<0xFF800000> : vector<8x4xf32>
    %41 = vector.multi_reduction <maximumf>, %38, %cst_25 [1] : vector<8x16x4xf32> to vector<8x4xf32>
    %42 = arith.maximumf %41, %40 : vector<8x4xf32>
    %43 = vector.shape_cast %42 : vector<8x4xf32> to vector<8x1x4xf32>
    %44 = vector.broadcast %43 : vector<8x1x4xf32> to vector<8x16x4xf32>
    %45 = arith.subf %38, %44 : vector<8x16x4xf32>
    %46 = math.exp %45 : vector<8x16x4xf32>
    %47 = arith.subf %40, %42 : vector<8x4xf32>
    %48 = math.exp %47 : vector<8x4xf32>
    %cst_26 = arith.constant dense<0.000000e+00> : vector<8x4xf32>
    %49 = vector.multi_reduction <add>, %46, %cst_26 [1] : vector<8x16x4xf32> to vector<8x4xf32>
    %50 = arith.addf %48, %49 : vector<8x4xf32>
    %51 = tpu.reciprocal %50 {approx = true} : vector<8x4xf32> -> vector<8x4xf32>
    %52 = vector.shape_cast %46 : vector<8x16x4xf32> to vector<128x4xf32>
    %cst_27 = arith.constant dense<0.000000e+00> : vector<128x32xf32>
    %53 = tpu.matmul %52, %32, %cst_27 {dimension_numbers = #tpu.dot_dimension_numbers<[1], [0], [0], [1], [0, 0, 1, 1], [], []>} : vector<128x4xf32>, vector<4x32xf32>, vector<128x32xf32> -> vector<128x32xf32>
    %54 = vector.shape_cast %53 : vector<128x32xf32> to vector<8x16x32xf32>
    %cst_28 = arith.constant dense<0.000000e+00> : vector<8x32xf32>
    %55 = tpu.matmul %48, %32, %cst_28 {dimension_numbers = #tpu.dot_dimension_numbers<[1], [0], [0], [1], [0, 0, 1, 1], [], []>} : vector<8x4xf32>, vector<4x32xf32>, vector<8x32xf32> -> vector<8x32xf32>
    %cst_29 = arith.constant dense<0.000000e+00> : vector<8x32xf32>
    %56 = tpu.matmul %51, %32, %cst_29 {dimension_numbers = #tpu.dot_dimension_numbers<[1], [0], [0], [1], [0, 0, 1, 1], [], []>} : vector<8x4xf32>, vector<4x32xf32>, vector<8x32xf32> -> vector<8x32xf32>
    %57 = arith.mulf %54, %28 : vector<8x16x32xf32>
    %cst_30 = arith.constant dense<0.000000e+00> : vector<8x32xf32>
    %58 = vector.multi_reduction <add>, %57, %cst_30 [1] : vector<8x16x32xf32> to vector<8x32xf32>
    %59 = arith.mulf %55, %30 : vector<8x32xf32>
    %60 = arith.addf %58, %59 : vector<8x32xf32>
    %61 = arith.mulf %60, %56 : vector<8x32xf32>
    %c0_31 = arith.constant 0 : index
    %c0_32 = arith.constant 0 : index
    %62 = vector.load %arg8[%c0_31, %c0_32] : memref<32x64xf32, #tpu.memory_space<vmem>>, vector<32x64xf32>
    %cst_33 = arith.constant dense<0.000000e+00> : vector<8x64xf32>
    %63 = tpu.matmul %61, %62, %cst_33 {dimension_numbers = #tpu.dot_dimension_numbers<[1], [0], [0], [1], [0, 0, 1, 1], [], []>} : vector<8x32xf32>, vector<32x64xf32>, vector<8x64xf32> -> vector<8x64xf32>
    %c0_34 = arith.constant 0 : index
    %c0_35 = arith.constant 0 : index
    %64 = vector.load %arg9[%c0_34, %c0_35] : memref<1x64xf32, #tpu.memory_space<vmem>>, vector<1x64xf32>
    %65 = vector.broadcast %64 : vector<1x64xf32> to vector<8x64xf32>
    %66 = arith.addf %63, %65 : vector<8x64xf32>
    %c0_36 = arith.constant 0 : index
    %c0_37 = arith.constant 0 : index
    %67 = vector.load %arg12[%c0_36, %c0_37] : memref<8x64xf32, #tpu.memory_space<vmem>>, vector<8x64xf32>
    tpu.vector_store %arg12[%c0_36, %c0_37], %66 {strides = array<i32>} : memref<8x64xf32, #tpu.memory_space<vmem>>, vector<8x64xf32>,
    return
  }
  func.func @transform_0(%arg0: i32) -> (i32, i32, i32) {
    %c0_i32 = arith.constant 0 : i32
    %c0_i32_0 = arith.constant 0 : i32
    %c0_i32_1 = arith.constant 0 : i32
    return %arg0, %c0_i32, %c0_i32_0 : i32, i32, i32
  }
  func.func @transform_1(%arg0: i32) -> (i32, i32) {
    %c0_i32 = arith.constant 0 : i32
    %c0_i32_0 = arith.constant 0 : i32
    %c0_i32_1 = arith.constant 0 : i32
    return %c0_i32, %c0_i32_0 : i32, i32
  }
  func.func @transform_2(%arg0: i32) -> (i32, i32) {
    %c0_i32 = arith.constant 0 : i32
    %c0_i32_0 = arith.constant 0 : i32
    %c0_i32_1 = arith.constant 0 : i32
    return %c0_i32, %c0_i32_0 : i32, i32
  }
  func.func @transform_3(%arg0: i32) -> (i32, i32) {
    %c0_i32 = arith.constant 0 : i32
    %c0_i32_0 = arith.constant 0 : i32
    %c0_i32_1 = arith.constant 0 : i32
    return %c0_i32, %c0_i32_0 : i32, i32
  }
  func.func @transform_4(%arg0: i32) -> (i32, i32) {
    %c0_i32 = arith.constant 0 : i32
    %c0_i32_0 = arith.constant 0 : i32
    %c0_i32_1 = arith.constant 0 : i32
    return %c0_i32, %c0_i32_0 : i32, i32
  }
  func.func @transform_5(%arg0: i32) -> (i32, i32) {
    %c0_i32 = arith.constant 0 : i32
    %c0_i32_0 = arith.constant 0 : i32
    %c0_i32_1 = arith.constant 0 : i32
    return %c0_i32, %c0_i32_0 : i32, i32
  }
  func.func @transform_6(%arg0: i32) -> (i32, i32) {
    %c0_i32 = arith.constant 0 : i32
    %c0_i32_0 = arith.constant 0 : i32
    %c0_i32_1 = arith.constant 0 : i32
    return %c0_i32, %c0_i32_0 : i32, i32
  }
  func.func @transform_7(%arg0: i32) -> (i32, i32) {
    %c0_i32 = arith.constant 0 : i32
    %c0_i32_0 = arith.constant 0 : i32
    %c0_i32_1 = arith.constant 0 : i32
    return %c0_i32, %c0_i32_0 : i32, i32
  }
  func.func @transform_8(%arg0: i32) -> (i32, i32) {
    %c0_i32 = arith.constant 0 : i32
    %c0_i32_0 = arith.constant 0 : i32
    %c0_i32_1 = arith.constant 0 : i32
    return %c0_i32, %c0_i32_0 : i32, i32
  }
  func.func @transform_9(%arg0: i32) -> (i32, i32) {
    %c0_i32 = arith.constant 0 : i32
    %c0_i32_0 = arith.constant 0 : i32
    %c0_i32_1 = arith.constant 0 : i32
    return %c0_i32, %c0_i32_0 : i32, i32
  }
  func.func @transform_10(%arg0: i32) -> (i32, i32) {
    %c0_i32 = arith.constant 0 : i32
    %c0_i32_0 = arith.constant 0 : i32
    %c0_i32_1 = arith.constant 0 : i32
    return %c0_i32, %c0_i32_0 : i32, i32
  }
  func.func @transform_11(%arg0: i32) -> (i32, i32) {
    %c0_i32 = arith.constant 0 : i32
    %c0_i32_0 = arith.constant 0 : i32
    return %arg0, %c0_i32 : i32, i32
  }
}

module attributes {stable_mosaic.version = 11 : i64} {
  func.func @_attn_pool_kernel(%arg0: i32, %arg1: memref<8x16x32xf32, #tpu.memory_space<vmem>>, %arg2: memref<1x32xf32, #tpu.memory_space<vmem>>, %arg3: memref<16x64xf32, #tpu.memory_space<vmem>>, %arg4: memref<1x64xf32, #tpu.memory_space<vmem>>, %arg5: memref<32x32xf32, #tpu.memory_space<vmem>>, %arg6: memref<1x32xf32, #tpu.memory_space<vmem>>, %arg7: memref<32x64xf32, #tpu.memory_space<vmem>>, %arg8: memref<32x64xf32, #tpu.memory_space<vmem>>, %arg9: memref<1x64xf32, #tpu.memory_space<vmem>>, %arg10: memref<32x4xf32, #tpu.memory_space<vmem>>, %arg11: memref<4x32xf32, #tpu.memory_space<vmem>>, %arg12: memref<8x64xf32, #tpu.memory_space<vmem>>) attributes {dimension_semantics = [#tpu.dimension_semantics<parallel>], iteration_bounds = array<i64: 2>, scalar_prefetch = 0 : i64, scratch_operands = 0 : i64, tpu.core_type = #tpu.core_type<tc>, window_params = [{transform_indices = @transform_0, window_bounds = array<i64: 8, 16, 32>}, {pipeline_mode = #tpu.pipeline_mode<synchronous>, transform_indices = @transform_1, window_bounds = array<i64: 1, 32>}, {pipeline_mode = #tpu.pipeline_mode<synchronous>, transform_indices = @transform_2, window_bounds = array<i64: 16, 64>}, {pipeline_mode = #tpu.pipeline_mode<synchronous>, transform_indices = @transform_3, window_bounds = array<i64: 1, 64>}, {pipeline_mode = #tpu.pipeline_mode<synchronous>, transform_indices = @transform_4, window_bounds = array<i64: 32, 32>}, {pipeline_mode = #tpu.pipeline_mode<synchronous>, transform_indices = @transform_5, window_bounds = array<i64: 1, 32>}, {pipeline_mode = #tpu.pipeline_mode<synchronous>, transform_indices = @transform_6, window_bounds = array<i64: 32, 64>}, {pipeline_mode = #tpu.pipeline_mode<synchronous>, transform_indices = @transform_7, window_bounds = array<i64: 32, 64>}, {pipeline_mode = #tpu.pipeline_mode<synchronous>, transform_indices = @transform_8, window_bounds = array<i64: 1, 64>}, {pipeline_mode = #tpu.pipeline_mode<synchronous>, transform_indices = @transform_9, window_bounds = array<i64: 32, 4>}, {pipeline_mode = #tpu.pipeline_mode<synchronous>, transform_indices = @transform_10, window_bounds = array<i64: 4, 32>}, {transform_indices = @transform_11, window_bounds = array<i64: 8, 64>}]} {
    %c0 = arith.constant 0 : index
    %c0_0 = arith.constant 0 : index
    %c0_1 = arith.constant 0 : index
    %0 = vector.load %arg1[%c0, %c0_0, %c0_1] : memref<8x16x32xf32, #tpu.memory_space<vmem>>, vector<8x16x32xf32>
    %cst = arith.constant dense<0.000000e+00> : vector<8x32xf32>
    %1 = vector.multi_reduction <add>, %0, %cst [1] : vector<8x16x32xf32> to vector<8x32xf32>
    %cst_2 = arith.constant 1.600000e+01 : f32
    %2 = vector.broadcast %cst_2 : f32 to vector<8x32xf32>
    %3 = arith.divf %1, %2 : vector<8x32xf32>
    %c0_3 = arith.constant 0 : index
    %c0_4 = arith.constant 0 : index
    %4 = vector.load %arg2[%c0_3, %c0_4] : memref<1x32xf32, #tpu.memory_space<vmem>>, vector<1x32xf32>
    %5 = vector.broadcast %4 : vector<1x32xf32> to vector<8x32xf32>
    %6 = arith.addf %3, %5 : vector<8x32xf32>
    %c0_5 = arith.constant 0 : index
    %c0_6 = arith.constant 0 : index
    %7 = vector.load %arg5[%c0_5, %c0_6] : memref<32x32xf32, #tpu.memory_space<vmem>>, vector<32x32xf32>
    %cst_7 = arith.constant dense<0.000000e+00> : vector<8x32xf32>
    %8 = tpu.matmul %6, %7, %cst_7 {dimension_numbers = #tpu.dot_dimension_numbers<[1], [0], [0], [1], [0, 0, 1, 1], [], []>} : vector<8x32xf32>, vector<32x32xf32>, vector<8x32xf32> -> vector<8x32xf32>
    %c0_8 = arith.constant 0 : index
    %c0_9 = arith.constant 0 : index
    %9 = vector.load %arg6[%c0_8, %c0_9] : memref<1x32xf32, #tpu.memory_space<vmem>>, vector<1x32xf32>
    %10 = vector.broadcast %9 : vector<1x32xf32> to vector<8x32xf32>
    %11 = arith.addf %8, %10 : vector<8x32xf32>
    %12 = vector.shape_cast %0 : vector<8x16x32xf32> to vector<128x32xf32>
    %c0_10 = arith.constant 0 : index
    %c0_11 = arith.constant 0 : index
    %13 = vector.load %arg7[%c0_10, %c0_11] : memref<32x64xf32, #tpu.memory_space<vmem>>, vector<32x64xf32>
    %cst_12 = arith.constant dense<0.000000e+00> : vector<128x64xf32>
    %14 = tpu.matmul %12, %13, %cst_12 {dimension_numbers = #tpu.dot_dimension_numbers<[1], [0], [0], [1], [0, 0, 1, 1], [], []>} : vector<128x32xf32>, vector<32x64xf32>, vector<128x64xf32> -> vector<128x64xf32>
    %15 = vector.shape_cast %14 : vector<128x64xf32> to vector<8x16x64xf32>
    %c0_13 = arith.constant 0 : index
    %c0_14 = arith.constant 0 : index
    %16 = vector.load %arg3[%c0_13, %c0_14] : memref<16x64xf32, #tpu.memory_space<vmem>>, vector<16x64xf32>
    %17 = vector.shape_cast %16 : vector<16x64xf32> to vector<1x16x64xf32>
    %18 = vector.broadcast %17 : vector<1x16x64xf32> to vector<8x16x64xf32>
    %19 = arith.addf %15, %18 : vector<8x16x64xf32>
    %cst_15 = arith.constant dense<0.000000e+00> : vector<8x64xf32>
    %20 = vector.multi_reduction <add>, %19, %cst_15 [1] : vector<8x16x64xf32> to vector<8x64xf32>
    %cst_16 = arith.constant 1.600000e+01 : f32
    %21 = vector.broadcast %cst_16 : f32 to vector<8x64xf32>
    %22 = arith.divf %20, %21 : vector<8x64xf32>
    %c0_17 = arith.constant 0 : index
    %c0_18 = arith.constant 0 : index
    %23 = vector.load %arg4[%c0_17, %c0_18] : memref<1x64xf32, #tpu.memory_space<vmem>>, vector<1x64xf32>
    %24 = vector.broadcast %23 : vector<1x64xf32> to vector<8x64xf32>
    %25 = arith.addf %22, %24 : vector<8x64xf32>
    %26 = vector.extract_strided_slice %19 {offsets = [0, 0, 0], sizes = [8, 16, 32], strides = [1, 1, 1]} : vector<8x16x64xf32> to vector<8x16x32xf32>
    %27 = vector.extract_strided_slice %19 {offsets = [0, 0, 32], sizes = [8, 16, 32], strides = [1, 1, 1]} : vector<8x16x64xf32> to vector<8x16x32xf32>
    %28 = vector.extract_strided_slice %25 {offsets = [0, 0], sizes = [8, 32], strides = [1, 1]} : vector<8x64xf32> to vector<8x32xf32>
    %29 = vector.extract_strided_slice %25 {offsets = [0, 32], sizes = [8, 32], strides = [1, 1]} : vector<8x64xf32> to vector<8x32xf32>
    %c0_19 = arith.constant 0 : index
    %c0_20 = arith.constant 0 : index
    %30 = vector.load %arg10[%c0_19, %c0_20] : memref<32x4xf32, #tpu.memory_space<vmem>>, vector<32x4xf32>
    %c0_21 = arith.constant 0 : index
    %c0_22 = arith.constant 0 : index
    %31 = vector.load %arg11[%c0_21, %c0_22] : memref<4x32xf32, #tpu.memory_space<vmem>>, vector<4x32xf32>
    %32 = vector.shape_cast %11 : vector<8x32xf32> to vector<8x1x32xf32>
    %33 = vector.broadcast %32 : vector<8x1x32xf32> to vector<8x16x32xf32>
    %34 = arith.mulf %33, %26 : vector<8x16x32xf32>
    %35 = vector.shape_cast %34 : vector<8x16x32xf32> to vector<128x32xf32>
    %cst_23 = arith.constant dense<0.000000e+00> : vector<128x4xf32>
    %36 = tpu.matmul %35, %30, %cst_23 {dimension_numbers = #tpu.dot_dimension_numbers<[1], [0], [0], [1], [0, 0, 1, 1], [], []>} : vector<128x32xf32>, vector<32x4xf32>, vector<128x4xf32> -> vector<128x4xf32>
    %37 = vector.shape_cast %36 : vector<128x4xf32> to vector<8x16x4xf32>
    %38 = arith.mulf %11, %28 : vector<8x32xf32>
    %cst_24 = arith.constant dense<0.000000e+00> : vector<8x4xf32>
    %39 = tpu.matmul %38, %30, %cst_24 {dimension_numbers = #tpu.dot_dimension_numbers<[1], [0], [0], [1], [0, 0, 1, 1], [], []>} : vector<8x32xf32>, vector<32x4xf32>, vector<8x4xf32> -> vector<8x4xf32>
    %cst_25 = arith.constant dense<0xFF800000> : vector<8x4xf32>
    %40 = vector.multi_reduction <maximumf>, %37, %cst_25 [1] : vector<8x16x4xf32> to vector<8x4xf32>
    %41 = arith.maximumf %40, %39 : vector<8x4xf32>
    %42 = vector.shape_cast %41 : vector<8x4xf32> to vector<8x1x4xf32>
    %43 = vector.broadcast %42 : vector<8x1x4xf32> to vector<8x16x4xf32>
    %44 = arith.subf %37, %43 : vector<8x16x4xf32>
    %45 = math.exp %44 : vector<8x16x4xf32>
    %46 = arith.subf %39, %41 : vector<8x4xf32>
    %47 = math.exp %46 : vector<8x4xf32>
    %cst_26 = arith.constant dense<0.000000e+00> : vector<8x4xf32>
    %48 = vector.multi_reduction <add>, %45, %cst_26 [1] : vector<8x16x4xf32> to vector<8x4xf32>
    %49 = arith.addf %47, %48 : vector<8x4xf32>
    %50 = tpu.reciprocal %49 {approx = true} : vector<8x4xf32> -> vector<8x4xf32>
    %51 = vector.shape_cast %45 : vector<8x16x4xf32> to vector<128x4xf32>
    %cst_27 = arith.constant dense<0.000000e+00> : vector<128x32xf32>
    %52 = tpu.matmul %51, %31, %cst_27 {dimension_numbers = #tpu.dot_dimension_numbers<[1], [0], [0], [1], [0, 0, 1, 1], [], []>} : vector<128x4xf32>, vector<4x32xf32>, vector<128x32xf32> -> vector<128x32xf32>
    %53 = vector.shape_cast %52 : vector<128x32xf32> to vector<8x16x32xf32>
    %cst_28 = arith.constant dense<0.000000e+00> : vector<8x32xf32>
    %54 = tpu.matmul %47, %31, %cst_28 {dimension_numbers = #tpu.dot_dimension_numbers<[1], [0], [0], [1], [0, 0, 1, 1], [], []>} : vector<8x4xf32>, vector<4x32xf32>, vector<8x32xf32> -> vector<8x32xf32>
    %cst_29 = arith.constant dense<0.000000e+00> : vector<8x32xf32>
    %55 = tpu.matmul %50, %31, %cst_29 {dimension_numbers = #tpu.dot_dimension_numbers<[1], [0], [0], [1], [0, 0, 1, 1], [], []>} : vector<8x4xf32>, vector<4x32xf32>, vector<8x32xf32> -> vector<8x32xf32>
    %56 = arith.mulf %53, %27 : vector<8x16x32xf32>
    %cst_30 = arith.constant dense<0.000000e+00> : vector<8x32xf32>
    %57 = vector.multi_reduction <add>, %56, %cst_30 [1] : vector<8x16x32xf32> to vector<8x32xf32>
    %58 = arith.mulf %54, %29 : vector<8x32xf32>
    %59 = arith.addf %57, %58 : vector<8x32xf32>
    %60 = arith.mulf %59, %55 : vector<8x32xf32>
    %c0_31 = arith.constant 0 : index
    %c0_32 = arith.constant 0 : index
    %61 = vector.load %arg8[%c0_31, %c0_32] : memref<32x64xf32, #tpu.memory_space<vmem>>, vector<32x64xf32>
    %cst_33 = arith.constant dense<0.000000e+00> : vector<8x64xf32>
    %62 = tpu.matmul %60, %61, %cst_33 {dimension_numbers = #tpu.dot_dimension_numbers<[1], [0], [0], [1], [0, 0, 1, 1], [], []>} : vector<8x32xf32>, vector<32x64xf32>, vector<8x64xf32> -> vector<8x64xf32>
    %c0_34 = arith.constant 0 : index
    %c0_35 = arith.constant 0 : index
    %63 = vector.load %arg9[%c0_34, %c0_35] : memref<1x64xf32, #tpu.memory_space<vmem>>, vector<1x64xf32>
    %64 = vector.broadcast %63 : vector<1x64xf32> to vector<8x64xf32>
    %65 = arith.addf %62, %64 : vector<8x64xf32>
    %c0_36 = arith.constant 0 : index
    %c0_37 = arith.constant 0 : index
    %66 = vector.load %arg12[%c0_36, %c0_37] : memref<8x64xf32, #tpu.memory_space<vmem>>, vector<8x64xf32>
    tpu.vector_store %arg12[%c0_36, %c0_37], %65 {strides = array<i32>} : memref<8x64xf32, #tpu.memory_space<vmem>>, vector<8x64xf32>,
    return
  }
  func.func @transform_0(%arg0: i32) -> (i32, i32, i32) {
    %c0_i32 = arith.constant 0 : i32
    %c0_i32_0 = arith.constant 0 : i32
    %c0_i32_1 = arith.constant 0 : i32
    return %arg0, %c0_i32, %c0_i32_0 : i32, i32, i32
  }
  func.func @transform_1(%arg0: i32) -> (i32, i32) {
    %c0_i32 = arith.constant 0 : i32
    %c0_i32_0 = arith.constant 0 : i32
    %c0_i32_1 = arith.constant 0 : i32
    return %c0_i32, %c0_i32_0 : i32, i32
  }
  func.func @transform_2(%arg0: i32) -> (i32, i32) {
    %c0_i32 = arith.constant 0 : i32
    %c0_i32_0 = arith.constant 0 : i32
    %c0_i32_1 = arith.constant 0 : i32
    return %c0_i32, %c0_i32_0 : i32, i32
  }
  func.func @transform_3(%arg0: i32) -> (i32, i32) {
    %c0_i32 = arith.constant 0 : i32
    %c0_i32_0 = arith.constant 0 : i32
    %c0_i32_1 = arith.constant 0 : i32
    return %c0_i32, %c0_i32_0 : i32, i32
  }
  func.func @transform_4(%arg0: i32) -> (i32, i32) {
    %c0_i32 = arith.constant 0 : i32
    %c0_i32_0 = arith.constant 0 : i32
    %c0_i32_1 = arith.constant 0 : i32
    return %c0_i32, %c0_i32_0 : i32, i32
  }
  func.func @transform_5(%arg0: i32) -> (i32, i32) {
    %c0_i32 = arith.constant 0 : i32
    %c0_i32_0 = arith.constant 0 : i32
    %c0_i32_1 = arith.constant 0 : i32
    return %c0_i32, %c0_i32_0 : i32, i32
  }
  func.func @transform_6(%arg0: i32) -> (i32, i32) {
    %c0_i32 = arith.constant 0 : i32
    %c0_i32_0 = arith.constant 0 : i32
    %c0_i32_1 = arith.constant 0 : i32
    return %c0_i32, %c0_i32_0 : i32, i32
  }
  func.func @transform_7(%arg0: i32) -> (i32, i32) {
    %c0_i32 = arith.constant 0 : i32
    %c0_i32_0 = arith.constant 0 : i32
    %c0_i32_1 = arith.constant 0 : i32
    return %c0_i32, %c0_i32_0 : i32, i32
  }
  func.func @transform_8(%arg0: i32) -> (i32, i32) {
    %c0_i32 = arith.constant 0 : i32
    %c0_i32_0 = arith.constant 0 : i32
    %c0_i32_1 = arith.constant 0 : i32
    return %c0_i32, %c0_i32_0 : i32, i32
  }
  func.func @transform_9(%arg0: i32) -> (i32, i32) {
    %c0_i32 = arith.constant 0 : i32
    %c0_i32_0 = arith.constant 0 : i32
    %c0_i32_1 = arith.constant 0 : i32
    return %c0_i32, %c0_i32_0 : i32, i32
  }
  func.func @transform_10(%arg0: i32) -> (i32, i32) {
    %c0_i32 = arith.constant 0 : i32
    %c0_i32_0 = arith.constant 0 : i32
    %c0_i32_1 = arith.constant 0 : i32
    return %c0_i32, %c0_i32_0 : i32, i32
  }
  func.func @transform_11(%arg0: i32) -> (i32, i32) {
    %c0_i32 = arith.constant 0 : i32
    %c0_i32_0 = arith.constant 0 : i32
    return %arg0, %c0_i32 : i32, i32
  }
}

</mosaic_0001>

<bundles_post_ra>
// kernel: tpu_custom_call.1
= control target key start
LH: loop header
LB: loop body
LE: loop exit
PB: predicated region body
PF: predicated region fallthrough
CT: control target
= control target key end

     0   :  { %s3805_s0 = inlined_call_operand.vmem [shape: f32[16,32,16], index: 0, kind: input, shape index: {}]   ;;  %s3806_s1 = inlined_call_operand.vmem [shape: f32[1,32], index: 1, kind: input, shape index: {}]   ;;  %s3807_s2 = inlined_call_operand.vmem [shape: f32[16,64], index: 2, kind: input, shape index: {}]   ;;  %s3808_s3 = inlined_call_operand.vmem [shape: f32[1,64], index: 3, kind: input, shape index: {}]   ;;  %s3809_s4 = inlined_call_operand.vmem [shape: f32[32,32], index: 4, kind: input, shape index: {}]   ;;  %s3810_s5 = inlined_call_operand.vmem [shape: f32[1,32], index: 5, kind: input, shape index: {}]   ;;  %s3811_s6 = inlined_call_operand.vmem [shape: f32[32,64], index: 6, kind: input, shape index: {}]   ;;  %s3812_s7 = inlined_call_operand.vmem [shape: f32[32,64], index: 7, kind: input, shape index: {}]   ;;  %s3813_s8 = inlined_call_operand.vmem [shape: f32[1,64], index: 8, kind: input, shape index: {}]   ;;  %s3814_s9 = inlined_call_operand.vmem [shape: f32[32,4], index: 9, kind: input, shape index: {}]   ;;  %s3815_s10 = inlined_call_operand.vmem [shape: f32[4,32], index: 10, kind: input, shape index: {}]   ;;  %s3816_s11 = inlined_call_operand.hbm [shape: f32[16,64], index: 11, kind: output, shape index: {}]  }
   0x1   :  { %3817 = sst [smem:[#allocation5_spill]] %s3805_s0 }
   0x2   :  { %16 = vsyncpa [#allocation3], 0 }
   0x3   :  { %18 = vsyncpa [#allocation3 + $0x1], 0  ;;  %s3144_s17 = smov 0   ;;  %s3146_s18 = smov 0  }
   0x4   :  { %s3148_s19 = smov 0   ;;  %s3150_s20 = smov 0  }
   0x5 LB: > { %s3165_s21 = sadd.s32 4294967295, %s3076_s20   ;;  %s2618_s22 = sadd.s32 4294967294, %s3076_s20   ;;  %s3076_s20 = sphi %s3150_s20, %s3824_s20   ;;  %s3072_s19 = sphi %s3148_s19, %s3823_s19   ;;  %s3068_s18 = sphi %s3146_s18, %s3822_s18   ;;  %s3064_s17 = sphi %s3144_s17, %s3821_s17  }
   0x6   : > { %s3169_s23 = sadd.s32 1, %s3076_s20   ;;  %s267_s24 = sadd.s32 1, %s3072_s19 }
   0x7   : > { %s264_s25 = ssub.s32 %s3076_s20, %s3169_s23  ;;  %p277_p0 = scmp.ne.s32.totalorder %s3072_s19, %s3068_s18 }
   0x8   : > { %p265_p1 = scmp.eq.s32.totalorder %s264_s25, 0  ;;  %p278_p2 = scmp.eq.s32.totalorder %s3165_s21, 1 }
   0x9   : > { %p283_p3 = scmp.ne.s32.totalorder %s3068_s18, %s3064_s17  ;;  %p284_p4 = scmp.eq.s32.totalorder %s2618_s22, 1 }
   0xa   : > { %s3180_s26 = scalar_select %p265_p1, %s3072_s19, %s267_s24  }
   0xb   : > { %p3182_p5 = por %p278_p2, %p277_p0  ;;  %p3186_p6 = por %p284_p4, %p283_p3 }
   0xc   : > { %p2621_p7 = scmp.ge.s32.totalorder %s3076_s20, 1  ;;  %p342_p8 = scmp.lt.s32.totalorder %s3076_s20, 3 }
   0xe   : > { %p343_p9 = pnand %p2621_p7, %p342_p8 }
   0xf   : > { %s2623_s29 = sshll.u32 (!%p343_p9), %s3165_s21, 3  ;;  %s3820_s0 = sld [smem:[#allocation5_spill]] (!%p343_p9)  ;;  %v887_v8 = vld [vmem:[%s3811_s6] sm:$0xff] (!%p343_p9)  ;;  %v888_v9 = vld [vmem:[%s3811_s6 + $0x8] sm:$0xff] (!%p343_p9)  ;;  %v889_v13 = vld [vmem:[%s3811_s6 + $0x10] sm:$0xff] (!%p343_p9)  ;;  %v3078_v41 = vmov (!%p343_p9), 0.0|0.0  }
  0x10   : > { %346 = sbr.rel (%p343_p9) target bundleno = 1222 (0x4c6), region = 64  ;;  %p384_p10 = scmp.lt.s32.totalorder (!%p343_p9), %s2623_s29, 15  ;;  %v2906_v10 = vpack.c.bf16 (!%p343_p9), %v888_v9, %v887_v8  ;;  %v890_v14 = vld [vmem:[%s3811_s6 + $0x18] sm:$0xff] (!%p343_p9)  ;;  %v775_v38 = vld [vmem:[%s3809_s4] sm:$0xff] (!%p343_p9)  ;;  %v776_v39 = vld [vmem:[%s3809_s4 + $0x8] sm:$0xff] (!%p343_p9)  ;;  %2900 = vmatprep.subr.bf16.mxu0 (!%p343_p9), %v3078_v41  ;;  %vm3079_vm0 = vmmov (!%p343_p9), 0  }
  0x11   : > { %v2910_v15 = vpack.c.bf16 (!%p343_p9), %v890_v14, %v889_v13  ;;  %v2901_v40 = vpack.c.bf16 (!%p343_p9), %v776_v39, %v775_v38  ;;  %v777_v42 = vld [vmem:[%s3809_s4 + $0x10] sm:$0xff] (!%p343_p9)  ;;  %v778_v43 = vld [vmem:[%s3809_s4 + $0x18] sm:$0xff] (!%p343_p9)  ;;  %v3080_v45 = vmov (!%p343_p9), 0.0   ;;  %vm678_vm1 = vcmask (!%p343_p9), 261120   ;;  %s3081_s16 = smov (!%p343_p9), 96   ;;  %s2687_s15 = sshll.u32 (!%p343_p9), %s3165_s21, 7 }
  0x12   : > { %2907 = vmatprep.subr.bf16.mxu1 (!%p343_p9), %v2906_v10  ;;  %v2904_v44 = vpack.c.bf16 (!%p343_p9), %v778_v43, %v777_v42  ;;  %2775 = vmatprep.mubr.msk.f32.mxu0 (!%p343_p9), %vm3079_vm0, %v3080_v45  ;;  %vm795_vm2 = vcmask (!%p343_p9), 1041409   ;;  %vm798_vm3 = vcmask (!%p343_p9), 1042434   ;;  %vm801_vm4 = vcmask (!%p343_p9), 1043459   ;;  %s3083_s21 = smov (!%p343_p9), [#allocation2]  }
  0x13   : > { %2909 = vmatpush3.bf16.msra.mxu1 (!%p343_p9), %v2906_v10  ;;  %2902 = vmatpush3.bf16.msra.mxu0 (!%p343_p9), %v2901_v40  ;;  %vm804_vm5 = vcmask (!%p343_p9), 1044484   ;;  %vm807_vm6 = vcmask (!%p343_p9), 1045509   ;;  %vm810_vm7 = vcmask (!%p343_p9), 1046534   ;;  %vm813_vm8 = vcmask (!%p343_p9), 1047559  }
  0x14   : > { %2911 = vmatprep.subr.bf16.mxu1 (!%p343_p9), %v2910_v15  ;;  %2903 = vmatprep.subr.bf16.mxu0 (!%p343_p9), %v3078_v41  ;;  %vm1102_vm9 = vcmask (!%p343_p9), 523264   ;;  %vm1940_vm10 = vcmask (!%p343_p9), 1043456   ;;  %vm1599_vm11 = vcmask (!%p343_p9), 31744  }
  0x17   : > { %s3826_s29 = smov (!%p384_p10, %s2623_s29), 15  ;;  %2913 = vmatpush3.bf16.msra.mxu1 %v2910_v15  ;;  %2905 = vmatpush3.bf16.msra.mxu0 %v2904_v44 }
  0x18   : > { %s2690_s30 = sshll.u32 %s3826_s29, 5  ;;  %s3762_s29 = scalar_lea.hbm %s3816_s11, %s2687_s15 }
  0x19   : > { %s3196_s14 = scalar_lea.vmem %s3820_s0, %s2690_s30 }
  0x1a   : > { %v398_v0 = vld [vmem:[%s3196_s14 + $0x40] sm:$0xff]  ;;  %v399_v2 = vld [vmem:[%s3196_s14 + $0x48] sm:$0xff]  ;;  %v400_v4 = vld [vmem:[%s3196_s14 + $0x50] sm:$0xff] }
  0x1b   : > { %v394_v1 = vld [vmem:[%s3196_s14 + $0x20] sm:$0xff]  ;;  %486 = vxpose.xlu1.b32.start [1/4] (short) (narrow) %v398_v0, 16  ;;  %v395_v3 = vld [vmem:[%s3196_s14 + $0x28] sm:$0xff]  ;;  %v396_v5 = vld [vmem:[%s3196_s14 + $0x30] sm:$0xff] }
  0x1c   : > { %454 = vxpose.xlu0.b32.start [1/4] (short) (narrow) %v394_v1, 16  ;;  %v401_v6 = vld [vmem:[%s3196_s14 + $0x58] sm:$0xff]  ;;  %v402_v11 = vld [vmem:[%s3196_s14 + $0x60] sm:$0xff]  ;;  %v403_v16 = vld [vmem:[%s3196_s14 + $0x68] sm:$0xff] }
  0x1d   : > { %v397_v7 = vld [vmem:[%s3196_s14 + $0x38] sm:$0xff]  ;;  %v390_v12 = vld [vmem:[%s3196_s14] sm:$0xff]  ;;  %v391_v17 = vld [vmem:[%s3196_s14 + $0x8] sm:$0xff] }
  0x1e   : > { %v404_v18 = vld [vmem:[%s3196_s14 + $0x70] sm:$0xff]  ;;  %v405_v20 = vld [vmem:[%s3196_s14 + $0x78] sm:$0xff]  ;;  %v410_v22 = vld [vmem:[%s3196_s14 + $0xa0] sm:$0xff] }
  0x1f   : > { %487 = vxpose.xlu1.b32.cont [2/4] (short) (narrow) %v399_v2, 16  ;;  %v392_v19 = vld [vmem:[%s3196_s14 + $0x10] sm:$0xff]  ;;  %v393_v21 = vld [vmem:[%s3196_s14 + $0x18] sm:$0xff]  ;;  %v406_v23 = vld [vmem:[%s3196_s14 + $0x80] sm:$0xff] }
  0x20   : > { %455 = vxpose.xlu0.b32.cont [2/4] (short) (narrow) %v395_v3, 16  ;;  %v411_v24 = vld [vmem:[%s3196_s14 + $0xa8] sm:$0xff]  ;;  %v412_v26 = vld [vmem:[%s3196_s14 + $0xb0] sm:$0xff]  ;;  %v413_v28 = vld [vmem:[%s3196_s14 + $0xb8] sm:$0xff] }
  0x21   : > { %v407_v25 = vld [vmem:[%s3196_s14 + $0x88] sm:$0xff]  ;;  %v408_v27 = vld [vmem:[%s3196_s14 + $0x90] sm:$0xff]  ;;  %v409_v29 = vld [vmem:[%s3196_s14 + $0x98] sm:$0xff] }
  0x22   : > { %v418_v30 = vld [vmem:[%s3196_s14 + $0xe0] sm:$0xff]  ;;  %v419_v32 = vld [vmem:[%s3196_s14 + $0xe8] sm:$0xff]  ;;  %v420_v34 = vld [vmem:[%s3196_s14 + $0xf0] sm:$0xff] }
  0x23   : > { %488 = vxpose.xlu1.b32.cont [3/4] (short) (narrow) %v400_v4, 16  ;;  %v414_v31 = vld [vmem:[%s3196_s14 + $0xc0] sm:$0xff]  ;;  %v415_v33 = vld [vmem:[%s3196_s14 + $0xc8] sm:$0xff]  ;;  %v416_v35 = vld [vmem:[%s3196_s14 + $0xd0] sm:$0xff] }
  0x24   : > { %456 = vxpose.xlu0.b32.cont [3/4] (short) (narrow) %v396_v5, 16  ;;  %v421_v36 = vld [vmem:[%s3196_s14 + $0xf8] sm:$0xff] }
  0x25   : > { %v417_v37 = vld [vmem:[%s3196_s14 + $0xd8] sm:$0xff]  ;;  %s380_s14 = sand.u32 1, %s3068_s18  }
  0x26   : > { %s2622_s30 = sshll.u32 %s380_s14, 3  ;;  %s2546_s12 = scalar_lea.sflag [#allocation3], %s380_s14 }
  0x27   : > { %489 = vxpose.xlu1.b32.end [4/4] (short) (narrow) %v401_v6, 16 }
  0x28   : > { %457 = vxpose.xlu0.b32.end [4/4] (short) (narrow) %v397_v7, 16 }
  0x2b   : > { %518 = vxpose.xlu1.b32.start [1/4] (short) (narrow) %v402_v11, 16 }
  0x2c   : > { %422 = vxpose.xlu0.b32.start [1/4] (short) (narrow) %v390_v12, 16 }
  0x2f   : > { %519 = vxpose.xlu1.b32.cont [2/4] (short) (narrow) %v403_v16, 16 }
  0x30   : > { %423 = vxpose.xlu0.b32.cont [2/4] (short) (narrow) %v391_v17, 16 }
  0x33   : > { %520 = vxpose.xlu1.b32.cont [3/4] (short) (narrow) %v404_v18, 16 }
  0x34   : > { %424 = vxpose.xlu0.b32.cont [3/4] (short) (narrow) %v392_v19, 16 }
  0x37   : > { %521 = vxpose.xlu1.b32.end [4/4] (short) (narrow) %v405_v20, 16 }
  0x38   : > { %425 = vxpose.xlu0.b32.end [4/4] (short) (narrow) %v393_v21, 16 }
  0x3b   : > { %582 = vxpose.xlu1.b32.start [1/4] (short) (narrow) %v410_v22, 16 }
  0x3c   : > { %550 = vxpose.xlu0.b32.start [1/4] (short) (narrow) %v406_v23, 16 }
  0x3f   : > { %583 = vxpose.xlu1.b32.cont [2/4] (short) (narrow) %v411_v24, 16 }
  0x40   : > { %551 = vxpose.xlu0.b32.cont [2/4] (short) (narrow) %v407_v25, 16 }
  0x43   : > { %584 = vxpose.xlu1.b32.cont [3/4] (short) (narrow) %v412_v26, 16 }
  0x44   : > { %552 = vxpose.xlu0.b32.cont [3/4] (short) (narrow) %v408_v27, 16 }
  0x47   : > { %585 = vxpose.xlu1.b32.end [4/4] (short) (narrow) %v413_v28, 16 }
  0x48   : > { %553 = vxpose.xlu0.b32.end [4/4] (short) (narrow) %v409_v29, 16 }
  0x4b   : > { %646 = vxpose.xlu1.b32.start [1/4] (short) (narrow) %v418_v30, 16 }
  0x4c   : > { %614 = vxpose.xlu0.b32.start [1/4] (short) (narrow) %v414_v31, 16 }
  0x4f   : > { %647 = vxpose.xlu1.b32.cont [2/4] (short) (narrow) %v419_v32, 16 }
  0x50   : > { %615 = vxpose.xlu0.b32.cont [2/4] (short) (narrow) %v415_v33, 16 }
  0x53   : > { %648 = vxpose.xlu1.b32.cont [3/4] (short) (narrow) %v420_v34, 16 }
  0x54   : > { %616 = vxpose.xlu0.b32.cont [3/4] (short) (narrow) %v416_v35, 16 }
  0x57   : > { %649 = vxpose.xlu1.b32.end [4/4] (short) (narrow) %v421_v36, 16 }
  0x58   : > { %617 = vxpose.xlu0.b32.end [4/4] (short) (narrow) %v417_v37, 16 }
  0x9b   : > { %v502_v46 = vpop.trf.xlu1 }
  0x9c   : > { %v470_v47 = vpop.trf.xlu0  ;;  %v697_v56 = vsel %vm678_vm1, %v502_v46, 0.0 }
  0x9d   : > { %v688_v52 = vsel %vm678_vm1, %v470_v47, 0.0 }
  0x9f   : > { %v503_v48 = vpop.trf.xlu1 }
  0xa0   : > { %v471_v49 = vpop.trf.xlu0  ;;  %v698_v57 = vsel %vm678_vm1, %v503_v48, 0.0 }
  0xa1   : > { %v689_v53 = vsel %vm678_vm1, %v471_v49, 0.0  ;;  %v699_v63 = vadd.f32 %v698_v57, %v697_v56 }
  0xa2   : > { %v690_v58 = vadd.f32 %v689_v53, %v688_v52 }
  0xa3   : > { %v700_v3 = vrot.slane %v699_v63, 4 }
  0xa4   : > { %v691_v0 = vrot.slane %v690_v58, 4 }
  0xa5   : > { %v701_v9 = vadd.f32 %v700_v3, %v699_v63 }
  0xa6   : > { %v692_v4 = vadd.f32 %v691_v0, %v690_v58 }
  0xa7   : > { %v702_v19 = vrot.slane %v701_v9, 2 }
  0xa8   : > { %v693_v10 = vrot.slane %v692_v4, 2 }
  0xa9   : > { %v703_v27 = vadd.f32 %v702_v19, %v701_v9 }
  0xaa   : > { %v694_v22 = vadd.f32 %v693_v10, %v692_v4 }
  0xab   : > { %v534_v50 = vpop.trf.xlu1  ;;  %v704_v35 = vrot.slane %v703_v27, 1 }
  0xac   : > { %v438_v51 = vpop.trf.xlu0  ;;  %v706_v61 = vsel %vm678_vm1, %v534_v50, 0.0  ;;  %v695_v30 = vrot.slane %v694_v22, 1 }
  0xad   : > { %2786 = vmatprep.mubr.msk.f32.mxu1 %vm678_vm1, %v438_v51  ;;  %v679_v59 = vsel %vm678_vm1, %v438_v51, 0.0  ;;  %v705_v44 = vadd.f32 %v704_v35, %v703_v27 }
  0xae   : > { %v696_v37 = vadd.f32 %v695_v30, %v694_v22 }
  0xaf   : > { %v535_v55 = vpop.trf.xlu1  ;;  %v754_v58 = vmul.f32 0.0625, %v705_v44  ;;  %v1201_v44 = vld [vmem:[%s3814_s9 + $0x18] sm:$0xff] }
  0xb0   : > { %v439_v54 = vpop.trf.xlu0  ;;  %v707_v62 = vsel %vm678_vm1, %v535_v55, 0.0 }
  0xb1   : > { %2787 = vmatmul.mubr.msk.f32.vlgmr.msra.gmra.mrb[0].mxu1 %vm678_vm1, %v439_v54  ;;  %v680_v60 = vsel %vm678_vm1, %v439_v54, 0.0  ;;  %v708_v2 = vadd.f32 %v707_v62, %v706_v61 }
  0xb2   : > { %2789 = vmatprep.mubr.msk.f32.mxu1 %vm678_vm1, %v470_v47  ;;  %v681_v1 = vadd.f32 %v680_v60, %v679_v59  ;;  %v753_v47 = vmul.f32 0.0625, %v696_v37 }
  0xb3   : > { %v709_v6 = vrot.slane %v708_v2, 4 }
  0xb4   : > { %v682_v5 = vrot.slane %v681_v1, 4 }
  0xb5   : > { %2790 = vmatmul.mubr.msk.f32.gmra.mrb[2].mxu1 %vm678_vm1, %v471_v49  ;;  %v710_v14 = vadd.f32 %v709_v6, %v708_v2  ;;  %v2626_v49 = vld [vmem:[%s3806_s1] ss:$0 sm:$0xff] }
  0xb6   : > { %2792 = vmatprep.mubr.msk.f32.mxu1 %vm678_vm1, %v502_v46  ;;  %v683_v11 = vadd.f32 %v682_v5, %v681_v1  ;;  %v768_v62 = vadd.f32 %v2626_v49, %v753_v47  ;;  %v769_v4 = vadd.f32 %v2626_v49, %v754_v58  ;;  %v3325_v47 = vld [vmem:[%s3807_s2 + $0x8] sm:$0xff] }
  0xb7   : > { %v711_v24 = vrot.slane %v710_v14, 2 }
  0xb8   : > { %v684_v23 = vrot.slane %v683_v11, 2 }
  0xb9   : > { %2793 = vmatmul.mubr.msk.f32.gmra.mrb[4].mxu1 %vm678_vm1, %v503_v48  ;;  %v712_v32 = vadd.f32 %v711_v24, %v710_v14  ;;  %v797_v14 = vrot.slane %v769_v4, 6 }
  0xba   : > { %2795 = vmatprep.mubr.msk.f32.mxu1 %vm678_vm1, %v534_v50  ;;  %v685_v31 = vadd.f32 %v684_v23, %v683_v11 }
  0xbb   : > { %v598_v7 = vpop.trf.xlu1  ;;  %v713_v39 = vrot.slane %v712_v32, 1 }
  0xbc   : > { %v566_v8 = vpop.trf.xlu0  ;;  %v724_v12 = vsel %vm678_vm1, %v598_v7, 0.0  ;;  %v686_v38 = vrot.slane %v685_v31, 1 }
  0xbd   : > { %2796 = vmatmul.mubr.msk.f32.gmra.mrb[6].mxu1 %vm678_vm1, %v535_v55  ;;  %v715_v13 = vsel %vm678_vm1, %v566_v8, 0.0  ;;  %v714_v50 = vadd.f32 %v713_v39, %v712_v32  ;;  %v1198_v39 = vld [vmem:[%s3814_s9] sm:$0xff] }
  0xbe   : > { %2798 = vmatprep.mubr.msk.f32.mxu1 %vm678_vm1, %v566_v8  ;;  %v687_v48 = vadd.f32 %v686_v38, %v685_v31  ;;  %v794_v8 = vrot.slane %v768_v62, 7 }
  0xbf   : > { %v599_v15 = vpop.trf.xlu1  ;;  %v755_v2 = vmul.f32 0.0625, %v714_v50 }
  0xc0   : > { %v567_v16 = vpop.trf.xlu0  ;;  %v725_v17 = vsel %vm678_vm1, %v599_v15, 0.0  ;;  %v752_v63 = vmul.f32 0.0625, %v687_v48  ;;  %v3330_v48 = vld [vmem:[%s3807_s2] sm:$0xff] }
  0xc1   : > { %v716_v18 = vsel %vm678_vm1, %v567_v16, 0.0  ;;  %2799 = vmatmul.mubr.msk.f32.gmra.mrb[8].mxu1 %vm678_vm1, %v567_v16  ;;  %v726_v20 = vadd.f32 %v725_v17, %v724_v12  ;;  %v770_v12 = vadd.f32 %v2626_v49, %v755_v2 }
  0xc2   : > { %v717_v21 = vadd.f32 %v716_v18, %v715_v13  ;;  %2801 = vmatprep.mubr.msk.f32.mxu1 %vm678_vm1, %v598_v7  ;;  %v767_v9 = vadd.f32 %v2626_v49, %v752_v63 }
  0xc3   : > { %v727_v25 = vrot.slane %v726_v20, 4 }
  0xc4   : > { %v718_v26 = vrot.slane %v717_v21, 4  ;;  %v796_v18 = vsel %vm795_vm2, %v794_v8, %v767_v9 }
  0xc5   : > { %2802 = vmatmul.mubr.msk.f32.gmra.mrb[10].mxu1 %vm678_vm1, %v599_v15  ;;  %v728_v28 = vadd.f32 %v727_v25, %v726_v20 }
  0xc6   : > { %v719_v29 = vadd.f32 %v718_v26, %v717_v21  ;;  %v800_v21 = vrot.slane %v770_v12, 5  ;;  %v799_v26 = vsel %vm798_vm3, %v797_v14, %v796_v18 }
  0xc7   : > { %v729_v33 = vrot.slane %v728_v28, 2 }
  0xc8   : > { %v720_v34 = vrot.slane %v719_v29, 2  ;;  %v802_v30 = vsel %vm801_vm4, %v800_v21, %v799_v26 }
  0xc9   : > { %v730_v40 = vadd.f32 %v729_v33, %v728_v28 }
  0xca   : > { %v721_v36 = vadd.f32 %v720_v34, %v719_v29 }
  0xcb   : > { %v662_v42 = vpop.trf.xlu1  ;;  %v731_v51 = vrot.slane %v730_v40, 1 }
  0xcc   : > { %v630_v43 = vpop.trf.xlu0  ;;  %v722_v46 = vrot.slane %v721_v36, 1  ;;  %v742_v54 = vsel %vm678_vm1, %v662_v42, 0.0 }
  0xcd   : > { %2804 = vmatprep.mubr.msk.f32.mxu1 %vm678_vm1, %v630_v43  ;;  %v733_v55 = vsel %vm678_vm1, %v630_v43, 0.0  ;;  %v732_v3 = vadd.f32 %v731_v51, %v730_v40  ;;  %v1199_v40 = vld [vmem:[%s3814_s9 + $0x8] sm:$0xff]  ;;  %v1200_v43 = vld [vmem:[%s3814_s9 + $0x10] sm:$0xff] }
  0xce   : > { %v723_v59 = vadd.f32 %v722_v46, %v721_v36  ;;  %v3317_v46 = vpack.c.bf16 %v1201_v44, %v1200_v43 }
  0xcf   : > { %v663_v52 = vpop.trf.xlu1  ;;  %v757_v13 = vmul.f32 0.0625, %v732_v3 }
  0xd0   : > { %v631_v53 = vpop.trf.xlu0  ;;  %v743_v56 = vsel %vm678_vm1, %v663_v52, 0.0  ;;  %v756_v5 = vmul.f32 0.0625, %v723_v59 }
  0xd1   : > { %v734_v57 = vsel %vm678_vm1, %v631_v53, 0.0  ;;  %2805 = vmatmul.mubr.msk.f32.gmra.mrb[12].mxu1 %vm678_vm1, %v631_v53  ;;  %v744_v60 = vadd.f32 %v743_v56, %v742_v54  ;;  %v772_v22 = vadd.f32 %v2626_v49, %v757_v13 }
  0xd2   : > { %v735_v61 = vadd.f32 %v734_v57, %v733_v55  ;;  %2807 = vmatprep.mubr.msk.f32.mxu1 %vm678_vm1, %v662_v42  ;;  %v771_v15 = vadd.f32 %v2626_v49, %v756_v5  ;;  %v3307_v42 = vpack.c.bf16 %v1199_v40, %v1198_v39  ;;  %v3403_v40 = vld [vmem:[%s3808_s3] ss:$0 sm:$0xff] }
  0xd3   : > { %v745_v0 = vrot.slane %v744_v60, 4  ;;  %v806_v29 = vrot.slane %v772_v22, 3 }
  0xd4   : > { %v736_v1 = vrot.slane %v735_v61, 4  ;;  %v803_v23 = vrot.slane %v771_v15, 4  ;;  %2915 = vmatprep.subr.bf16.mxu0 %v3307_v42 }
  0xd5   : > { %2808 = vmatmul.mubr.msk.f32.gmra.mrb[14].mxu1 %vm678_vm1, %v663_v52  ;;  %v746_v6 = vadd.f32 %v745_v0, %v744_v60 }
  0xd6   : > { %v737_v7 = vadd.f32 %v736_v1, %v735_v61  ;;  %v805_v33 = vsel %vm804_vm5, %v803_v23, %v802_v30 }
  0xd7   : > { %v747_v10 = vrot.slane %v746_v6, 2  ;;  %v808_v36 = vsel %vm807_vm6, %v806_v29, %v805_v33 }
  0xd8   : > { %v738_v11 = vrot.slane %v737_v7, 2 }
  0xd9   : > { %v748_v16 = vadd.f32 %v747_v10, %v746_v6 }
  0xda   : > { %v739_v17 = vadd.f32 %v738_v11, %v737_v7 }
  0xdb   : > { %v749_v19 = vrot.slane %v748_v16, 1 }
  0xdc   : > { %v740_v20 = vrot.slane %v739_v17, 1 }
  0xdd   : > { %v750_v24 = vadd.f32 %v749_v19, %v748_v16 }
  0xde   : > { %v741_v25 = vadd.f32 %v740_v20, %v739_v17 }
  0xdf   : > { %v759_v27 = vmul.f32 0.0625, %v750_v24 }
  0xe0   : > { %v758_v28 = vmul.f32 0.0625, %v741_v25 }
  0xe1   : > { %v774_v32 = vadd.f32 %v2626_v49, %v759_v27 }
  0xe2   : > { %v773_v31 = vadd.f32 %v2626_v49, %v758_v28 }
  0xe3   : > { %v812_v35 = vrot.slane %v774_v32, 1 }
  0xe4   : > { %v809_v34 = vrot.slane %v773_v31, 2 }
  0xe6   : > { %v811_v37 = vsel %vm810_vm7, %v809_v34, %v808_v36 }
  0xe7   : > { %v814_v38 = vsel %vm813_vm8, %v812_v35, %v811_v37 }
  0xe8   : > { %2776 = vmatmul.mubr.msk.f32.vlgmr.msra.gmra.mrb[0].mxu0 %vm678_vm1, %v814_v38 }
  0xe9   : > { %2917 = vmatpush3.bf16.msra.mxu0 %v3307_v42 }
  0xea   : > { %2919 = vmatprep.subr.bf16.mxu0 %v3317_v46 }
  0xed   : > { %2921 = vmatpush3.bf16.msra.mxu0 %v3317_v46 }
  0xee   : > { %2922 = vmatprep.subr.bf16.mxu0 %v3078_v41 }
 0x184   : > { %v2788_v49 = vpop.f32.mrb[0].mxu1 }
 0x185   : > { %v3333_v50 = vadd.f32 %v2788_v49, %v3325_v47  ;;  %v1005_v51 = vpop.f32.mrb[1].mxu1 }
 0x186   : > { %v3336_v52 = vadd.f32 %v3330_v48, %v1005_v51 }
 0x187   : > { %v1104_v53 = vsel %vm1102_vm9, %v3333_v50, 0.0  ;;  %2253 = vrot.lane.b32.xlu0 %v3333_v50, %s3081_s16 }
 0x188   : > { %v1103_v54 = vsel %vm1102_vm9, %v3336_v52, 0.0  ;;  %2251 = vrot.lane.b32.xlu1 %v3336_v52, %s3081_s16  ;;  %v2791_v55 = vpop.f32.mrb[2].mxu1 }
 0x189   : > { %v1105_v56 = vadd.f32 %v1104_v53, %v1103_v54  ;;  %v3347_v57 = vadd.f32 %v2791_v55, %v3325_v47  ;;  %v1015_v58 = vpop.f32.mrb[3].mxu1 }
 0x18a   : > { %v3350_v59 = vadd.f32 %v3330_v48, %v1015_v58 }
 0x18b   : > { %v1106_v60 = vrot.slane %v1105_v56, 4  ;;  %v1113_v61 = vsel %vm1102_vm9, %v3347_v57, 0.0 }
 0x18c   : > { %v1112_v62 = vsel %vm1102_vm9, %v3350_v59, 0.0  ;;  %2257 = vrot.lane.b32.xlu1 %v3347_v57, %s3081_s16  ;;  %v2794_v63 = vpop.f32.mrb[4].mxu1  ;;  %2255 = vrot.lane.b32.xlu0 %v3350_v59, %s3081_s16 }
 0x18d   : > { %v1107_v0 = vadd.f32 %v1106_v60, %v1105_v56  ;;  %v1114_v1 = vadd.f32 %v1113_v61, %v1112_v62  ;;  %v3361_v2 = vadd.f32 %v2794_v63, %v3325_v47  ;;  %v1025_v3 = vpop.f32.mrb[5].mxu1 }
 0x18e   : > { %v3364_v4 = vadd.f32 %v3330_v48, %v1025_v3 }
 0x18f   : > { %v1108_v5 = vrot.slane %v1107_v0, 2  ;;  %v1115_v6 = vrot.slane %v1114_v1, 4  ;;  %v1122_v7 = vsel %vm1102_vm9, %v3361_v2, 0.0 }
 0x190   : > { %v1121_v8 = vsel %vm1102_vm9, %v3364_v4, 0.0  ;;  %2261 = vrot.lane.b32.xlu1 %v3361_v2, %s3081_s16  ;;  %v2797_v9 = vpop.f32.mrb[6].mxu1 }
 0x191   : > { %v1109_v10 = vadd.f32 %v1108_v5, %v1107_v0  ;;  %v1116_v11 = vadd.f32 %v1115_v6, %v1114_v1  ;;  %v1123_v12 = vadd.f32 %v1122_v7, %v1121_v8  ;;  %v3373_v13 = vadd.f32 %v2797_v9, %v3325_v47  ;;  %v1035_v14 = vpop.f32.mrb[7].mxu1 }
 0x192   : > { %v3376_v15 = vadd.f32 %v3330_v48, %v1035_v14 }
 0x193   : > { %v1110_v16 = vrot.slane %v1109_v10, 1  ;;  %v1117_v17 = vrot.slane %v1116_v11, 2  ;;  %v1124_v18 = vrot.slane %v1123_v12, 4  ;;  %v1131_v19 = vsel %vm1102_vm9, %v3373_v13, 0.0  ;;  %2265 = vrot.lane.b32.xlu0 %v3373_v13, %s3081_s16 }
 0x194   : > { %v1130_v20 = vsel %vm1102_vm9, %v3376_v15, 0.0  ;;  %2259 = vrot.lane.b32.xlu1 %v3364_v4, %s3081_s16  ;;  %v2800_v21 = vpop.f32.mrb[8].mxu1 }
 0x195   : > { %v1111_v22 = vadd.f32 %v1110_v16, %v1109_v10  ;;  %v1118_v23 = vadd.f32 %v1117_v17, %v1116_v11  ;;  %v1125_v24 = vadd.f32 %v1124_v18, %v1123_v12  ;;  %v1132_v25 = vadd.f32 %v1131_v19, %v1130_v20  ;;  %v1045_v26 = vpop.f32.mrb[9].mxu1 }
 0x196   : > { %v3387_v27 = vadd.f32 %v2800_v21, %v3325_v47  ;;  %v3390_v28 = vadd.f32 %v3330_v48, %v1045_v26 }
 0x197   : > { %v1119_v29 = vrot.slane %v1118_v23, 1  ;;  %v1126_v30 = vrot.slane %v1125_v24, 2  ;;  %v1133_v31 = vrot.slane %v1132_v25, 4  ;;  %v1175_v32 = vmul.f32 0.0625, %v1111_v22 }
 0x198   : > { %v1140_v33 = vsel %vm1102_vm9, %v3387_v27, 0.0  ;;  %v1139_v34 = vsel %vm1102_vm9, %v3390_v28, 0.0  ;;  %2263 = vrot.lane.b32.xlu1 %v3376_v15, %s3081_s16  ;;  %v2803_v35 = vpop.f32.mrb[10].mxu1  ;;  %2269 = vrot.lane.b32.xlu0 %v3387_v27, %s3081_s16 }
 0x199   : > { %v1120_v36 = vadd.f32 %v1119_v29, %v1118_v23  ;;  %v1127_v37 = vadd.f32 %v1126_v30, %v1125_v24  ;;  %v1134_v38 = vadd.f32 %v1133_v31, %v1132_v25  ;;  %v1055_v39 = vpop.f32.mrb[11].mxu1  ;;  %v1141_v43 = vadd.f32 %v1140_v33, %v1139_v34 }
 0x19a   : > { %v3406_v44 = vadd.f32 %v2803_v35, %v3325_v47  ;;  %v3409_v49 = vadd.f32 %v3330_v48, %v1055_v39  ;;  %v1190_v55 = vadd.f32 %v3403_v40, %v1175_v32 }
 0x19b   : > { %v1176_v51 = vmul.f32 0.0625, %v1120_v36  ;;  %v1128_v53 = vrot.slane %v1127_v37, 1  ;;  %v1135_v54 = vrot.slane %v1134_v38, 2  ;;  %v1142_v56 = vrot.slane %v1141_v43, 4 }
 0x19c   : > { %v1149_v58 = vsel %vm1102_vm9, %v3406_v44, 0.0  ;;  %v1148_v60 = vsel %vm1102_vm9, %v3409_v49, 0.0  ;;  %2267 = vrot.lane.b32.xlu1 %v3390_v28, %s3081_s16  ;;  %2273 = vrot.lane.b32.xlu0 %v3406_v44, %s3081_s16 }
 0x19d   : > { %v1191_v61 = vadd.f32 %v3403_v40, %v1176_v51  ;;  %v1129_v62 = vadd.f32 %v1128_v53, %v1127_v37  ;;  %v1136_v63 = vadd.f32 %v1135_v54, %v1134_v38  ;;  %v1150_v0 = vadd.f32 %v1149_v58, %v1148_v60 }
 0x19e   : > { %v1143_v1 = vadd.f32 %v1142_v56, %v1141_v43 }
 0x19f   : > { %v1510_v3 = vrot.slane %v1191_v61, 7  ;;  %v1177_v5 = vmul.f32 0.0625, %v1129_v62  ;;  %v1137_v6 = vrot.slane %v1136_v63, 1  ;;  %v1151_v7 = vrot.slane %v1150_v0, 4 }
 0x1a0   : > { %v1144_v8 = vrot.slane %v1143_v1, 2  ;;  %2271 = vrot.lane.b32.xlu1 %v3409_v49, %s3081_s16 }
 0x1a1   : > { %v1192_v9 = vadd.f32 %v3403_v40, %v1177_v5  ;;  %v1138_v10 = vadd.f32 %v1137_v6, %v1136_v63  ;;  %v1152_v11 = vadd.f32 %v1151_v7, %v1150_v0  ;;  %v1511_v12 = vsel %vm795_vm2, %v1510_v3, %v1190_v55 }
 0x1a2   : > { %v1145_v14 = vadd.f32 %v1144_v8, %v1143_v1  ;;  %v3082_v7 = vmov 1966171168  }
 0x1a3   : > { %v1512_v16 = vrot.slane %v1192_v9, 6  ;;  %v1178_v17 = vmul.f32 0.0625, %v1138_v10  ;;  %v1153_v18 = vrot.slane %v1152_v11, 2  ;;  %v1206_v8 = vunpack.c.l.s4 %v3082_v7 }
 0x1a4   : > { %v1146_v19 = vrot.slane %v1145_v14, 1  ;;  %v2806_v20 = vpop.f32.mrb[12].mxu1  ;;  %v1208_v9 = vlaneseq }
 0x1a5   : > { %v1193_v21 = vadd.f32 %v3403_v40, %v1178_v17  ;;  %v1154_v22 = vadd.f32 %v1153_v18, %v1152_v11  ;;  %v3427_v23 = vadd.f32 %v2806_v20, %v3325_v47  ;;  %v1065_v24 = vpop.f32.mrb[13].mxu1  ;;  %v1513_v25 = vsel %vm798_vm3, %v1512_v16, %v1511_v12  ;;  %v2627_v20 = vld [vmem:[%s3810_s5] ss:$0 sm:$0xff] }
 0x1a6   : > { %v1147_v26 = vadd.f32 %v1146_v19, %v1145_v14  ;;  %v3431_v29 = vadd.f32 %v3330_v48, %v1065_v24  ;;  %v1207_v16 = vunpack.c.0.s8 %v1206_v8  ;;  %v1209_v17 = vshrl.u32 %v1208_v9, 7 }
 0x1a7   : > { %v1514_v30 = vrot.slane %v1193_v21, 5  ;;  %v1155_v31 = vrot.slane %v1154_v22, 1  ;;  %v1158_v32 = vsel %vm1102_vm9, %v3427_v23, 0.0  ;;  %2277 = vrot.lane.b32.xlu0 %v3427_v23, %s3081_s16 }
 0x1a8   : > { %v1179_v33 = vmul.f32 0.0625, %v1147_v26  ;;  %v1157_v34 = vsel %vm1102_vm9, %v3431_v29, 0.0  ;;  %2275 = vrot.lane.b32.xlu1 %v3431_v29, %s3081_s16  ;;  %v2809_v35 = vpop.f32.mrb[14].mxu1  ;;  %v1210_v24 = vsub.s32 %v1207_v16, %v1209_v17 }
 0x1a9   : > { %v1156_v36 = vadd.f32 %v1155_v31, %v1154_v22  ;;  %v1159_v37 = vadd.f32 %v1158_v32, %v1157_v34  ;;  %v3442_v38 = vadd.f32 %v2809_v35, %v3325_v47  ;;  %v1075_v39 = vpop.f32.mrb[15].mxu1  ;;  %v1515_v43 = vsel %vm801_vm4, %v1514_v30, %v1513_v25 }
 0x1aa   : > { %v3446_v51 = vadd.f32 %v3330_v48, %v1075_v39  ;;  %v1194_v53 = vadd.f32 %v3403_v40, %v1179_v33 }
 0x1ab   : > { %v1180_v54 = vmul.f32 0.0625, %v1156_v36  ;;  %v1160_v55 = vrot.slane %v1159_v37, 4  ;;  %v1167_v56 = vsel %vm1102_vm9, %v3442_v38, 0.0  ;;  %2281 = vrot.lane.b32.xlu0 %v3442_v38, %s3081_s16 }
 0x1ac   : > { %v1166_v47 = vsel %vm1102_vm9, %v3446_v51, 0.0  ;;  %2279 = vrot.lane.b32.xlu1 %v3446_v51, %s3081_s16  ;;  %v1516_v58 = vrot.slane %v1194_v53, 4 }
 0x1ad   : > { %v1161_v60 = vadd.f32 %v1160_v55, %v1159_v37  ;;  %v1168_v48 = vadd.f32 %v1167_v56, %v1166_v47  ;;  %v1195_v61 = vadd.f32 %v3403_v40, %v1180_v54  ;;  %v3466_v37 = vsub.s32 0, %v1209_v17 }
 0x1ae   : > { %v1517_v62 = vsel %vm804_vm5, %v1516_v58, %v1515_v43 }
 0x1af   : > { %v1162_v63 = vrot.slane %v1161_v60, 2  ;;  %v1169_v0 = vrot.slane %v1168_v48, 4  ;;  %v1518_v1 = vrot.slane %v1195_v61, 3 }
 0x1b1   : > { %v1163_v3 = vadd.f32 %v1162_v63, %v1161_v60  ;;  %v1170_v5 = vadd.f32 %v1169_v0, %v1168_v48  ;;  %v1519_v6 = vsel %vm807_vm6, %v1518_v1, %v1517_v62 }
 0x1b3   : > { %v1164_v10 = vrot.slane %v1163_v3, 1  ;;  %v1171_v11 = vrot.slane %v1170_v5, 2 }
 0x1b5   : > { %v1172_v12 = vadd.f32 %v1171_v11, %v1170_v5  ;;  %v1165_v14 = vadd.f32 %v1164_v10, %v1163_v3 }
 0x1b7   : > { %v1173_v18 = vrot.slane %v1172_v12, 1  ;;  %v1181_v19 = vmul.f32 0.0625, %v1165_v14 }
 0x1b9   : > { %v1174_v21 = vadd.f32 %v1173_v18, %v1172_v12  ;;  %v1196_v22 = vadd.f32 %v3403_v40, %v1181_v19 }
 0x1bb   : > { %v883_v25 = vpop.f32.mrb[0].mxu0  ;;  %v1182_v26 = vmul.f32 0.0625, %v1174_v21  ;;  %v1520_v30 = vrot.slane %v1196_v22, 2 }
 0x1bc   : > { %v884_v31 = vadd.f32 %v2627_v20, %v883_v25  ;;  %v2777_v32 = vpop.f32.mrb[1].mxu0 }
 0x1bd   : > { %v1197_v33 = vadd.f32 %v3403_v40, %v1182_v26  ;;  %v1521_v34 = vsel %vm810_vm7, %v1520_v30, %v1519_v6 }
 0x1be   : > { %v1204_v35 = vcombine.high %v884_v31, %v884_v31  ;;  %v1211_v36 = vrot.slane %v884_v31, %v1210_v24 }
 0x1bf   : > { %v1522_v39 = vrot.slane %v1197_v33, 1 }
 0x1c0   : > { %v1218_v43 = vrot.slane %v1204_v35, %v1210_v24  ;;  %v1219_v53 = vcombine.high %v1211_v36, %v1211_v36  ;;  %v1227_v54 = vrot.slane %v1211_v36, %v1210_v24 }
 0x1c1   : > { %v1523_v55 = vsel %vm813_vm8, %v1522_v39, %v1521_v34 }
 0x1c2   : > { %v1220_v56 = vcombine.high %v1218_v43, %v1218_v43  ;;  %v1234_v47 = vrot.slane %v1218_v43, %v1210_v24  ;;  %v1241_v58 = vrot.slane %v1219_v53, %v1210_v24  ;;  %v1249_v60 = vcombine.high %v1227_v54, %v1227_v54  ;;  %2387 = vrot.lane.b32.xlu1 %v1523_v55, %s3081_s16  ;;  %s382_s16 = scalar_lea.vmem [#allocation2], %s2622_s30  ;;  %s3018_s30 = sshll.u32 %s3083_s21, 4  ;;  %s3019_s30 = int_to_ptr.vmem [resolvable:$false] %s3018_s30 }
 0x1c3   : > { %v1256_v40 = vrot.slane %v1227_v54, %v3466_v37  ;;  %v1525_v48 = vmul.f32 %v1523_v55, %v884_v31  ;;  %s2559_s22 = sshll.u32 %s382_s16, 4  ;;  %s3020_s0 = scalar_lea.vmem %s3019_s30, 256  ;;  %s3764_s22 = int_to_ptr.vmem [resolvable:$true] %s2559_s22 }
 0x1c4   : > { %v1248_v61 = vrot.slane %v1220_v56, %v1210_v24  ;;  %v1250_v62 = vcombine.high %v1234_v47, %v1234_v47  ;;  %v1251_v63 = vcombine.high %v1241_v58, %v1241_v58  ;;  %v1260_v0 = vrot.slane %v1241_v58, %v3466_v37  ;;  %s3014_s13 = scalar_lea.vmem %s3764_s22, 128  ;;  %p3021_p0 = scmp.lt.s32.totalorder %s3764_s22, %s3019_s30 }
 0x1c5   : > { %v1294_v1 = vmul.f32 %v1256_v40, %v3333_v50  ;;  %v1293_v3 = vmul.f32 %v1256_v40, %v3336_v52  ;;  %v1264_v5 = vrot.slane %v1249_v60, %v3466_v37  ;;  %v1272_v6 = vrot.slane %v1234_v47, %v3466_v37  ;;  %p3015_p11 = scmp.ne.s32.totalorder %s3764_s22, %s3014_s13  ;;  %p3022_p1 = scmp.lt.s32.totalorder %s3020_s0, %s3014_s13 }
 0x1c6   : > { %v1295_v7 = vmul.f32 %v1260_v0, %v3350_v59  ;;  %v1296_v8 = vmul.f32 %v1260_v0, %v3347_v57  ;;  %v1268_v9 = vrot.slane %v1251_v63, %v3466_v37  ;;  %v1276_v10 = vrot.slane %v1248_v61, %v3466_v37 }
 0x1c7   : > { %2818 = vmatprep.mubr.msk.f32.mxu0 %vm678_vm1, %v1293_v3  ;;  %v1297_v11 = vmul.f32 %v1264_v5, %v3364_v4  ;;  %v1298_v50 = vmul.f32 %v1264_v5, %v3361_v2  ;;  %v1301_v52 = vmul.f32 %v1272_v6, %v3390_v28  ;;  %v1302_v12 = vmul.f32 %v1272_v6, %v3387_v27  ;;  %p3016_p12 = pnand %p3015_p11, %p3182_p5  ;;  %p3023_p2 = por %p3022_p1, %p3021_p0 }
 0x1c8   : > { %2819 = vmatmul.mubr.msk.f32.vlgmr.msra.gmra.mrb[2].mxu0 %vm678_vm1, %v1294_v1  ;;  %v1299_v59 = vmul.f32 %v1268_v9, %v3376_v15  ;;  %v1300_v57 = vmul.f32 %v1268_v9, %v3373_v13  ;;  %v1303_v14 = vmul.f32 %v1276_v10, %v3409_v49  ;;  %v1304_v16 = vmul.f32 %v1276_v10, %v3406_v44 }
 0x1c9   : > { %2924 = vmatpush3.bf16.msra.mxu0 %v3307_v42  ;;  %2821 = vmatprep.mubr.msk.f32.mxu0 %vm678_vm1, %v1295_v7  ;;  %v1280_v2 = vrot.slane %v1250_v62, %v3466_v37  ;;  %v1252_v4 = vcombine.high %v1248_v61, %v1248_v61  ;;  %p3017_p13 = pneg %p3016_p12 }
 0x1ca   : > { %2925 = vmatprep.subr.bf16.mxu0 %v3078_v41 }
 0x1cb   : > { %v1305_v27 = vmul.f32 %v1280_v2, %v3431_v29  ;;  %v1306_v28 = vmul.f32 %v1280_v2, %v3427_v23  ;;  %v1284_v15 = vrot.slane %v1252_v4, %v3466_v37  ;;  %p3024_p3 = pnand %p3023_p2, %p3017_p13 }
 0x1cc   : > { %2822 = vmatmul.mubr.msk.f32.gmra.mrb[4].mxu0 %vm678_vm1, %v1296_v8 }
 0x1cd   : > { %2824 = vmatprep.mubr.msk.f32.mxu0 %vm678_vm1, %v1297_v11  ;;  %2927 = vmatpush3.bf16.msra.mxu0 %v3317_v46  ;;  %v1307_v42 = vmul.f32 %v1284_v15, %v3446_v51  ;;  %v1308_v13 = vmul.f32 %v1284_v15, %v3442_v38  ;;  %v3522_v46 = vld [vmem:[%s3815_s10] sm:$0xf] }
 0x1ce   : > { %2879 = vmatprep.subr.mxu0 %v3080_v45  ;;  %2853 = vmatprep.subr.msk.mxu1 %vm1940_vm10, %v3522_v46 }
 0x1cf   : > { %2854 = vmatpush3.msk.msra.mxu1 %vm1940_vm10, %v3522_v46 }
 0x1d0   : > { %2825 = vmatmul.mubr.msk.f32.gmra.mrb[6].mxu0 %vm678_vm1, %v1298_v50 }
 0x1d1   : > { %2827 = vmatprep.mubr.msk.f32.mxu0 %vm678_vm1, %v1299_v59 }
 0x1d4   : > { %2828 = vmatmul.mubr.msk.f32.gmra.mrb[8].mxu0 %vm678_vm1, %v1300_v57 }
 0x1d5   : > { %2830 = vmatprep.mubr.msk.f32.mxu0 %vm678_vm1, %v1301_v52 }
 0x1d8   : > { %2831 = vmatmul.mubr.msk.f32.gmra.mrb[10].mxu0 %vm678_vm1, %v1302_v12 }
 0x1d9   : > { %2833 = vmatprep.mubr.msk.f32.mxu0 %vm678_vm1, %v1303_v14 }
 0x1dc   : > { %2834 = vmatmul.mubr.msk.f32.gmra.mrb[12].mxu0 %vm678_vm1, %v1304_v16 }
 0x1dd   : > { %2836 = vmatprep.mubr.msk.f32.mxu0 %vm678_vm1, %v1305_v27 }
 0x1e0   : > { %2837 = vmatmul.mubr.msk.f32.gmra.mrb[14].mxu0 %vm678_vm1, %v1306_v28 }
 0x1e1   : > { %2839 = vmatprep.mubr.msk.f32.mxu0 %vm678_vm1, %v1307_v42 }
 0x1e4   : > { %2840 = vmatmul.mubr.msk.f32.gmra.mrb[16].mxu0 %vm678_vm1, %v1308_v13 }
 0x1e5   : > { %2850 = vmatprep.mubr.msk.f32.mxu0 %vm3079_vm0, %v3080_v45 }
 0x1e8   : > { %2851 = vmatmul.mubr.msk.f32.vlgmr.msra.gmra.mrb[18].mxu0 %vm678_vm1, %v1525_v48 }
 0x1e9   : > { %2881 = vmatprep.mubr.msk.f32.mxu0 %vm3079_vm0, %v3080_v45  ;;  %2880 = vmatpush3.msk.msra.mxu0 %vm1940_vm10, %v3522_v46 }
 0x1ea   : > { %2884 = vmatprep.subr.mxu0 %v3080_v45 }
 0x29b   : > { %v3531_v44 = vpop.f32.mrb[2].mxu0 }
 0x29c   : > { %v1601_v49 = vsel %vm1599_vm11, %v3531_v44, -inf  ;;  %v3535_v23 = vpop.f32.mrb[3].mxu0 }
 0x29d   : > { %v1600_v29 = vsel %vm1599_vm11, %v3535_v23, -inf }
 0x29e   : > { %v1602_v38 = vmax.f32 %v1600_v29, %v1601_v49 }
 0x29f   : > { %v3539_v51 = vpop.f32.mrb[4].mxu0 }
 0x2a0   : > { %v1610_v17 = vsel %vm1599_vm11, %v3539_v51, -inf  ;;  %v3543_v18 = vpop.f32.mrb[5].mxu0  ;;  %v1603_v26 = vrot.slane %v1602_v38, 4 }
 0x2a1   : > { %v1609_v19 = vsel %vm1599_vm11, %v3543_v18, -inf }
 0x2a2   : > { %v1611_v20 = vmax.f32 %v1609_v19, %v1610_v17  ;;  %v1604_v39 = vmax.f32 %v1602_v38, %v1603_v26 }
 0x2a3   : > { %v3547_v21 = vpop.f32.mrb[6].mxu0 }
 0x2a4   : > { %v1619_v22 = vsel %vm1599_vm11, %v3547_v21, -inf  ;;  %v3551_v24 = vpop.f32.mrb[7].mxu0  ;;  %v1612_v31 = vrot.slane %v1611_v20, 4  ;;  %v1605_v40 = vrot.slane %v1604_v39, 2 }
 0x2a5   : > { %v1618_v25 = vsel %vm1599_vm11, %v3551_v24, -inf }
 0x2a6   : > { %v1620_v30 = vmax.f32 %v1618_v25, %v1619_v22  ;;  %v1613_v53 = vmax.f32 %v1611_v20, %v1612_v31  ;;  %v1606_v8 = vmax.f32 %v1604_v39, %v1605_v40 }
 0x2a7   : > { %v3555_v32 = vpop.f32.mrb[8].mxu0 }
 0x2a8   : > { %v1621_v33 = vrot.slane %v1620_v30, 4  ;;  %v1628_v34 = vsel %vm1599_vm11, %v3555_v32, -inf  ;;  %v3559_v35 = vpop.f32.mrb[9].mxu0  ;;  %v1614_v62 = vrot.slane %v1613_v53, 2  ;;  %v1607_v4 = vrot.slane %v1606_v8, 1 }
 0x2a9   : > { %v1627_v36 = vsel %vm1599_vm11, %v3559_v35, -inf }
 0x2aa   : > { %v1629_v43 = vmax.f32 %v1627_v36, %v1628_v34  ;;  %v1622_v54 = vmax.f32 %v1620_v30, %v1621_v33  ;;  %v1615_v11 = vmax.f32 %v1613_v53, %v1614_v62  ;;  %v1608_v26 = vmax.f32 %v1606_v8, %v1607_v4 }
 0x2ab   : > { %v3563_v55 = vpop.f32.mrb[10].mxu0 }
 0x2ac   : > { %v1630_v56 = vrot.slane %v1629_v43, 4  ;;  %v1637_v47 = vsel %vm1599_vm11, %v3563_v55, -inf  ;;  %v3567_v58 = vpop.f32.mrb[11].mxu0  ;;  %v1623_v63 = vrot.slane %v1622_v54, 2  ;;  %v1616_v42 = vrot.slane %v1615_v11, 1 }
 0x2ad   : > { %v1636_v60 = vsel %vm1599_vm11, %v3567_v58, -inf }
 0x2ae   : > { %v1631_v48 = vmax.f32 %v1629_v43, %v1630_v56  ;;  %v1638_v61 = vmax.f32 %v1636_v60, %v1637_v47  ;;  %v1624_v50 = vmax.f32 %v1622_v54, %v1623_v63  ;;  %v1617_v34 = vmax.f32 %v1615_v11, %v1616_v42 }
 0x2af   : > { %v3571_v0 = vpop.f32.mrb[12].mxu0 }
 0x2b0   : > { %v1632_v1 = vrot.slane %v1631_v48, 2  ;;  %v1639_v3 = vrot.slane %v1638_v61, 4  ;;  %v1646_v5 = vsel %vm1599_vm11, %v3571_v0, -inf  ;;  %v3575_v6 = vpop.f32.mrb[13].mxu0  ;;  %v1625_v13 = vrot.slane %v1624_v50, 1 }
 0x2b1   : > { %v1645_v7 = vsel %vm1599_vm11, %v3575_v6, -inf }
 0x2b2   : > { %v1640_v9 = vmax.f32 %v1638_v61, %v1639_v3  ;;  %v1647_v10 = vmax.f32 %v1645_v7, %v1646_v5  ;;  %v1633_v52 = vmax.f32 %v1631_v48, %v1632_v1  ;;  %v1626_v36 = vmax.f32 %v1624_v50, %v1625_v13 }
 0x2b3   : > { %v3579_v12 = vpop.f32.mrb[14].mxu0 }
 0x2b4   : > { %v1641_v59 = vrot.slane %v1640_v9, 2  ;;  %v1648_v57 = vrot.slane %v1647_v10, 4  ;;  %v1655_v14 = vsel %vm1599_vm11, %v3579_v12, -inf  ;;  %v3583_v16 = vpop.f32.mrb[15].mxu0  ;;  %v1634_v49 = vrot.slane %v1633_v52, 1 }
 0x2b5   : > { %v1654_v2 = vsel %vm1599_vm11, %v3583_v16, -inf }
 0x2b6   : > { %v1642_v27 = vmax.f32 %v1640_v9, %v1641_v59  ;;  %v1649_v28 = vmax.f32 %v1647_v10, %v1648_v57  ;;  %v1656_v15 = vmax.f32 %v1654_v2, %v1655_v14  ;;  %v1635_v39 = vmax.f32 %v1633_v52, %v1634_v49 }
 0x2b7   : > { %v3587_v29 = vpop.f32.mrb[16].mxu0 }
 0x2b8   : > { %v1643_v38 = vrot.slane %v1642_v27, 1  ;;  %v1650_v17 = vrot.slane %v1649_v28, 2  ;;  %v1657_v19 = vrot.slane %v1656_v15, 4  ;;  %v1664_v20 = vsel %vm1599_vm11, %v3587_v29, -inf  ;;  %v3591_v22 = vpop.f32.mrb[17].mxu0 }
 0x2b9   : > { %v1663_v25 = vsel %vm1599_vm11, %v3591_v22, -inf }
 0x2ba   : > { %v1651_v30 = vmax.f32 %v1649_v28, %v1650_v17  ;;  %v1658_v31 = vmax.f32 %v1656_v15, %v1657_v19  ;;  %v1665_v33 = vmax.f32 %v1663_v25, %v1664_v20  ;;  %v1644_v43 = vmax.f32 %v1642_v27, %v1643_v38 }
 0x2bb   : > { %v3595_v53 = vpop.f32.mrb[18].mxu0 }
 0x2bc   : > { %v1652_v54 = vrot.slane %v1651_v30, 1  ;;  %v1659_v56 = vrot.slane %v1658_v31, 2  ;;  %v1666_v47 = vrot.slane %v1665_v33, 4  ;;  %v1673_v60 = vrot.slane %v3595_v53, 1  ;;  %v2852_v40 = vpop.f32.mrb[19].mxu0 }
 0x2bd   : > { %v1674_v48 = vrot.slane %v3595_v53, 2  ;;  %v1675_v61 = vrot.slane %v3595_v53, 3  ;;  %v1676_v62 = vrot.slane %v3595_v53, 4  ;;  %v1677_v63 = vrot.slane %v3595_v53, 5 }
 0x2be   : > { %v1653_v1 = vmax.f32 %v1651_v30, %v1652_v54  ;;  %v1660_v3 = vmax.f32 %v1658_v31, %v1659_v56  ;;  %v1667_v5 = vmax.f32 %v1665_v33, %v1666_v47  ;;  %v1678_v7 = vrot.slane %v3595_v53, 6 }
 0x2bf   : > { %v1679_v8 = vrot.slane %v3595_v53, 7  ;;  %v1688_v9 = vmax.f32 %v1608_v26, %v3595_v53  ;;  %v1689_v10 = vmax.f32 %v1617_v34, %v1673_v60  ;;  %v3605_v11 = vmax.f32 %v1626_v36, %v1674_v48 }
 0x2c0   : > { %v1661_v50 = vrot.slane %v1660_v3, 1  ;;  %v1668_v52 = vrot.slane %v1667_v5, 2  ;;  %v3607_v59 = vmax.f32 %v1635_v39, %v1675_v61  ;;  %v3609_v57 = vmax.f32 %v1644_v43, %v1676_v62 }
 0x2c1   : > { %v3611_v14 = vmax.f32 %v1653_v1, %v1677_v63  ;;  %v1699_v2 = vrot.slane %v1688_v9, %v3466_v37  ;;  %v1703_v4 = vrot.slane %v1689_v10, %v3466_v37  ;;  %v1707_v27 = vrot.slane %v3605_v11, %v3466_v37 }
 0x2c2   : > { %v1662_v28 = vmax.f32 %v1660_v3, %v1661_v50  ;;  %v1669_v15 = vmax.f32 %v1667_v5, %v1668_v52  ;;  %v1711_v42 = vrot.slane %v3607_v59, %v3466_v37  ;;  %v1715_v13 = vrot.slane %v3609_v57, %v3466_v37 }
 0x2c3   : > { %v1719_v49 = vrot.slane %v3611_v14, %v3466_v37  ;;  %v1728_v38 = vsub.f32 %v3535_v23, %v1699_v2  ;;  %v1729_v17 = vsub.f32 %v3531_v44, %v1699_v2  ;;  %v1730_v19 = vsub.f32 %v3543_v18, %v1703_v4 }
 0x2c4   : > { %v1670_v20 = vrot.slane %v1669_v15, 1  ;;  %v1694_v25 = vmax.f32 %v1662_v28, %v1678_v7  ;;  %v1731_v26 = vsub.f32 %v3539_v51, %v1703_v4  ;;  %v1732_v30 = vsub.f32 %v3551_v24, %v1707_v27 }
 0x2c5   : > { %v1733_v31 = vsub.f32 %v3547_v21, %v1707_v27  ;;  %v1734_v33 = vsub.f32 %v3559_v35, %v1711_v42  ;;  %v1735_v34 = vsub.f32 %v3555_v32, %v1711_v42  ;;  %v1736_v36 = vsub.f32 %v3567_v58, %v1715_v13 }
 0x2c6   : > { %v1671_v39 = vmax.f32 %v1669_v15, %v1670_v20  ;;  %v1723_v23 = vrot.slane %v1694_v25, %v3466_v37  ;;  %v1737_v44 = vsub.f32 %v3563_v55, %v1715_v13  ;;  %v1738_v18 = vsub.f32 %v3575_v6, %v1719_v49 }
 0x2c7   : > { %v1739_v43 = vsub.f32 %v3571_v0, %v1719_v49  ;;  %v1744_v51 = vmul.f32 1.442695, %v1728_v38  ;;  %v1746_v54 = vmul.f32 1.442695, %v1729_v17  ;;  %v1748_v24 = vmul.f32 1.442695, %v1730_v19 }
 0x2c8   : > { %v1695_v56 = vmax.f32 %v1671_v39, %v1679_v8  ;;  %v1740_v21 = vsub.f32 %v3583_v16, %v1723_v23  ;;  %v1741_v35 = vsub.f32 %v3579_v12, %v1723_v23  ;;  %v1750_v32 = vmul.f32 1.442695, %v1731_v26 }
 0x2c9   : > { %2978 = vpow2.f32 %v1744_v51  ;;  %v1752_v58 = vmul.f32 1.442695, %v1732_v30  ;;  %v1754_v60 = vmul.f32 1.442695, %v1733_v31  ;;  %v1756_v55 = vmul.f32 1.442695, %v1734_v33 }
 0x2ca   : > { %v1727_v47 = vrot.slane %v1695_v56, %v3466_v37  ;;  %2980 = vpow2.f32 %v1746_v54  ;;  %v1758_v40 = vmul.f32 1.442695, %v1735_v34  ;;  %v1760_v48 = vmul.f32 1.442695, %v1736_v36 }
 0x2cb   : > { %2982 = vpow2.f32 %v1748_v24  ;;  %v1784_v16 = vrot.slane %v1689_v10, 7  ;;  %v1786_v12 = vrot.slane %v3605_v11, 6  ;;  %v1762_v61 = vmul.f32 1.442695, %v1737_v44 }
 0x2cc   : > { %v1742_v6 = vsub.f32 %v3591_v22, %v1727_v47  ;;  %v1743_v0 = vsub.f32 %v3587_v29, %v1727_v47  ;;  %2984 = vpow2.f32 %v1750_v32  ;;  %v1764_v62 = vmul.f32 1.442695, %v1738_v18 }
 0x2cd   : > { %2986 = vpow2.f32 %v1752_v58  ;;  %v1766_v63 = vmul.f32 1.442695, %v1739_v43  ;;  %v1768_v37 = vmul.f32 1.442695, %v1740_v21  ;;  %v1785_v1 = vsel %vm795_vm2, %v1784_v16, %v1688_v9 }
 0x2ce   : > { %2988 = vpow2.f32 %v1754_v60  ;;  %v1788_v3 = vrot.slane %v3607_v59, 5  ;;  %v1787_v29 = vsel %vm798_vm3, %v1786_v12, %v1785_v1  ;;  %v1790_v22 = vrot.slane %v3609_v57, 4 }
 0x2cf   : > { %2990 = vpow2.f32 %v1756_v55  ;;  %v1794_v5 = vrot.slane %v1694_v25, 2  ;;  %v1792_v8 = vrot.slane %v3611_v14, 3  ;;  %v1796_v10 = vrot.slane %v1695_v56, 1 }
 0x2d0   : > { %2992 = vpow2.f32 %v1758_v40  ;;  %v1789_v7 = vsel %vm801_vm4, %v1788_v3, %v1787_v29  ;;  %v1770_v11 = vmul.f32 1.442695, %v1741_v35  ;;  %v1772_v9 = vmul.f32 1.442695, %v1742_v6 }
 0x2d1   : > { %2994 = vpow2.f32 %v1760_v48  ;;  %v1791_v50 = vsel %vm804_vm5, %v1790_v22, %v1789_v7  ;;  %v1774_v4 = vmul.f32 1.442695, %v1743_v0 }
 0x2d2   : > { %2996 = vpow2.f32 %v1762_v61  ;;  %v1793_v59 = vsel %vm807_vm6, %v1792_v8, %v1791_v50 }
 0x2d3   : > { %v2979_v52 = vpop.eup %2978  ;;  %2998 = vpow2.f32 %v1764_v62  ;;  %v1795_v57 = vsel %vm810_vm7, %v1794_v5, %v1793_v59 }
 0x2d4   : > { %v2981_v2 = vpop.eup %2980  ;;  %3000 = vpow2.f32 %v1766_v63  ;;  %v1802_v27 = vsel %vm1599_vm11, %v2979_v52, 0.0  ;;  %2855 = vmatprep.mubr.msk.f32.mxu1 %vm1599_vm11, %v2979_v52  ;;  %v1797_v28 = vsel %vm813_vm8, %v1796_v10, %v1795_v57 }
 0x2d5   : > { %v2983_v14 = vpop.eup %2982  ;;  %3002 = vpow2.f32 %v1768_v37  ;;  %v1803_v15 = vsel %vm1599_vm11, %v2981_v2, 0.0  ;;  %2856 = vmatmul.mubr.msk.f32.vlgmr.msra.gmra.mrb[16].mxu1 %vm1599_vm11, %v2981_v2  ;;  %v1799_v13 = vsub.f32 %v3595_v53, %v1797_v28 }
 0x2d6   : > { %v2985_v42 = vpop.eup %2984  ;;  %3004 = vpow2.f32 %v1770_v11  ;;  %v1804_v49 = vadd.f32 %v1803_v15, %v1802_v27  ;;  %v1811_v38 = vsel %vm1599_vm11, %v2983_v14, 0.0  ;;  %2858 = vmatprep.mubr.msk.f32.mxu1 %vm1599_vm11, %v2983_v14 }
 0x2d7   : > { %v2987_v17 = vpop.eup %2986  ;;  %3006 = vpow2.f32 %v1772_v9  ;;  %v1812_v19 = vsel %vm1599_vm11, %v2985_v42, 0.0  ;;  %v1800_v25 = vmul.f32 1.442695, %v1799_v13 }
 0x2d8   : > { %v2989_v20 = vpop.eup %2988  ;;  %3008 = vpow2.f32 %v1774_v4  ;;  %v1805_v26 = vrot.slane %v1804_v49, 4  ;;  %v1813_v30 = vadd.f32 %v1812_v19, %v1811_v38  ;;  %v1820_v33 = vsel %vm1599_vm11, %v2987_v17, 0.0 }
 0x2d9   : > { %v2991_v31 = vpop.eup %2990  ;;  %v1821_v34 = vsel %vm1599_vm11, %v2989_v20, 0.0  ;;  %2859 = vmatmul.mubr.msk.f32.gmra.mrb[18].mxu1 %vm1599_vm11, %v2985_v42  ;;  %3010 = vpow2.f32 %v1800_v25 }
 0x2da   : > { %v2993_v53 = vpop.eup %2992  ;;  %v1806_v36 = vadd.f32 %v1805_v26, %v1804_v49  ;;  %v1814_v39 = vrot.slane %v1813_v30, 4  ;;  %v1822_v23 = vadd.f32 %v1821_v34, %v1820_v33  ;;  %2861 = vmatprep.mubr.msk.f32.mxu1 %vm1599_vm11, %v2987_v17  ;;  %v1829_v18 = vsel %vm1599_vm11, %v2991_v31, 0.0 }
 0x2db   : > { %v2995_v44 = vpop.eup %2994  ;;  %v1830_v43 = vsel %vm1599_vm11, %v2993_v53, 0.0 }
 0x2dc   : > { %v2997_v51 = vpop.eup %2996  ;;  %v1807_v54 = vrot.slane %v1806_v36, 2  ;;  %v1815_v24 = vadd.f32 %v1814_v39, %v1813_v30  ;;  %v1823_v56 = vrot.slane %v1822_v23, 4  ;;  %v1831_v21 = vadd.f32 %v1830_v43, %v1829_v18 }
 0x2dd   : > { %v2999_v35 = vpop.eup %2998  ;;  %v1838_v32 = vsel %vm1599_vm11, %v2995_v44, 0.0  ;;  %v1839_v58 = vsel %vm1599_vm11, %v2997_v51, 0.0  ;;  %2862 = vmatmul.mubr.msk.f32.gmra.mrb[20].mxu1 %vm1599_vm11, %v2989_v20 }
 0x2de   : > { %v3001_v47 = vpop.eup %3000  ;;  %v1808_v60 = vadd.f32 %v1807_v54, %v1806_v36  ;;  %v1816_v55 = vrot.slane %v1815_v24, 2  ;;  %v1824_v6 = vadd.f32 %v1823_v56, %v1822_v23  ;;  %v1832_v0 = vrot.slane %v1831_v21, 4  ;;  %2864 = vmatprep.mubr.msk.f32.mxu1 %vm1599_vm11, %v2991_v31 }
 0x2df   : > { %v3003_v40 = vpop.eup %3002  ;;  %v1840_v48 = vadd.f32 %v1839_v58, %v1838_v32  ;;  %v1847_v16 = vsel %vm1599_vm11, %v2999_v35, 0.0  ;;  %v1848_v12 = vsel %vm1599_vm11, %v3001_v47, 0.0 }
 0x2e0   : > { %v3005_v61 = vpop.eup %3004  ;;  %v1809_v62 = vrot.slane %v1808_v60, 1  ;;  %v1817_v63 = vadd.f32 %v1816_v55, %v1815_v24  ;;  %v1825_v37 = vrot.slane %v1824_v6, 2  ;;  %v1833_v1 = vadd.f32 %v1832_v0, %v1831_v21 }
 0x2e1   : > { %v3007_v3 = vpop.eup %3006  ;;  %v1841_v29 = vrot.slane %v1840_v48, 4  ;;  %v1849_v22 = vadd.f32 %v1848_v12, %v1847_v16  ;;  %v1856_v5 = vsel %vm1599_vm11, %v3003_v40, 0.0  ;;  %v1857_v7 = vsel %vm1599_vm11, %v3005_v61, 0.0  ;;  %2865 = vmatmul.mubr.msk.f32.gmra.mrb[22].mxu1 %vm1599_vm11, %v2993_v53  ;;  %v2441_v16 = vld [vmem:[%s3812_s7 + $0x10] sm:$0xff] }
 0x2e2   : > { %v3009_v8 = vpop.eup %3008  ;;  %v1810_v10 = vadd.f32 %v1809_v62, %v1808_v60  ;;  %v1818_v11 = vrot.slane %v1817_v63, 1  ;;  %v1826_v50 = vadd.f32 %v1825_v37, %v1824_v6  ;;  %v1834_v52 = vrot.slane %v1833_v1, 2  ;;  %2867 = vmatprep.mubr.msk.f32.mxu1 %vm1599_vm11, %v2995_v44 }
 0x2e3   : > { %v1842_v9 = vadd.f32 %v1841_v29, %v1840_v48  ;;  %v1850_v59 = vrot.slane %v1849_v22, 4  ;;  %v1858_v2 = vadd.f32 %v1857_v7, %v1856_v5  ;;  %v1865_v4 = vsel %vm1599_vm11, %v3007_v3, 0.0  ;;  %v3011_v57 = vpop.eup %3010  ;;  %v2440_v48 = vld [vmem:[%s3812_s7 + $0x8] sm:$0xff]  ;;  %v2254_v29 = vpop.permute.xlu0 %2253 }
 0x2e4   : > { %v1819_v27 = vadd.f32 %v1818_v11, %v1817_v63  ;;  %v1827_v14 = vrot.slane %v1826_v50, 1  ;;  %v1835_v28 = vadd.f32 %v1834_v52, %v1833_v1  ;;  %v1866_v15 = vsel %vm1599_vm11, %v3009_v8, 0.0  ;;  %2882 = vmatmul.mubr.msk.f32.vlgmr.msra.gmra.mrb[20].mxu0 %vm1599_vm11, %v3011_v57 }
 0x2e5   : > { %v1843_v42 = vrot.slane %v1842_v9, 2  ;;  %v1851_v13 = vadd.f32 %v1850_v59, %v1849_v22  ;;  %v1859_v49 = vrot.slane %v1858_v2, 4  ;;  %v1867_v38 = vadd.f32 %v1866_v15, %v1865_v4  ;;  %2868 = vmatmul.mubr.msk.f32.gmra.mrb[24].mxu1 %vm1599_vm11, %v2997_v51  ;;  %2885 = vmatpush3.msk.msra.mxu0 %vm1940_vm10, %v3522_v46 }
 0x2e6   : > { %v1828_v17 = vadd.f32 %v1827_v14, %v1826_v50  ;;  %v1836_v19 = vrot.slane %v1835_v28, 1  ;;  %v1882_v20 = vsel %vm795_vm2, %v1819_v27, %v1810_v10  ;;  %2870 = vmatprep.mubr.msk.f32.mxu1 %vm1599_vm11, %v2999_v35  ;;  %2886 = vmatprep.mubr.msk.f32.mxu0 %vm3079_vm0, %v3080_v45 }
 0x2e7   : > { %v1844_v25 = vadd.f32 %v1843_v42, %v1842_v9  ;;  %v1852_v26 = vrot.slane %v1851_v13, 2  ;;  %v1860_v30 = vadd.f32 %v1859_v49, %v1858_v2  ;;  %v1868_v31 = vrot.slane %v1867_v38, 4  ;;  %2928 = vmatprep.subr.bf16.mxu0 %v3078_v41  ;;  %v2256_v10 = vpop.permute.xlu0 %2255 }
 0x2e8   : > { %v1837_v33 = vadd.f32 %v1836_v19, %v1835_v28  ;;  %v1883_v34 = vsel %vm798_vm3, %v1828_v17, %v1882_v20 }
 0x2e9   : > { %v1845_v53 = vrot.slane %v1844_v25, 1  ;;  %v1853_v36 = vadd.f32 %v1852_v26, %v1851_v13  ;;  %v1861_v39 = vrot.slane %v1860_v30, 2  ;;  %v1869_v23 = vadd.f32 %v1868_v31, %v1867_v38  ;;  %2871 = vmatmul.mubr.msk.f32.gmra.mrb[26].mxu1 %vm1599_vm11, %v3001_v47 }
 0x2ea   : > { %v1884_v46 = vsel %vm801_vm4, %v1837_v33, %v1883_v34  ;;  %2873 = vmatprep.mubr.msk.f32.mxu1 %vm1599_vm11, %v3003_v40  ;;  %v2439_v40 = vld [vmem:[%s3812_s7] sm:$0xff] }
 0x2eb   : > { %v1846_v44 = vadd.f32 %v1845_v53, %v1844_v25  ;;  %v1854_v18 = vrot.slane %v1853_v36, 1  ;;  %v1862_v43 = vadd.f32 %v1861_v39, %v1860_v30  ;;  %v1870_v51 = vrot.slane %v1869_v23, 2 }
 0x2ec   : > { %v2929_v12 = vpack.c.bf16 %v2440_v48, %v2439_v40 }
 0x2ed   : > { %v1855_v54 = vadd.f32 %v1854_v18, %v1853_v36  ;;  %v1863_v24 = vrot.slane %v1862_v43, 1  ;;  %v1871_v56 = vadd.f32 %v1870_v51, %v1869_v23  ;;  %v1885_v21 = vsel %vm804_vm5, %v1846_v44, %v1884_v46  ;;  %2874 = vmatmul.mubr.msk.f32.gmra.mrb[28].mxu1 %vm1599_vm11, %v3005_v61  ;;  %v2442_v61 = vld [vmem:[%s3812_s7 + $0x18] sm:$0xff] }
 0x2ee   : > { %2876 = vmatprep.mubr.msk.f32.mxu1 %vm1599_vm11, %v3007_v3  ;;  %v2932_v62 = vpack.c.bf16 %v2442_v61, %v2441_v16 }
 0x2ef   : > { %v1864_v35 = vadd.f32 %v1863_v24, %v1862_v43  ;;  %v1872_v32 = vrot.slane %v1871_v56, 1  ;;  %v1886_v58 = vsel %vm807_vm6, %v1855_v54, %v1885_v21 }
 0x2f1   : > { %v1873_v47 = vadd.f32 %v1872_v32, %v1871_v56  ;;  %v1887_v60 = vsel %vm810_vm7, %v1864_v35, %v1886_v58  ;;  %2877 = vmatmul.mubr.msk.f32.gmra.mrb[30].mxu1 %vm1599_vm11, %v3009_v8 }
 0x2f3   : > { %v1888_v55 = vsel %vm813_vm8, %v1873_v47, %v1887_v60 }
 0x2f4   : > { %v1890_v6 = vadd.f32 %v3011_v57, %v1888_v55  ;;  %v2266_v57 = vpop.permute.xlu0 %2265 }
 0x2f6   : > { %3012 = vrcp.f32 %v1890_v6 }
 0x2f8   : > { %v2270_v31 = vpop.permute.xlu0 %2269 }
 0x2fc   : > { %v2274_v55 = vpop.permute.xlu0 %2273 }
 0x300   : > { %v3013_v0 = vpop.eup %3012 }
 0x301   : > { %2887 = vmatmul.mubr.msk.f32.vlgmr.msra.gmra.mrb[22].mxu0 %vm1599_vm11, %v3013_v0 }
 0x302   : > { %2897 = vmatprep.mubr.msk.f32.mxu0 %vm3079_vm0, %v3080_v45  ;;  %2930 = vmatpush3.bf16.msra.mxu0 %v2929_v12  ;;  %v2252_v45 = vpop.permute.xlu1 %2251 }
 0x303   : > { %2931 = vmatprep.subr.bf16.mxu0 %v3078_v41 }
 0x306   : > { %2933 = vmatpush3.bf16.msra.mxu0 %v2932_v62  ;;  %v2258_v63 = vpop.permute.xlu1 %2257 }
 0x30a   : > { %v2262_v37 = vpop.permute.xlu1 %2261 }
 0x30e   : > { %v2260_v1 = vpop.permute.xlu1 %2259 }
 0x312   : > { %v2264_v3 = vpop.permute.xlu1 %2263 }
 0x316   : > { %v2268_v22 = vpop.permute.xlu1 %2267 }
 0x31a   : > { %v2272_v52 = vpop.permute.xlu1 %2271 }
 0x31e   : > { %v3717_v15 = vpop.permute.xlu1 %2275 }
 0x322   : > { %v3722_v44 = vpop.permute.xlu1 %2279 }
 0x326   : > { %v2388_v6 = vpop.permute.xlu1 %2387 }
 0x3a8   : > { %v2857_v5 = vpop.f32.mrb[16].mxu1 }
 0x3a9   : > { %v2300_v7 = vmul.f32 %v2857_v5, %v2254_v29  ;;  %v2010_v8 = vpop.f32.mrb[17].mxu1 }
 0x3aa   : > { %v2299_v11 = vmul.f32 %v2252_v45, %v2010_v8  ;;  %v2278_v8 = vpop.permute.xlu0 %2277 }
 0x3ab   : > { %v2316_v50 = vsel %vm678_vm1, %v2300_v7, 0.0 }
 0x3ac   : > { %v2315_v9 = vsel %vm678_vm1, %v2299_v11, 0.0  ;;  %v2860_v59 = vpop.f32.mrb[18].mxu1 }
 0x3ad   : > { %v2317_v41 = vadd.f32 %v2316_v50, %v2315_v9  ;;  %v2302_v2 = vmul.f32 %v2860_v59, %v2258_v63  ;;  %v2020_v4 = vpop.f32.mrb[19].mxu1 }
 0x3ae   : > { %v2301_v27 = vmul.f32 %v2256_v10, %v2020_v4 }
 0x3af   : > { %v2318_v14 = vrot.slane %v2317_v41, 4  ;;  %v2325_v28 = vsel %vm678_vm1, %v2302_v2, 0.0 }
 0x3b0   : > { %v2324_v42 = vsel %vm678_vm1, %v2301_v27, 0.0  ;;  %v2863_v13 = vpop.f32.mrb[20].mxu1 }
 0x3b1   : > { %v2319_v49 = vadd.f32 %v2318_v14, %v2317_v41  ;;  %v2326_v38 = vadd.f32 %v2325_v28, %v2324_v42  ;;  %v2304_v17 = vmul.f32 %v2863_v13, %v2262_v37  ;;  %v2030_v19 = vpop.f32.mrb[21].mxu1 }
 0x3b2   : > { %v2303_v20 = vmul.f32 %v2260_v1, %v2030_v19 }
 0x3b3   : > { %v2320_v25 = vrot.slane %v2319_v49, 2  ;;  %v2327_v26 = vrot.slane %v2326_v38, 4  ;;  %v2334_v30 = vsel %vm678_vm1, %v2304_v17, 0.0 }
 0x3b4   : > { %v2333_v33 = vsel %vm678_vm1, %v2303_v20, 0.0  ;;  %v2866_v34 = vpop.f32.mrb[22].mxu1 }
 0x3b5   : > { %v2321_v53 = vadd.f32 %v2320_v25, %v2319_v49  ;;  %v2328_v36 = vadd.f32 %v2327_v26, %v2326_v38  ;;  %v2335_v39 = vadd.f32 %v2334_v30, %v2333_v33  ;;  %v2306_v23 = vmul.f32 %v2866_v34, %v2266_v57  ;;  %v2040_v46 = vpop.f32.mrb[23].mxu1 }
 0x3b6   : > { %v2305_v18 = vmul.f32 %v2264_v3, %v2040_v46 }
 0x3b7   : > { %v2329_v43 = vrot.slane %v2328_v36, 2  ;;  %v2336_v51 = vrot.slane %v2335_v39, 4  ;;  %v2343_v54 = vsel %vm678_vm1, %v2306_v23, 0.0  ;;  %v2322_v24 = vrot.slane %v2321_v53, 1  ;;  %v2158_v56 = vpop.f32.mrb[20].mxu0 }
 0x3b8   : > { %v2342_v21 = vsel %vm678_vm1, %v2305_v18, 0.0  ;;  %v2869_v35 = vpop.f32.mrb[24].mxu1  ;;  %v2883_v47 = vpop.f32.mrb[21].mxu0  ;;  %v3726_v61 = vmul.f32 %v2388_v6, %v2158_v56 }
 0x3b9   : > { %v2330_v32 = vadd.f32 %v2329_v43, %v2328_v36  ;;  %v2337_v58 = vadd.f32 %v2336_v51, %v2335_v39  ;;  %v2050_v60 = vpop.f32.mrb[25].mxu1  ;;  %v2344_v0 = vadd.f32 %v2343_v54, %v2342_v21  ;;  %v2308_v40 = vmul.f32 %v2869_v35, %v2270_v31  ;;  %v2282_v31 = vpop.permute.xlu0 %2281 }
 0x3ba   : > { %v2307_v48 = vmul.f32 %v2268_v22, %v2050_v60  ;;  %v2323_v62 = vadd.f32 %v2322_v24, %v2321_v53  ;;  %v2392_v41 = vrot.slane %v3726_v61, 1  ;;  %v2393_v27 = vrot.slane %v3726_v61, 2 }
 0x3bb   : > { %v2331_v16 = vrot.slane %v2330_v32, 1  ;;  %v2338_v12 = vrot.slane %v2337_v58, 2  ;;  %v2345_v45 = vrot.slane %v2344_v0, 4  ;;  %v2352_v63 = vsel %vm678_vm1, %v2308_v40, 0.0 }
 0x3bc   : > { %v2351_v37 = vsel %vm678_vm1, %v2307_v48, 0.0  ;;  %v2872_v1 = vpop.f32.mrb[26].mxu1  ;;  %v2407_v14 = vadd.f32 %v3726_v61, %v2323_v62  ;;  %v2394_v51 = vrot.slane %v3726_v61, 3 }
 0x3bd   : > { %v2339_v3 = vadd.f32 %v2338_v12, %v2337_v58  ;;  %v2353_v29 = vadd.f32 %v2352_v63, %v2351_v37  ;;  %v2310_v5 = vmul.f32 %v2872_v1, %v2274_v55  ;;  %v2060_v7 = vpop.f32.mrb[27].mxu1  ;;  %v2332_v10 = vadd.f32 %v2331_v16, %v2330_v32 }
 0x3be   : > { %v2346_v11 = vadd.f32 %v2345_v45, %v2344_v0  ;;  %v2309_v50 = vmul.f32 %v2272_v52, %v2060_v7  ;;  %v2395_v32 = vrot.slane %v3726_v61, 4 }
 0x3bf   : > { %v2340_v22 = vrot.slane %v2339_v3, 1  ;;  %v2354_v9 = vrot.slane %v2353_v29, 4  ;;  %v2361_v59 = vsel %vm678_vm1, %v2310_v5, 0.0  ;;  %v2408_v19 = vadd.f32 %v2392_v41, %v2332_v10 }
 0x3c0   : > { %v2347_v2 = vrot.slane %v2346_v11, 2  ;;  %v2360_v4 = vsel %vm678_vm1, %v2309_v50, 0.0  ;;  %v2875_v57 = vpop.f32.mrb[28].mxu1  ;;  %v2398_v10 = vrot.slane %v3726_v61, 7 }
 0x3c1   : > { %v2341_v28 = vadd.f32 %v2340_v22, %v2339_v3  ;;  %v2355_v42 = vadd.f32 %v2354_v9, %v2353_v29  ;;  %v2362_v13 = vadd.f32 %v2361_v59, %v2360_v4  ;;  %v2312_v49 = vmul.f32 %v2875_v57, %v2278_v8  ;;  %v2070_v38 = vpop.f32.mrb[29].mxu1 }
 0x3c2   : > { %v2348_v52 = vadd.f32 %v2347_v2, %v2346_v11  ;;  %v2311_v17 = vmul.f32 %v3717_v15, %v2070_v38  ;;  %v2397_v29 = vrot.slane %v3726_v61, 6 }
 0x3c3   : > { %v2356_v20 = vrot.slane %v2355_v42, 2  ;;  %v2363_v25 = vrot.slane %v2362_v13, 4  ;;  %v2370_v26 = vsel %vm678_vm1, %v2312_v49, 0.0  ;;  %v2409_v30 = vadd.f32 %v2393_v27, %v2341_v28 }
 0x3c4   : > { %v2349_v33 = vrot.slane %v2348_v52, 1  ;;  %v2369_v34 = vsel %vm678_vm1, %v2311_v17, 0.0  ;;  %v2878_v53 = vpop.f32.mrb[30].mxu1 }
 0x3c5   : > { %v2357_v36 = vadd.f32 %v2356_v20, %v2355_v42  ;;  %v2364_v39 = vadd.f32 %v2363_v25, %v2362_v13  ;;  %v2371_v23 = vadd.f32 %v2370_v26, %v2369_v34  ;;  %v2314_v46 = vmul.f32 %v2878_v53, %v2282_v31  ;;  %v2080_v18 = vpop.f32.mrb[31].mxu1 }
 0x3c6   : > { %v2350_v43 = vadd.f32 %v2349_v33, %v2348_v52  ;;  %v2313_v15 = vmul.f32 %v3722_v44, %v2080_v18  ;;  %v2396_v44 = vrot.slane %v3726_v61, 5 }
 0x3c7   : > { %v2358_v54 = vrot.slane %v2357_v36, 1  ;;  %v2365_v24 = vrot.slane %v2364_v39, 2  ;;  %v2372_v56 = vrot.slane %v2371_v23, 4  ;;  %v2379_v21 = vsel %vm678_vm1, %v2314_v46, 0.0 }
 0x3c8   : > { %v2410_v35 = vadd.f32 %v2394_v51, %v2350_v43  ;;  %v2378_v58 = vsel %vm678_vm1, %v2313_v15, 0.0  ;;  %v2684_v43 = vld [vmem:[%s3813_s8] ss:$0 sm:$0xff] }
 0x3c9   : > { %v2359_v47 = vadd.f32 %v2358_v54, %v2357_v36  ;;  %v2366_v60 = vadd.f32 %v2365_v24, %v2364_v39  ;;  %v2373_v55 = vadd.f32 %v2372_v56, %v2371_v23  ;;  %v2380_v6 = vadd.f32 %v2379_v21, %v2378_v58 }
 0x3cb   : > { %v2411_v0 = vadd.f32 %v2395_v32, %v2359_v47  ;;  %v2367_v40 = vrot.slane %v2366_v60, 1  ;;  %v2374_v48 = vrot.slane %v2373_v55, 2  ;;  %v2381_v16 = vrot.slane %v2380_v6, 4 }
 0x3cd   : > { %v2368_v12 = vadd.f32 %v2367_v40, %v2366_v60  ;;  %v2375_v62 = vadd.f32 %v2374_v48, %v2373_v55  ;;  %v2382_v45 = vadd.f32 %v2381_v16, %v2380_v6 }
 0x3cf   : > { %v2412_v63 = vadd.f32 %v2396_v44, %v2368_v12  ;;  %v2376_v37 = vrot.slane %v2375_v62, 1  ;;  %v2383_v1 = vrot.slane %v2382_v45, 2 }
 0x3d1   : > { %v2377_v3 = vadd.f32 %v2376_v37, %v2375_v62  ;;  %v2384_v5 = vadd.f32 %v2383_v1, %v2382_v45 }
 0x3d3   : > { %v2413_v7 = vadd.f32 %v2397_v29, %v2377_v3  ;;  %v2385_v8 = vrot.slane %v2384_v5, 1 }
 0x3d4   : > { %v2231_v11 = vpop.f32.mrb[22].mxu0 }
 0x3d5   : > { %v2386_v50 = vadd.f32 %v2385_v8, %v2384_v5  ;;  %v2416_v22 = vrot.slane %v2231_v11, 1  ;;  %v2417_v9 = vrot.slane %v2231_v11, 2  ;;  %v2418_v59 = vrot.slane %v2231_v11, 3  ;;  %v2888_v41 = vpop.f32.mrb[23].mxu0 }
 0x3d6   : > { %v2431_v2 = vmul.f32 %v2407_v14, %v2231_v11  ;;  %v2419_v4 = vrot.slane %v2231_v11, 4  ;;  %v2420_v57 = vrot.slane %v2231_v11, 5  ;;  %v2421_v27 = vrot.slane %v2231_v11, 6 }
 0x3d7   : > { %v2414_v28 = vadd.f32 %v2398_v10, %v2386_v50  ;;  %v2432_v42 = vmul.f32 %v2416_v22, %v2408_v19  ;;  %v2433_v13 = vmul.f32 %v2417_v9, %v2409_v30  ;;  %v2422_v49 = vrot.slane %v2231_v11, 7 }
 0x3d8   : > { %v2434_v38 = vmul.f32 %v2418_v59, %v2410_v35  ;;  %v2435_v52 = vmul.f32 %v2419_v4, %v2411_v0  ;;  %v2436_v17 = vmul.f32 %v2420_v57, %v2412_v63  ;;  %v2437_v20 = vmul.f32 %v2421_v27, %v2413_v7 }
 0x3d9   : > { %v2458_v25 = vrot.slane %v2432_v42, 7  ;;  %v2438_v61 = vmul.f32 %v2422_v49, %v2414_v28  ;;  %v2460_v26 = vrot.slane %v2433_v13, 6 }
 0x3da   : > { %v2462_v33 = vrot.slane %v2434_v38, 5  ;;  %v2464_v34 = vrot.slane %v2435_v52, 4  ;;  %v2466_v19 = vrot.slane %v2436_v17, 3  ;;  %v2468_v39 = vrot.slane %v2437_v20, 2 }
 0x3db   : > { %v2459_v31 = vsel %vm795_vm2, %v2458_v25, %v2431_v2  ;;  %v2470_v30 = vrot.slane %v2438_v61, 1 }
 0x3dc   : > { %v2461_v14 = vsel %vm798_vm3, %v2460_v26, %v2459_v31 }
 0x3dd   : > { %v2463_v53 = vsel %vm801_vm4, %v2462_v33, %v2461_v14 }
 0x3de   : > { %v2465_v36 = vsel %vm804_vm5, %v2464_v34, %v2463_v53 }
 0x3df   : > { %v2467_v23 = vsel %vm807_vm6, %v2466_v19, %v2465_v36 }
 0x3e0   : > { %v2469_v46 = vsel %vm810_vm7, %v2468_v39, %v2467_v23 }
 0x3e1   : > { %v2471_v18 = vsel %vm813_vm8, %v2470_v30, %v2469_v46 }
 0x3e2   : > { %2898 = vmatmul.mubr.msk.f32.vlgmr.msra.gmra.mrb[24].mxu0 %vm678_vm1, %v2471_v18 }
 0x4b5   : > { %v2540_v51 = vpop.f32.mrb[24].mxu0 }
 0x4b6   : > { %v2541_v15 = vadd.f32 %v2684_v43, %v2540_v51  ;;  %v2899_v54 = vpop.f32.mrb[25].mxu0 }
 0x4b8   : > { %2544 = vst.msk [vmem:[%s382_s16] sm:$0xff] %vm1102_vm9, %v2541_v15 }
 0x4b9   : > { %3027 = shalt.err (!%p3024_p3)
}
 0x4ba   : > { %s3028_s14 = scalar_lea.hbm %s3762_s29, 128  ;;  %s3032_s24 = scalar_lea.hbm %s3816_s11, 256 }
 0x4bb   : > { %p3029_p4 = scmp.ne.s32.totalorder %s3762_s29, %s3028_s14  ;;  %p3033_p9 = scmp.lt.u32.totalorder %s3762_s29, %s3816_s11 }
 0x4bc   : > { %p3034_p10 = scmp.lt.u32.totalorder %s3032_s24, %s3028_s14  ;;  %p3036_p12 = scmp.lt.u32.totalorder %s3028_s14, %s3762_s29 }
 0x4bd   : > { %p3030_p7 = pnand %p3029_p4, %p3182_p5 }
 0x4be   : > { %p3035_p11 = por %p3034_p10, %p3033_p9 }
 0x4bf   : > { %p3031_p8 = pneg %p3030_p7 }
 0x4c0   : > { %p3037_p13 = por %p3036_p12, %p3035_p11 }
 0x4c2   : > { %p3038_p0 = pnand %p3037_p13, %p3031_p8 }
 0x4c4   : > { %3041 = shalt.err (!%p3038_p0)
}
 0x4c5   : > { %2934 = dma.vmem_to_hbm [thread:$0]  (%p3182_p5), %s3764_s22, 128, %s3762_s29, %s2546_s12  }
 0x4c6 PF: > { %p2940_p1 = scmp.ge.s32.totalorder %s3076_s20, 2  ;;  %s2571_s0 = sand.u32 1, %s3064_s17  }
 0x4c7   : > { %s2572_s13 = scalar_lea.sflag [#allocation3], %s2571_s0 }
 0x4c8   : > { %p2937_p2 = pnand %p2940_p1, %p3186_p6 }
 0x4ca   : > { %3059 = dma.done.wait (!%p2937_p2), %s2572_s13, 128  }
 0x4cb   : > { %3061 = vsyncadd (!%p2937_p2), %s2572_s13, 4294967168  ;;  %p21_p3 = scmp.ge.s32.totalorder %s3169_s23, 4   ;;  %s3821_s17 = smov %s3068_s18 }
 0x4cc   : > { %s3822_s18 = smov %s3072_s19  ;;  %s3823_s19 = smov %s3180_s26 }
 0x4cd   : > { %s3824_s20 = smov %s3169_s23  ;;  %23 = sbr.rel (!%p21_p3) target bundleno = 5 (0x5), region = 99 }
 0x4d4   :  { %2577 = vsyncpa [#allocation3], 1 }
 0x4d5   :  { %2579 = vsyncpa [#allocation3 + $0x1], 1 }

// kernel: tpu_custom_call.1
= control target key start
LH: loop header
LB: loop body
LE: loop exit
PB: predicated region body
PF: predicated region fallthrough
CT: control target
= control target key end

     0   :  { %s3997_s0 = inlined_call_operand.hbm [shape: f32[16,16,32], index: 0, kind: input, shape index: {}]   ;;  %s3998_s1 = inlined_call_operand.vmem [shape: f32[1,32], index: 1, kind: input, shape index: {}]   ;;  %s3999_s2 = inlined_call_operand.vmem [shape: f32[16,64], index: 2, kind: input, shape index: {}]   ;;  %s4000_s3 = inlined_call_operand.vmem [shape: f32[1,64], index: 3, kind: input, shape index: {}]   ;;  %s4001_s4 = inlined_call_operand.vmem [shape: f32[32,32], index: 4, kind: input, shape index: {}]   ;;  %s4002_s5 = inlined_call_operand.hbm [shape: f32[1,32], index: 5, kind: input, shape index: {}]   ;;  %s4003_s6 = inlined_call_operand.hbm [shape: f32[32,64], index: 6, kind: input, shape index: {}]   ;;  %s4004_s7 = inlined_call_operand.hbm [shape: f32[32,64], index: 7, kind: input, shape index: {}]   ;;  %s4005_s8 = inlined_call_operand.vmem [shape: f32[1,64], index: 8, kind: input, shape index: {}]   ;;  %s4006_s9 = inlined_call_operand.vmem [shape: f32[32,4], index: 9, kind: input, shape index: {}]   ;;  %s4007_s10 = inlined_call_operand.vmem [shape: f32[4,32], index: 10, kind: input, shape index: {}]   ;;  %s4008_s11 = inlined_call_operand.hbm [shape: f32[16,64], index: 11, kind: output, shape index: {}]  }
   0x1   :  { %4016 = sst [smem:[#allocation17_spill]] %s4002_s5 }
   0x2   :  { %4017 = sst [smem:[#allocation18_spill]] %s4008_s11 }
   0x3   :  { %16 = vsyncpa [#allocation3], 0 }
   0x4   :  { %18 = vsyncpa [#allocation3 + $0x1], 0 }
   0x5   :  { %19 = vsyncpa [#allocation6], 0 }
   0x6   :  { %20 = vsyncpa [#allocation9], 0 }
   0x7   :  { %21 = vsyncpa [#allocation4], 0 }
   0x8   :  { %23 = vsyncpa [#allocation4 + $0x1], 0  ;;  %s3152_s17 = smov 0   ;;  %s3154_s18 = smov 0  }
   0x9   :  { %s3156_s19 = smov 0   ;;  %s3158_s20 = smov 0  }
   0xa LB: > { %4018 = sst [smem:[#allocation15_spill]] %s3066_s17  ;;  %s3173_s21 = sadd.s32 4294967295, %s3078_s20   ;;  %s3078_s20 = sphi %s3158_s20, %s4044_s20   ;;  %s3074_s19 = sphi %s3156_s19, %s4043_s19   ;;  %s3070_s18 = sphi %s3154_s18, %s4042_s18   ;;  %s3066_s17 = sphi %s3152_s17, %s4041_s17  }
   0xb   : > { %s2445_s22 = sadd.s32 4294967294, %s3078_s20   ;;  %p49_p0 = scmp.ne.s32.totalorder %s3070_s18, %s3066_s17 }
   0xc   : > { %p4010_p1 = scmp.eq.s32.totalorder %s3173_s21, 0  ;;  %p289_p3 = scmp.eq.s32.totalorder %s2445_s22, 1 }
   0xd   : > { %p2446_p5 = scmp.ge.s32.totalorder %s3078_s20, 1  ;;  %p296_p7 = scmp.lt.s32.totalorder %s3078_s20, 3 }
   0xe   : > { %p3182_p4 = por %p4010_p1, %p49_p0  ;;  %p3187_p6 = por %p289_p3, %p49_p0 }
   0xf   : > { %p3192_p8 = pnand %p2446_p5, %p296_p7  ;;  %s3080_s26 = smov [#allocation5]  }
  0x10   : > { %s4019_s23 = scalar_select %p3182_p4, 1, 0 }
  0x11   : > { %s4020_s24 = scalar_select %p3187_p6, 1, 0 }
  0x12   : > { %s4022_s25 = scalar_select %p3192_p8, 1, 0 }
  0x13   : > { %4021 = sst [smem:[#allocation16_spill]] %s4020_s24  ;;  %s321_s27 = sshll.u32 %s3080_s26, 4  ;;  %s322_s27 = int_to_ptr.vmem [resolvable:$true] %s321_s27 }
  0x14   : > { %p2786_p10 = pneg %p3192_p8  ;;  %s3081_s28 = smov [#allocation7]  }
  0x15   : > { %s331_s29 = sshll.u32 %s3081_s28, 4  ;;  %s3082_s12 = smov [#allocation8]   ;;  %s3205_s29 = int_to_ptr.vmem [resolvable:$true] %s331_s29 }
  0x16   : > { %p3201_p11 = pnand %p2786_p10, %p4010_p1  ;;  %s3207_s13 = sshll.u32 %s3082_s12, 4  ;;  %s345_s13 = int_to_ptr.vmem [resolvable:$true] %s3207_s13 }
  0x17   : > { %s4024_s5 = sld [smem:[#allocation17_spill]] }
  0x18   : > { %p3217_p13 = pneg %p3201_p11 }
  0x1d   : > { %s2890_s16 = scalar_lea.hbm %s4024_s5, 16 }
  0x1e   : > { %p2891_p12 = scmp.ne.s32.totalorder %s4024_s5, %s2890_s16  ;;  %p2897_p5 = scmp.lt.u32.totalorder %s2890_s16, %s4024_s5 }
  0x20   : > { %p2893_p0 = pnand %p3217_p13, %p2891_p12 }
  0x22   : > { %p2894_p3 = pneg %p2893_p0 }
  0x24   : > { %p2899_p7 = pnand %p2897_p5, %p2894_p3 }
  0x26   : > { %2902 = shalt.err (!%p2899_p7)
}
  0x27   : > { %s2903_s14 = scalar_lea.vmem %s322_s27, 16  ;;  %s2910_s15 = scalar_lea.vmem %s322_s27, 32 }
  0x28   : > { %p2904_p10 = scmp.ne.s32.totalorder %s322_s27, %s2903_s14  ;;  %p2911_p2 = scmp.lt.s32.totalorder %s322_s27, %s322_s27 }
  0x29   : > { %p2912_p6 = scmp.lt.s32.totalorder %s2910_s15, %s2903_s14 }
  0x2a   : > { %p2906_p9 = pnand %p2904_p10, %p3217_p13 }
  0x2b   : > { %p2913_p4 = por %p2912_p6, %p2911_p2 }
  0x2c   : > { %p2907_p1 = pneg %p2906_p9 }
  0x2e   : > { %p2914_p8 = pnand %p2913_p4, %p2907_p1 }
  0x30   : > { %2917 = shalt.err (!%p2914_p8)
}
  0x31   : > { %2789 = dma.hbm_to_vmem [thread:$0]  (!%p3201_p11), %s4024_s5, 16, %s322_s27, [#allocation6]  }
  0x32   : > { %s2918_s12 = scalar_lea.hbm %s4003_s6, 512 }
  0x33   : > { %p2919_p9 = scmp.ne.s32.totalorder %s4003_s6, %s2918_s12  ;;  %p2925_p1 = scmp.lt.u32.totalorder %s2918_s12, %s4003_s6 }
  0x35   : > { %p2921_p12 = pnand %p2919_p9, %p3217_p13 }
  0x37   : > { %p2922_p2 = pneg %p2921_p12 }
  0x39   : > { %p2927_p4 = pnand %p2925_p1, %p2922_p2 }
  0x3b   : > { %2930 = shalt.err (!%p2927_p4)
}
  0x3c   : > { %s2931_s27 = scalar_lea.vmem %s3205_s29, 512  ;;  %p2939_p3 = scmp.lt.s32.totalorder %s3205_s29, %s3205_s29 }
  0x3d   : > { %p2932_p6 = scmp.ne.s32.totalorder %s3205_s29, %s2931_s27  ;;  %p2940_p5 = scmp.lt.s32.totalorder %s2931_s27, %s2931_s27 }
  0x3f   : > { %p2934_p8 = pnand %p2932_p6, %p3217_p13  ;;  %p2941_p7 = por %p2940_p5, %p2939_p3 }
  0x41   : > { %p2935_p0 = pneg %p2934_p8 }
  0x43   : > { %p2942_p10 = pnand %p2941_p7, %p2935_p0 }
  0x45   : > { %2945 = shalt.err (!%p2942_p10)
}
  0x46   : > { %s4015_s11 = smov 128   ;;  %s3084_s17 = smov 8  }
  0x47   : > { %2792 = dma.hbm_to_vmem [thread:$0]  (!%p3201_p11), %s4003_s6, 512, %s3205_s29, [#allocation6], %s4015_s11, %s4015_s11, %s3084_s17  }
  0x48   : > { %s2946_s12 = scalar_lea.hbm %s4004_s7, 512 }
  0x49   : > { %p2947_p9 = scmp.ne.s32.totalorder %s4004_s7, %s2946_s12  ;;  %p2953_p1 = scmp.lt.u32.totalorder %s2946_s12, %s4004_s7 }
  0x4b   : > { %p2949_p12 = pnand %p2947_p9, %p3217_p13 }
  0x4d   : > { %p2950_p2 = pneg %p2949_p12 }
  0x4f   : > { %p2955_p4 = pnand %p2953_p1, %p2950_p2 }
  0x51   : > { %2958 = shalt.err (!%p2955_p4)
}
  0x52   : > { %s2959_s22 = scalar_lea.vmem %s345_s13, 512  ;;  %p2967_p3 = scmp.lt.s32.totalorder %s345_s13, %s345_s13 }
  0x53   : > { %p2960_p6 = scmp.ne.s32.totalorder %s345_s13, %s2959_s22  ;;  %p2968_p5 = scmp.lt.s32.totalorder %s2959_s22, %s2959_s22 }
  0x55   : > { %p2962_p8 = pnand %p2960_p6, %p3217_p13  ;;  %p2969_p7 = por %p2968_p5, %p2967_p3 }
  0x57   : > { %p2963_p0 = pneg %p2962_p8 }
  0x59   : > { %p2970_p10 = pnand %p2969_p7, %p2963_p0 }
  0x5b   : > { %2973 = shalt.err (!%p2970_p10)
}
  0x5c   : > { %2795 = dma.hbm_to_vmem [thread:$0]  (!%p3201_p11), %s4004_s7, 512, %s345_s13, [#allocation9], %s4015_s11, %s4015_s11, %s3084_s17  }
  0x5d   : > { %s3282_s28 = sadd.s32 1, %s3078_s20   ;;  %s36_s26 = sadd.s32 1, %s3074_s19 }
  0x5e   : > { %s33_s30 = ssub.s32 %s3078_s20, %s3282_s28  ;;  %p43_p9 = scmp.ne.s32.totalorder %s3074_s19, %s3070_s18 }
  0x5f   : > { %p34_p13 = scmp.eq.s32.totalorder %s33_s30, 0  ;;  %p44_p12 = scmp.eq.s32.totalorder %s3078_s20, 0 }
  0x60   : > { %p2807_p2 = scmp.lt.s32.totalorder %s3078_s20, 2  ;;  %p4026_p4 = scmp.eq.s32.totalorder %s3173_s21, 1 }
  0x61   : > { %s3292_s24 = scalar_select %p34_p13, %s3074_s19, %s36_s26  }
  0x62   : > { %p45_p1 = por %p44_p12, %p43_p9  ;;  %p3296_p6 = por %p4026_p4, %p43_p9 }
  0x63   : > { %s367_s12 = sand.u32 1, %s3074_s19   ;;  %s2526_s14 = sshll.u32 %s3078_s20, 11 }
  0x64   : > { %s2451_s13 = sshll.u32 %s367_s12, 7  ;;  %s3305_s22 = scalar_lea.hbm %s3997_s0, %s2526_s14 }
  0x65   : > { %s371_s5 = scalar_lea.vmem [#allocation2], %s2451_s13  ;;  %p3307_p11 = pnand %p2807_p2, %p45_p1 }
  0x66   : > { %s379_s29 = sshll.u32 %s371_s5, 4  ;;  %s3313_s26 = scalar_lea.sflag [#allocation3], %s367_s12  ;;  %s3311_s29 = int_to_ptr.vmem [resolvable:$true] %s379_s29 }
  0x67   : > { %s2974_s11 = scalar_lea.hbm %s3305_s22, 2048  ;;  %p2976_p0 = pneg %p3307_p11 }
  0x68   : > { %p2975_p8 = scmp.ne.s32.totalorder %s3305_s22, %s2974_s11  ;;  %s2979_s15 = scalar_lea.hbm %s3997_s0, 4096 }
  0x69   : > { %p2980_p7 = scmp.lt.u32.totalorder %s3305_s22, %s3997_s0  ;;  %p2981_p10 = scmp.lt.u32.totalorder %s2979_s15, %s2974_s11 }
  0x6a   : > { %p2977_p3 = pnand %p2976_p0, %p2975_p8  ;;  %p2983_p9 = scmp.lt.u32.totalorder %s2974_s11, %s3305_s22 }
  0x6b   : > { %p2982_p13 = por %p2981_p10, %p2980_p7 }
  0x6c   : > { %p2978_p5 = pneg %p2977_p3 }
  0x6d   : > { %p2984_p12 = por %p2983_p9, %p2982_p13 }
  0x6f   : > { %p2985_p2 = pnand %p2984_p12, %p2978_p5 }
  0x71   : > { %2988 = shalt.err (!%p2985_p2)
}
  0x72   : > { %s2989_s12 = scalar_lea.vmem %s3311_s29, 2048  ;;  %s3085_s14 = smov [#allocation2]  }
  0x73   : > { %p2990_p1 = scmp.ne.s32.totalorder %s3311_s29, %s2989_s12  ;;  %s2994_s13 = sshll.u32 %s3085_s14, 4  ;;  %s2995_s13 = int_to_ptr.vmem [resolvable:$false] %s2994_s13 }
  0x74   : > { %s2996_s27 = scalar_lea.vmem %s2995_s13, 4096  ;;  %p2997_p3 = scmp.lt.s32.totalorder %s3311_s29, %s2995_s13 }
  0x75   : > { %p2992_p4 = pnand %p2990_p1, %p2976_p0  ;;  %p2998_p7 = scmp.lt.s32.totalorder %s2996_s27, %s2989_s12 }
  0x77   : > { %p2993_p8 = pneg %p2992_p4  ;;  %p2999_p10 = por %p2998_p7, %p2997_p3 }
  0x79   : > { %p3000_p13 = pnand %p2999_p10, %p2993_p8 }
  0x7b   : > { %3003 = shalt.err (!%p3000_p13)
}
  0x7c   : > { %s4029_s11 = smov 128   ;;  %p4030_p0 = scmp.ne.s32.totalorder %s4022_s25, 0 }
  0x7d   : > { %2799 = dma.hbm_to_vmem [thread:$0]  (!%p3307_p11), %s3305_s22, 2048, %s3311_s29, %s3313_s26, %s4029_s11, %s4029_s11, %s3084_s17  }
  0x7e   : > { %391 = sbr.rel (%p4030_p0) target bundleno = 1171 (0x493), region = 64  ;;  %s3347_s15 = sand.u32 (!%p4030_p0), 1, %s3070_s18  }
  0x7f   : > { %s2456_s5 = sshll.u32 (!%p4030_p0), %s3347_s15, 7  ;;  %s394_s12 = scalar_lea.sflag (!%p4030_p0), [#allocation3], %s3347_s15 }
  0x80   : > { %s3351_s14 = scalar_lea.vmem (!%p4030_p0), [#allocation2], %s2456_s5  ;;  %p4031_p5 = scmp.ne.s32.totalorder (!%p4030_p0), %s4019_s23, 0 }
  0x85   : > { %3049 = dma.done.wait (%p4031_p5), %s394_s12, 2048  }
  0x86   : > { %3051 = vsyncadd (%p4031_p5), %s394_s12, 4294965248  ;;  %p4032_p11 = scmp.eq.s32.totalorder %s3173_s21, 0 }
  0x88   : > { %3053 = dma.done.wait (%p4032_p11), [#allocation6], 528   ;;  %p4033_p9 = pmov %p4032_p11 }
  0x8a   : > { %3055 = vsyncadd (%p4033_p9), [#allocation6], 4294966768  ;;  %p4034_p12 = pmov %p4033_p9 }
  0x8b   : > { %p4035_p2 = pmov %p4033_p9 }
  0x8c   : > { %3057 = dma.done.wait (%p4034_p12), [#allocation9], 512  }
  0x8d   : > { %3059 = vsyncadd (%p4035_p2), [#allocation9], 4294966784  ;;  %v3086_v0 = vmov 0.0|0.0   ;;  %vm3087_vm0 = vmmov 0   ;;  %v3088_v1 = vmov 0.0   ;;  %v674_v2 = vld [vmem:[#allocation7] sm:$0xff] }
  0x8e   : > { %2736 = vmatprep.subr.bf16.mxu0 %v3086_v0  ;;  %2611 = vmatprep.mubr.msk.f32.mxu0 %vm3087_vm0, %v3088_v1  ;;  %v675_v3 = vld [vmem:[#allocation7 + $0x8] sm:$0xff]  ;;  %v676_v4 = vld [vmem:[#allocation7 + $0x10] sm:$0xff]  ;;  %vm465_vm1 = vcmask 261120   ;;  %v677_v6 = vld [vmem:[#allocation7 + $0x18] sm:$0xff]  ;;  %vm582_vm2 = vcmask 1041409   ;;  %vm585_vm3 = vcmask 1042434  }
  0x8f   : > { %v2742_v5 = vpack.c.bf16 %v675_v3, %v674_v2  ;;  %v449_v7 = vld [vmem:[%s3351_s14] sm:$0xff]  ;;  %v450_v8 = vld [vmem:[%s3351_s14 + $0x8] sm:$0xff]  ;;  %v2746_v9 = vpack.c.bf16 %v677_v6, %v676_v4  ;;  %v451_v12 = vld [vmem:[%s3351_s14 + $0x10] sm:$0xff]  ;;  %vm588_vm4 = vcmask 1043459   ;;  %vm591_vm5 = vcmask 1044484   ;;  %s3089_s11 = smov 96  }
  0x90   : > { %v466_v10 = vsel %vm465_vm1, %v449_v7, 0.0  ;;  %v467_v11 = vsel %vm465_vm1, %v450_v8, 0.0  ;;  %2622 = vmatprep.mubr.msk.f32.mxu1 %vm465_vm1, %v449_v7  ;;  %v3375_v13 = vld [vmem:[%s3351_s14 + $0x18] sm:$0xff]  ;;  %v475_v15 = vsel %vm465_vm1, %v451_v12, 0.0  ;;  %v3381_v17 = vld [vmem:[%s3351_s14 + $0x20] sm:$0xff]  ;;  %v3384_v18 = vld [vmem:[%s3351_s14 + $0x28] sm:$0xff] }
  0x91   : > { %2743 = vmatprep.subr.bf16.mxu1 %v2742_v5  ;;  %v468_v14 = vadd.f32 %v467_v11, %v466_v10  ;;  %v476_v16 = vsel %vm465_vm1, %v3375_v13, 0.0  ;;  %v562_v19 = vld [vmem:[%s4001_s4] sm:$0xff]  ;;  %v484_v21 = vsel %vm465_vm1, %v3381_v17, 0.0  ;;  %v485_v22 = vsel %vm465_vm1, %v3384_v18, 0.0  ;;  %v563_v23 = vld [vmem:[%s4001_s4 + $0x8] sm:$0xff]  ;;  %v3397_v24 = vld [vmem:[%s3351_s14 + $0x30] sm:$0xff] }
  0x92   : > { %2745 = vmatpush3.bf16.msra.mxu1 %v2742_v5  ;;  %v477_v20 = vadd.f32 %v476_v16, %v475_v15  ;;  %v3400_v25 = vld [vmem:[%s3351_s14 + $0x38] sm:$0xff]  ;;  %v486_v27 = vadd.f32 %v485_v22, %v484_v21  ;;  %v2737_v28 = vpack.c.bf16 %v563_v23, %v562_v19  ;;  %v493_v29 = vsel %vm465_vm1, %v3397_v24, 0.0  ;;  %v564_v30 = vld [vmem:[%s4001_s4 + $0x10] sm:$0xff]  ;;  %v3411_v32 = vld [vmem:[%s3351_s14 + $0x40] sm:$0xff]  ;;  %s2460_s25 = sshll.u32 %s3347_s15, 3  ;;  %s2522_s29 = sshll.u32 %s3173_s21, 7 }
  0x93   : > { %2747 = vmatprep.subr.bf16.mxu1 %v2746_v9  ;;  %v469_v26 = vrot.slane %v468_v14, 4  ;;  %v565_v31 = vld [vmem:[%s4001_s4 + $0x18] sm:$0xff]  ;;  %v494_v34 = vsel %vm465_vm1, %v3400_v25, 0.0  ;;  %v502_v36 = vsel %vm465_vm1, %v3411_v32, 0.0  ;;  %v3418_v37 = vld [vmem:[%s3351_s14 + $0x48] sm:$0xff]  ;;  %v3421_v38 = vld [vmem:[%s3351_s14 + $0x50] sm:$0xff] }
  0x94   : > { %v478_v33 = vrot.slane %v477_v20, 4  ;;  %v2740_v35 = vpack.c.bf16 %v565_v31, %v564_v30  ;;  %v3424_v39 = vld [vmem:[%s3351_s14 + $0x58] sm:$0xff]  ;;  %v487_v41 = vrot.slane %v486_v27, 4  ;;  %2738 = vmatpush3.bf16.msra.mxu0 %v2737_v28  ;;  %v495_v42 = vadd.f32 %v494_v34, %v493_v29  ;;  %v3429_v44 = vld [vmem:[%s3351_s14 + $0x60] sm:$0xff]  ;;  %v3432_v45 = vld [vmem:[%s3351_s14 + $0x68] sm:$0xff]  ;;  %s447_s30 = scalar_lea.vmem [#allocation10], %s2460_s25 }
  0x95   : > { %v470_v40 = vadd.f32 %v469_v26, %v468_v14  ;;  %v503_v43 = vsel %vm465_vm1, %v3418_v37, 0.0  ;;  %2739 = vmatprep.subr.bf16.mxu0 %v3086_v0  ;;  %v511_v48 = vsel %vm465_vm1, %v3421_v38, 0.0  ;;  %v512_v49 = vsel %vm465_vm1, %v3424_v39, 0.0  ;;  %v3440_v53 = vld [vmem:[%s3351_s14 + $0x70] sm:$0xff]  ;;  %v3448_v62 = vld [vmem:[%s3351_s14 + $0x78] sm:$0xff]  ;;  %s2346_s26 = sshll.u32 %s447_s30, 4  ;;  %s3954_s26 = int_to_ptr.vmem [resolvable:$true] %s2346_s26 }
  0x96   : > { %2749 = vmatpush3.bf16.msra.mxu1 %v2746_v9  ;;  %v479_v46 = vadd.f32 %v478_v33, %v477_v20  ;;  %v504_v47 = vadd.f32 %v503_v43, %v502_v36  ;;  %v488_v51 = vadd.f32 %v487_v41, %v486_v27  ;;  %v496_v52 = vrot.slane %v495_v42, 4  ;;  %v2461_v28 = vld [vmem:[%s3998_s1] ss:$0 sm:$0xff]  ;;  %s2333_s12 = scalar_lea.sflag [#allocation4], %s3347_s15  ;;  %s3004_s14 = scalar_lea.vmem %s3954_s26, 128 }
  0x97   : > { %v471_v50 = vrot.slane %v470_v40, 2  ;;  %v513_v54 = vadd.f32 %v512_v49, %v511_v48  ;;  %v520_v57 = vsel %vm465_vm1, %v3429_v44, 0.0  ;;  %v521_v58 = vsel %vm465_vm1, %v3432_v45, 0.0  ;;  %p3005_p1 = scmp.ne.s32.totalorder %s3954_s26, %s3004_s14  ;;  %s3091_s21 = smov [#allocation10]  }
  0x98   : > { %v480_v55 = vrot.slane %v479_v46, 2  ;;  %v505_v56 = vrot.slane %v504_v47, 4  ;;  %v489_v60 = vrot.slane %v488_v51, 2  ;;  %v497_v61 = vadd.f32 %v496_v52, %v495_v42  ;;  %2741 = vmatpush3.bf16.msra.mxu0 %v2740_v35  ;;  %s3008_s23 = sshll.u32 %s3091_s21, 4  ;;  %s3009_s23 = int_to_ptr.vmem [resolvable:$false] %s3008_s23 }
  0x99   : > { %v472_v59 = vadd.f32 %v471_v50, %v470_v40  ;;  %2623 = vmatmul.mubr.msk.f32.vlgmr.msra.gmra.mrb[0].mxu1 %vm465_vm1, %v450_v8  ;;  %v514_v63 = vrot.slane %v513_v54, 4  ;;  %v522_v4 = vadd.f32 %v521_v58, %v520_v57  ;;  %v529_v5 = vsel %vm465_vm1, %v3440_v53, 0.0  ;;  %p3006_p4 = pnand %p3005_p1, %p3296_p6  ;;  %s3010_s25 = scalar_lea.vmem %s3009_s23, 256 }
  0x9a   : > { %2625 = vmatprep.mubr.msk.f32.mxu1 %vm465_vm1, %v451_v12  ;;  %v481_v2 = vadd.f32 %v480_v55, %v479_v46  ;;  %v506_v3 = vadd.f32 %v505_v56, %v504_v47  ;;  %v490_v7 = vadd.f32 %v489_v60, %v488_v51  ;;  %v498_v9 = vrot.slane %v497_v61, 2  ;;  %p3011_p3 = scmp.lt.s32.totalorder %s3954_s26, %s3009_s23  ;;  %p3012_p7 = scmp.lt.s32.totalorder %s3010_s25, %s3004_s14 }
  0x9b   : > { %v473_v6 = vrot.slane %v472_v59, 1  ;;  %v515_v10 = vadd.f32 %v514_v63, %v513_v54  ;;  %v523_v14 = vrot.slane %v522_v4, 4  ;;  %v530_v15 = vsel %vm465_vm1, %v3448_v62, 0.0  ;;  %p3007_p8 = pneg %p3006_p4 }
  0x9c   : > { %v482_v8 = vrot.slane %v481_v2, 1  ;;  %v507_v11 = vrot.slane %v506_v3, 2  ;;  %v491_v12 = vrot.slane %v490_v7, 1  ;;  %v499_v19 = vadd.f32 %v498_v9, %v497_v61  ;;  %p3013_p10 = por %p3012_p7, %p3011_p3 }
  0x9d   : > { %v474_v16 = vadd.f32 %v473_v6, %v472_v59  ;;  %2626 = vmatmul.mubr.msk.f32.gmra.mrb[2].mxu1 %vm465_vm1, %v3375_v13  ;;  %v516_v20 = vrot.slane %v515_v10, 2  ;;  %v524_v23 = vadd.f32 %v523_v14, %v522_v4  ;;  %v531_v26 = vadd.f32 %v530_v15, %v529_v5 }
  0x9e   : > { %v483_v21 = vadd.f32 %v482_v8, %v481_v2  ;;  %2628 = vmatprep.mubr.msk.f32.mxu1 %vm465_vm1, %v3381_v17  ;;  %v508_v22 = vadd.f32 %v507_v11, %v506_v3  ;;  %v492_v29 = vadd.f32 %v491_v12, %v490_v7  ;;  %v500_v30 = vrot.slane %v499_v19, 1  ;;  %v3516_v12 = vld [vmem:[%s3999_s2 + $0x8] sm:$0xff]  ;;  %p3014_p13 = pnand %p3013_p10, %p3007_p8 }
  0x9f   : > { %v539_v27 = vmul.f32 0.0625, %v474_v16  ;;  %v517_v31 = vadd.f32 %v516_v20, %v515_v10  ;;  %v525_v34 = vrot.slane %v524_v23, 2  ;;  %v532_v35 = vrot.slane %v531_v26, 4 }
  0xa0   : > { %v540_v33 = vmul.f32 0.0625, %v483_v21  ;;  %v509_v13 = vrot.slane %v508_v22, 1  ;;  %v541_v40 = vmul.f32 0.0625, %v492_v29  ;;  %v501_v17 = vadd.f32 %v500_v30, %v499_v19  ;;  %v3521_v19 = vld [vmem:[%s3999_s2] sm:$0xff] }
  0xa1   : > { %v554_v36 = vadd.f32 %v2461_v28, %v539_v27  ;;  %2629 = vmatmul.mubr.msk.f32.gmra.mrb[4].mxu1 %vm465_vm1, %v3384_v18  ;;  %v518_v41 = vrot.slane %v517_v31, 1  ;;  %v526_v46 = vadd.f32 %v525_v34, %v524_v23  ;;  %v533_v47 = vadd.f32 %v532_v35, %v531_v26 }
  0xa2   : > { %v555_v42 = vadd.f32 %v2461_v28, %v540_v33  ;;  %2631 = vmatprep.mubr.msk.f32.mxu1 %vm465_vm1, %v3397_v24  ;;  %v510_v43 = vadd.f32 %v509_v13, %v508_v22  ;;  %v556_v48 = vadd.f32 %v2461_v28, %v541_v40  ;;  %v542_v49 = vmul.f32 0.0625, %v501_v17 }
  0xa3   : > { %v519_v50 = vadd.f32 %v518_v41, %v517_v31  ;;  %v527_v54 = vrot.slane %v526_v46, 1  ;;  %v534_v55 = vrot.slane %v533_v47, 2  ;;  %vm594_vm6 = vcmask 1045509  }
  0xa4   : > { %v581_v51 = vrot.slane %v555_v42, 7  ;;  %v543_v52 = vmul.f32 0.0625, %v510_v43  ;;  %v584_v56 = vrot.slane %v556_v48, 6  ;;  %v557_v57 = vadd.f32 %v2461_v28, %v542_v49 }
  0xa5   : > { %2632 = vmatmul.mubr.msk.f32.gmra.mrb[6].mxu1 %vm465_vm1, %v3400_v25  ;;  %v544_v18 = vmul.f32 0.0625, %v519_v50  ;;  %v528_v58 = vadd.f32 %v527_v54, %v526_v46  ;;  %v535_v59 = vadd.f32 %v534_v55, %v533_v47  ;;  %vm597_vm7 = vcmask 1046534  }
  0xa6   : > { %2634 = vmatprep.mubr.msk.f32.mxu1 %vm465_vm1, %v3411_v32  ;;  %v558_v24 = vadd.f32 %v2461_v28, %v543_v52  ;;  %v583_v60 = vsel %vm582_vm2, %v581_v51, %v554_v36  ;;  %v587_v61 = vrot.slane %v557_v57, 5  ;;  %vm600_vm8 = vcmask 1047559  }
  0xa7   : > { %v559_v63 = vadd.f32 %v2461_v28, %v544_v18  ;;  %v586_v2 = vsel %vm585_vm3, %v584_v56, %v583_v60  ;;  %v536_v4 = vrot.slane %v535_v59, 1  ;;  %v545_v5 = vmul.f32 0.0625, %v528_v58 }
  0xa8   : > { %v590_v3 = vrot.slane %v558_v24, 4  ;;  %v589_v25 = vsel %vm588_vm4, %v587_v61, %v586_v2  ;;  %vm889_vm9 = vcmask 523264   ;;  %v3090_v18 = vmov 1966171168  }
  0xa9   : > { %2635 = vmatmul.mubr.msk.f32.gmra.mrb[8].mxu1 %vm465_vm1, %v3418_v37  ;;  %v593_v6 = vrot.slane %v559_v63, 3  ;;  %v537_v32 = vadd.f32 %v536_v4, %v535_v59  ;;  %v560_v7 = vadd.f32 %v2461_v28, %v545_v5  ;;  %v993_v24 = vunpack.c.l.s4 %v3090_v18 }
  0xaa   : > { %v592_v9 = vsel %vm591_vm5, %v590_v3, %v589_v25  ;;  %2637 = vmatprep.mubr.msk.f32.mxu1 %vm465_vm1, %v3421_v38  ;;  %v995_v58 = vlaneseq  ;;  %vm1727_vm10 = vcmask 1043456   ;;  %vm1386_vm11 = vcmask 31744  }
  0xab   : > { %v546_v10 = vmul.f32 0.0625, %v537_v32  ;;  %v595_v8 = vsel %vm594_vm6, %v593_v6, %v592_v9  ;;  %v596_v11 = vrot.slane %v560_v7, 2 }
  0xad   : > { %2638 = vmatmul.mubr.msk.f32.gmra.mrb[10].mxu1 %vm465_vm1, %v3424_v39  ;;  %v561_v37 = vadd.f32 %v2461_v28, %v546_v10  ;;  %v598_v14 = vsel %vm597_vm7, %v596_v11, %v595_v8  ;;  %v985_v39 = vld [vmem:[%s4006_s9] sm:$0xff]  ;;  %v994_v10 = vunpack.c.0.s8 %v993_v24 }
  0xae   : > { %2640 = vmatprep.mubr.msk.f32.mxu1 %vm465_vm1, %v3429_v44  ;;  %v986_v44 = vld [vmem:[%s4006_s9 + $0x8] sm:$0xff] }
  0xaf   : > { %v599_v15 = vrot.slane %v561_v37, 1  ;;  %v3498_v16 = vpack.c.bf16 %v986_v44, %v985_v39 }
  0xb1   : > { %2641 = vmatmul.mubr.msk.f32.gmra.mrb[12].mxu1 %vm465_vm1, %v3432_v45  ;;  %v601_v38 = vsel %vm600_vm8, %v599_v15, %v598_v14  ;;  %2751 = vmatprep.subr.bf16.mxu0 %v3498_v16  ;;  %v987_v45 = vld [vmem:[%s4006_s9 + $0x10] sm:$0xff]  ;;  %v996_v14 = vshrl.u32 %v995_v58, 7 }
  0xb2   : > { %2643 = vmatprep.mubr.msk.f32.mxu1 %vm465_vm1, %v3440_v53  ;;  %2612 = vmatmul.mubr.msk.f32.vlgmr.msra.gmra.mrb[0].mxu0 %vm465_vm1, %v601_v38  ;;  %v988_v53 = vld [vmem:[%s4006_s9 + $0x18] sm:$0xff] }
  0xb3   : > { %2753 = vmatpush3.bf16.msra.mxu0 %v3498_v16 }
  0xb5   : > { %2644 = vmatmul.mubr.msk.f32.gmra.mrb[14].mxu1 %vm465_vm1, %v3448_v62  ;;  %v3508_v62 = vpack.c.bf16 %v988_v53, %v987_v45 }
  0xb7   : > { %2755 = vmatprep.subr.bf16.mxu0 %v3508_v62 }
  0xb8   : > { %2757 = vmatpush3.bf16.msra.mxu0 %v3508_v62 }
  0xb9   : > { %2758 = vmatprep.subr.bf16.mxu0 %v3086_v0 }
 0x16c   : > { %v2624_v20 = vpop.f32.mrb[0].mxu1 }
 0x16d   : > { %v3524_v21 = vadd.f32 %v2624_v20, %v3516_v12  ;;  %v792_v22 = vpop.f32.mrb[1].mxu1 }
 0x16e   : > { %v3527_v23 = vadd.f32 %v3521_v19, %v792_v22 }
 0x16f   : > { %v891_v26 = vsel %vm889_vm9, %v3524_v21, 0.0  ;;  %2040 = vrot.lane.b32.xlu1 %v3524_v21, %s3089_s11 }
 0x170   : > { %v890_v27 = vsel %vm889_vm9, %v3527_v23, 0.0  ;;  %v2627_v28 = vpop.f32.mrb[2].mxu1  ;;  %2038 = vrot.lane.b32.xlu0 %v3527_v23, %s3089_s11 }
 0x171   : > { %v892_v29 = vadd.f32 %v891_v26, %v890_v27  ;;  %v3538_v30 = vadd.f32 %v2627_v28, %v3516_v12  ;;  %v802_v31 = vpop.f32.mrb[3].mxu1  ;;  %v3594_v26 = vld [vmem:[%s4000_s3] ss:$0 sm:$0xff] }
 0x172   : > { %v3541_v33 = vadd.f32 %v3521_v19, %v802_v31 }
 0x173   : > { %v893_v13 = vrot.slane %v892_v29, 4  ;;  %v900_v34 = vsel %vm889_vm9, %v3538_v30, 0.0 }
 0x174   : > { %v899_v35 = vsel %vm889_vm9, %v3541_v33, 0.0  ;;  %v2630_v36 = vpop.f32.mrb[4].mxu1  ;;  %2044 = vrot.lane.b32.xlu0 %v3538_v30, %s3089_s11 }
 0x175   : > { %v894_v40 = vadd.f32 %v893_v13, %v892_v29  ;;  %v901_v17 = vadd.f32 %v900_v34, %v899_v35  ;;  %v3550_v41 = vadd.f32 %v2630_v36, %v3516_v12  ;;  %v812_v42 = vpop.f32.mrb[5].mxu1  ;;  %v2462_v35 = vld [vmem:[#allocation5] ss:$0 sm:$0xff]  ;;  %v997_v36 = vsub.s32 %v994_v10, %v996_v14 }
 0x176   : > { %v3553_v43 = vadd.f32 %v3521_v19, %v812_v42 }
 0x177   : > { %v895_v46 = vrot.slane %v894_v40, 2  ;;  %v902_v47 = vrot.slane %v901_v17, 4  ;;  %v909_v48 = vsel %vm889_vm9, %v3550_v41, 0.0  ;;  %2048 = vrot.lane.b32.xlu1 %v3550_v41, %s3089_s11 }
 0x178   : > { %v908_v49 = vsel %vm889_vm9, %v3553_v43, 0.0  ;;  %v2633_v50 = vpop.f32.mrb[6].mxu1  ;;  %2042 = vrot.lane.b32.xlu0 %v3541_v33, %s3089_s11 }
 0x179   : > { %v896_v51 = vadd.f32 %v895_v46, %v894_v40  ;;  %v903_v52 = vadd.f32 %v902_v47, %v901_v17  ;;  %v910_v54 = vadd.f32 %v909_v48, %v908_v49  ;;  %v3564_v55 = vadd.f32 %v2633_v50, %v3516_v12  ;;  %v822_v56 = vpop.f32.mrb[7].mxu1 }
 0x17a   : > { %v3567_v57 = vadd.f32 %v3521_v19, %v822_v56  ;;  %v3604_v17 = vsub.s32 0, %v996_v14 }
 0x17b   : > { %v897_v59 = vrot.slane %v896_v51, 1  ;;  %v904_v60 = vrot.slane %v903_v52, 2  ;;  %v911_v61 = vrot.slane %v910_v54, 4  ;;  %v918_v63 = vsel %vm889_vm9, %v3564_v55, 0.0  ;;  %2046 = vrot.lane.b32.xlu1 %v3553_v43, %s3089_s11 }
 0x17c   : > { %v917_v2 = vsel %vm889_vm9, %v3567_v57, 0.0  ;;  %v2636_v3 = vpop.f32.mrb[8].mxu1  ;;  %2050 = vrot.lane.b32.xlu0 %v3567_v57, %s3089_s11 }
 0x17d   : > { %v905_v4 = vadd.f32 %v904_v60, %v903_v52  ;;  %v912_v5 = vadd.f32 %v911_v61, %v910_v54  ;;  %v919_v25 = vadd.f32 %v918_v63, %v917_v2  ;;  %v832_v6 = vpop.f32.mrb[9].mxu1  ;;  %v898_v32 = vadd.f32 %v897_v59, %v896_v51 }
 0x17e   : > { %v3578_v7 = vadd.f32 %v2636_v3, %v3516_v12  ;;  %v3581_v9 = vadd.f32 %v3521_v19, %v832_v6 }
 0x17f   : > { %v906_v8 = vrot.slane %v905_v4, 1  ;;  %v913_v11 = vrot.slane %v912_v5, 2  ;;  %v920_v37 = vrot.slane %v919_v25, 4  ;;  %2052 = vrot.lane.b32.xlu1 %v3564_v55, %s3089_s11  ;;  %v962_v22 = vmul.f32 0.0625, %v898_v32 }
 0x180   : > { %v927_v15 = vsel %vm889_vm9, %v3578_v7, 0.0  ;;  %v926_v38 = vsel %vm889_vm9, %v3581_v9, 0.0  ;;  %v2639_v39 = vpop.f32.mrb[10].mxu1  ;;  %2054 = vrot.lane.b32.xlu0 %v3581_v9, %s3089_s11 }
 0x181   : > { %v907_v44 = vadd.f32 %v906_v8, %v905_v4  ;;  %v914_v45 = vadd.f32 %v913_v11, %v912_v5  ;;  %v921_v53 = vadd.f32 %v920_v37, %v919_v25  ;;  %v842_v20 = vpop.f32.mrb[11].mxu1  ;;  %v928_v27 = vadd.f32 %v927_v15, %v926_v38 }
 0x182   : > { %v3597_v28 = vadd.f32 %v2639_v39, %v3516_v12  ;;  %v3600_v29 = vadd.f32 %v3521_v19, %v842_v20  ;;  %v3616_v54 = vadd.f32 %v3594_v26, %v962_v22 }
 0x183   : > { %v963_v31 = vmul.f32 0.0625, %v907_v44  ;;  %v915_v13 = vrot.slane %v914_v45, 1  ;;  %v922_v34 = vrot.slane %v921_v53, 2  ;;  %2056 = vrot.lane.b32.xlu1 %v3578_v7, %s3089_s11  ;;  %v929_v40 = vrot.slane %v928_v27, 4 }
 0x184   : > { %v936_v42 = vsel %vm889_vm9, %v3597_v28, 0.0  ;;  %v935_v46 = vsel %vm889_vm9, %v3600_v29, 0.0  ;;  %v2642_v47 = vpop.f32.mrb[12].mxu1  ;;  %2058 = vrot.lane.b32.xlu0 %v3600_v29, %s3089_s11 }
 0x185   : > { %v3613_v48 = vadd.f32 %v3594_v26, %v963_v31  ;;  %v916_v49 = vadd.f32 %v915_v13, %v914_v45  ;;  %v923_v50 = vadd.f32 %v922_v34, %v921_v53  ;;  %v937_v51 = vadd.f32 %v936_v42, %v935_v46  ;;  %v852_v52 = vpop.f32.mrb[13].mxu1  ;;  %v670_v18 = vpop.f32.mrb[0].mxu0 }
 0x186   : > { %v930_v56 = vadd.f32 %v929_v40, %v928_v27  ;;  %v886_v24 = vadd.f32 %v2642_v47, %v3516_v12  ;;  %v885_v58 = vadd.f32 %v3521_v19, %v852_v52  ;;  %v3621_v63 = vadd.f32 %v2462_v35, %v670_v18  ;;  %v2613_v2 = vpop.f32.mrb[1].mxu0 }
 0x187   : > { %v1297_v59 = vrot.slane %v3613_v48, 7  ;;  %v964_v60 = vmul.f32 0.0625, %v916_v49  ;;  %v924_v61 = vrot.slane %v923_v50, 1  ;;  %2060 = vrot.lane.b32.xlu1 %v3597_v28, %s3089_s11  ;;  %v938_v4 = vrot.slane %v937_v51, 4 }
 0x188   : > { %v931_v3 = vrot.slane %v930_v56, 2  ;;  %v945_v5 = vsel %vm889_vm9, %v886_v24, 0.0  ;;  %v944_v25 = vsel %vm889_vm9, %v885_v58, 0.0  ;;  %v2645_v6 = vpop.f32.mrb[14].mxu1  ;;  %2062 = vrot.lane.b32.xlu0 %v885_v58, %s3089_s11  ;;  %v991_v8 = vcombine.high %v3621_v63, %v3621_v63 }
 0x189   : > { %v3629_v32 = vadd.f32 %v3594_v26, %v964_v60  ;;  %v925_v10 = vadd.f32 %v924_v61, %v923_v50  ;;  %v998_v11 = vrot.slane %v3621_v63, %v997_v36  ;;  %v862_v37 = vpop.f32.mrb[15].mxu1  ;;  %v939_v15 = vadd.f32 %v938_v4, %v937_v51 }
 0x18a   : > { %v932_v14 = vadd.f32 %v931_v3, %v930_v56  ;;  %v946_v38 = vadd.f32 %v945_v5, %v944_v25  ;;  %v888_v39 = vadd.f32 %v2645_v6, %v3516_v12  ;;  %v1005_v53 = vrot.slane %v991_v8, %v997_v36 }
 0x18b   : > { %v1299_v44 = vrot.slane %v3629_v32, 6  ;;  %v965_v45 = vmul.f32 0.0625, %v925_v10  ;;  %v1006_v20 = vcombine.high %v998_v11, %v998_v11  ;;  %2064 = vrot.lane.b32.xlu1 %v886_v24, %s3089_s11  ;;  %v1014_v27 = vrot.slane %v998_v11, %v997_v36 }
 0x18c   : > { %v933_v22 = vrot.slane %v932_v14, 1  ;;  %v940_v31 = vrot.slane %v939_v15, 2  ;;  %v947_v13 = vrot.slane %v946_v38, 4  ;;  %v1007_v35 = vcombine.high %v1005_v53, %v1005_v53 }
 0x18d   : > { %v3638_v34 = vadd.f32 %v3594_v26, %v965_v45  ;;  %v1021_v40 = vrot.slane %v1005_v53, %v997_v36  ;;  %v1028_v42 = vrot.slane %v1006_v20, %v997_v36  ;;  %v1036_v47 = vcombine.high %v1014_v27, %v1014_v27 }
 0x18e   : > { %v934_v46 = vadd.f32 %v933_v22, %v932_v14  ;;  %v1043_v12 = vrot.slane %v1014_v27, %v3604_v17  ;;  %v941_v49 = vadd.f32 %v940_v31, %v939_v15  ;;  %v1035_v52 = vrot.slane %v1007_v35, %v997_v36 }
 0x18f   : > { %v1301_v50 = vrot.slane %v3638_v34, 5  ;;  %v1038_v51 = vcombine.high %v1028_v42, %v1028_v42  ;;  %v1037_v56 = vcombine.high %v1021_v40, %v1021_v40  ;;  %2068 = vrot.lane.b32.xlu1 %v888_v39, %s3089_s11  ;;  %v948_v2 = vadd.f32 %v947_v13, %v946_v38 }
 0x190   : > { %v966_v18 = vmul.f32 0.0625, %v934_v46  ;;  %v1081_v60 = vmul.f32 %v1043_v12, %v3524_v21  ;;  %v942_v61 = vrot.slane %v941_v49, 1  ;;  %v1063_v3 = vrot.slane %v1035_v52, %v3604_v17 }
 0x191   : > { %v1067_v4 = vrot.slane %v1037_v56, %v3604_v17  ;;  %v954_v5 = vsel %vm889_vm9, %v888_v39, 0.0  ;;  %v1039_v25 = vcombine.high %v1035_v52, %v1035_v52  ;;  %v949_v10 = vrot.slane %v948_v2, 2 }
 0x192   : > { %v943_v6 = vadd.f32 %v942_v61, %v941_v49  ;;  %v887_v8 = vadd.f32 %v3521_v19, %v862_v37  ;;  %v1080_v36 = vmul.f32 %v1043_v12, %v3527_v23  ;;  %v3650_v11 = vmul.f32 %v1063_v3, %v3597_v28 }
 0x193   : > { %v1090_v21 = vmul.f32 %v1063_v3, %v3600_v29  ;;  %v3653_v14 = vmul.f32 %v1067_v4, %v886_v24  ;;  %v3655_v15 = vmul.f32 %v1067_v4, %v885_v58  ;;  %v950_v45 = vadd.f32 %v949_v10, %v948_v2 }
 0x194   : > { %v967_v38 = vmul.f32 0.0625, %v943_v6  ;;  %v1071_v53 = vrot.slane %v1039_v25, %v3604_v17  ;;  %v953_v20 = vsel %vm889_vm9, %v887_v8, 0.0  ;;  %2654 = vmatprep.mubr.msk.f32.mxu0 %vm465_vm1, %v1080_v36  ;;  %2066 = vrot.lane.b32.xlu0 %v887_v8, %s3089_s11  ;;  %v1047_v23 = vrot.slane %v1028_v42, %v3604_v17 }
 0x195   : > { %v955_v19 = vadd.f32 %v954_v5, %v953_v20  ;;  %2655 = vmatmul.mubr.msk.f32.vlgmr.msra.gmra.mrb[2].mxu0 %vm465_vm1, %v1081_v60  ;;  %v1051_v28 = vrot.slane %v1036_v47, %v3604_v17  ;;  %v1055_v29 = vrot.slane %v1038_v51, %v3604_v17  ;;  %v951_v24 = vrot.slane %v950_v45, 1 }
 0x196   : > { %v1095_v58 = vmul.f32 %v1071_v53, %v888_v39  ;;  %v1094_v37 = vmul.f32 %v1071_v53, %v887_v8  ;;  %2760 = vmatpush3.bf16.msra.mxu0 %v3498_v16  ;;  %v1059_v22 = vrot.slane %v1021_v40, %v3604_v17  ;;  %v1082_v31 = vmul.f32 %v1047_v23, %v3541_v33 }
 0x197   : > { %v956_v27 = vrot.slane %v955_v19, 4  ;;  %v1083_v13 = vmul.f32 %v1047_v23, %v3538_v30  ;;  %v1084_v34 = vmul.f32 %v1051_v28, %v3553_v43  ;;  %2761 = vmatprep.subr.bf16.mxu0 %v3086_v0  ;;  %v1085_v35 = vmul.f32 %v1051_v28, %v3550_v41 }
 0x198   : > { %v1086_v42 = vmul.f32 %v1055_v29, %v3567_v57  ;;  %v1087_v39 = vmul.f32 %v1055_v29, %v3564_v55  ;;  %v1088_v46 = vmul.f32 %v1059_v22, %v3581_v9  ;;  %2657 = vmatprep.mubr.msk.f32.mxu0 %vm465_vm1, %v1082_v31  ;;  %v1089_v40 = vmul.f32 %v1059_v22, %v3578_v7 }
 0x199   : > { %v957_v16 = vadd.f32 %v956_v27, %v955_v19  ;;  %v952_v33 = vadd.f32 %v951_v24, %v950_v45  ;;  %v981_v30 = vadd.f32 %v3594_v26, %v966_v18  ;;  %2658 = vmatmul.mubr.msk.f32.gmra.mrb[4].mxu0 %vm465_vm1, %v1083_v13  ;;  %v982_v43 = vadd.f32 %v3594_v26, %v967_v38 }
 0x19a   : > { %v1298_v41 = vsel %vm582_vm2, %v1297_v59, %v3616_v54  ;;  %2660 = vmatprep.mubr.msk.f32.mxu0 %vm465_vm1, %v1084_v34  ;;  %2763 = vmatpush3.bf16.msra.mxu0 %v3508_v62 }
 0x19b   : > { %v958_v55 = vrot.slane %v957_v16, 2  ;;  %v968_v57 = vmul.f32 0.0625, %v952_v33  ;;  %v1300_v7 = vsel %vm585_vm3, %v1299_v44, %v1298_v41  ;;  %v1303_v9 = vrot.slane %v981_v30, 4  ;;  %2715 = vmatprep.subr.mxu0 %v3088_v1 }
 0x19c   : > { %v1302_v47 = vsel %vm588_vm4, %v1301_v50, %v1300_v7  ;;  %v1305_v12 = vrot.slane %v982_v43, 3 }
 0x19d   : > { %v959_v49 = vadd.f32 %v958_v55, %v957_v16  ;;  %v983_v48 = vadd.f32 %v3594_v26, %v968_v57  ;;  %v1304_v54 = vsel %vm591_vm5, %v1303_v9, %v1302_v47  ;;  %2661 = vmatmul.mubr.msk.f32.gmra.mrb[6].mxu0 %vm465_vm1, %v1085_v35 }
 0x19e   : > { %v1306_v62 = vsel %vm594_vm6, %v1305_v12, %v1304_v54  ;;  %2663 = vmatprep.mubr.msk.f32.mxu0 %vm465_vm1, %v1086_v42 }
 0x19f   : > { %v960_v59 = vrot.slane %v959_v49, 1  ;;  %v1307_v32 = vrot.slane %v983_v48, 2 }
 0x1a1   : > { %v961_v44 = vadd.f32 %v960_v59, %v959_v49  ;;  %v1308_v51 = vsel %vm597_vm7, %v1307_v32, %v1306_v62  ;;  %2664 = vmatmul.mubr.msk.f32.gmra.mrb[8].mxu0 %vm465_vm1, %v1087_v39 }
 0x1a2   : > { %2666 = vmatprep.mubr.msk.f32.mxu0 %vm465_vm1, %v1088_v46 }
 0x1a3   : > { %v969_v50 = vmul.f32 0.0625, %v961_v44 }
 0x1a5   : > { %v984_v52 = vadd.f32 %v3594_v26, %v969_v50  ;;  %2667 = vmatmul.mubr.msk.f32.gmra.mrb[10].mxu0 %vm465_vm1, %v1089_v40  ;;  %v3721_v26 = vld [vmem:[%s4007_s10] sm:$0xf] }
 0x1a6   : > { %2669 = vmatprep.mubr.msk.f32.mxu0 %vm465_vm1, %v1090_v21  ;;  %2689 = vmatprep.subr.msk.mxu1 %vm1727_vm10, %v3721_v26 }
 0x1a7   : > { %v1309_v56 = vrot.slane %v984_v52, 1  ;;  %2690 = vmatpush3.msk.msra.mxu1 %vm1727_vm10, %v3721_v26 }
 0x1a9   : > { %v1310_v18 = vsel %vm600_vm8, %v1309_v56, %v1308_v51  ;;  %2670 = vmatmul.mubr.msk.f32.gmra.mrb[12].mxu0 %vm465_vm1, %v3650_v11 }
 0x1aa   : > { %2174 = vrot.lane.b32.xlu0 %v1310_v18, %s3089_s11  ;;  %v1312_v60 = vmul.f32 %v1310_v18, %v3621_v63  ;;  %2672 = vmatprep.mubr.msk.f32.mxu0 %vm465_vm1, %v3655_v15  ;;  %s4036_s11 = sld [smem:[#allocation18_spill]] }
 0x1ad   : > { %2673 = vmatmul.mubr.msk.f32.gmra.mrb[14].mxu0 %vm465_vm1, %v3653_v14 }
 0x1ae   : > { %2675 = vmatprep.mubr.msk.f32.mxu0 %vm465_vm1, %v1094_v37 }
 0x1b0   : > { %s3952_s5 = scalar_lea.hbm %s4036_s11, %s2522_s29 }
 0x1b1   : > { %2676 = vmatmul.mubr.msk.f32.gmra.mrb[16].mxu0 %vm465_vm1, %v1095_v58 }
 0x1b2   : > { %2686 = vmatprep.mubr.msk.f32.mxu0 %vm3087_vm0, %v3088_v1 }
 0x1b5   : > { %2687 = vmatmul.mubr.msk.f32.vlgmr.msra.gmra.mrb[18].mxu0 %vm465_vm1, %v1312_v60 }
 0x1b6   : > { %2717 = vmatprep.mubr.msk.f32.mxu0 %vm3087_vm0, %v3088_v1  ;;  %2716 = vmatpush3.msk.msra.mxu0 %vm1727_vm10, %v3721_v26 }
 0x1b7   : > { %2720 = vmatprep.subr.mxu0 %v3088_v1 }
 0x268   : > { %v3730_v63 = vpop.f32.mrb[2].mxu0 }
 0x269   : > { %v1388_v61 = vsel %vm1386_vm11, %v3730_v63, -inf  ;;  %v3734_v2 = vpop.f32.mrb[3].mxu0 }
 0x26a   : > { %v1387_v3 = vsel %vm1386_vm11, %v3734_v2, -inf }
 0x26b   : > { %v1389_v4 = vmax.f32 %v1387_v3, %v1388_v61 }
 0x26c   : > { %v3738_v5 = vpop.f32.mrb[4].mxu0 }
 0x26d   : > { %v1397_v25 = vsel %vm1386_vm11, %v3738_v5, -inf  ;;  %v3742_v6 = vpop.f32.mrb[5].mxu0  ;;  %v1390_v15 = vrot.slane %v1389_v4, 4 }
 0x26e   : > { %v1396_v10 = vsel %vm1386_vm11, %v3742_v6, -inf }
 0x26f   : > { %v1398_v8 = vmax.f32 %v1396_v10, %v1397_v25  ;;  %v1391_v29 = vmax.f32 %v1389_v4, %v1390_v15 }
 0x270   : > { %v3746_v36 = vpop.f32.mrb[6].mxu0 }
 0x271   : > { %v1406_v11 = vsel %vm1386_vm11, %v3746_v36, -inf  ;;  %v3750_v21 = vpop.f32.mrb[7].mxu0  ;;  %v1399_v45 = vrot.slane %v1398_v8, 4  ;;  %v1392_v35 = vrot.slane %v1391_v29, 2 }
 0x272   : > { %v1405_v14 = vsel %vm1386_vm11, %v3750_v21, -inf }
 0x273   : > { %v1407_v38 = vmax.f32 %v1405_v14, %v1406_v11  ;;  %v1400_v58 = vmax.f32 %v1398_v8, %v1399_v45  ;;  %v1393_v57 = vmax.f32 %v1391_v29, %v1392_v35 }
 0x274   : > { %v3754_v53 = vpop.f32.mrb[8].mxu0 }
 0x275   : > { %v1408_v20 = vrot.slane %v1407_v38, 4  ;;  %v1415_v19 = vsel %vm1386_vm11, %v3754_v53, -inf  ;;  %v3758_v23 = vpop.f32.mrb[9].mxu0  ;;  %v1401_v46 = vrot.slane %v1400_v58, 2  ;;  %v1394_v51 = vrot.slane %v1393_v57, 1 }
 0x276   : > { %v1414_v28 = vsel %vm1386_vm11, %v3758_v23, -inf }
 0x277   : > { %v1416_v24 = vmax.f32 %v1414_v28, %v1415_v19  ;;  %v1409_v37 = vmax.f32 %v1407_v38, %v1408_v20  ;;  %v1402_v47 = vmax.f32 %v1400_v58, %v1401_v46  ;;  %v1395_v15 = vmax.f32 %v1393_v57, %v1394_v51 }
 0x278   : > { %v3762_v22 = vpop.f32.mrb[10].mxu0 }
 0x279   : > { %v1417_v27 = vrot.slane %v1416_v24, 4  ;;  %v1424_v31 = vsel %vm1386_vm11, %v3762_v22, -inf  ;;  %v3766_v13 = vpop.f32.mrb[11].mxu0  ;;  %v1410_v16 = vrot.slane %v1409_v37, 2  ;;  %v1403_v18 = vrot.slane %v1402_v47, 1 }
 0x27a   : > { %v1423_v34 = vsel %vm1386_vm11, %v3766_v13, -inf }
 0x27b   : > { %v1418_v42 = vmax.f32 %v1416_v24, %v1417_v27  ;;  %v1425_v39 = vmax.f32 %v1423_v34, %v1424_v31  ;;  %v1411_v12 = vmax.f32 %v1409_v37, %v1410_v16  ;;  %v1404_v19 = vmax.f32 %v1402_v47, %v1403_v18 }
 0x27c   : > { %v3770_v40 = vpop.f32.mrb[12].mxu0 }
 0x27d   : > { %v1419_v33 = vrot.slane %v1418_v42, 2  ;;  %v1426_v30 = vrot.slane %v1425_v39, 4  ;;  %v1433_v43 = vsel %vm1386_vm11, %v3770_v40, -inf  ;;  %v3774_v41 = vpop.f32.mrb[13].mxu0  ;;  %v1412_v60 = vrot.slane %v1411_v12, 1 }
 0x27e   : > { %v1432_v55 = vsel %vm1386_vm11, %v3774_v41, -inf }
 0x27f   : > { %v1427_v7 = vmax.f32 %v1425_v39, %v1426_v30  ;;  %v1434_v9 = vmax.f32 %v1432_v55, %v1433_v43  ;;  %v1420_v49 = vmax.f32 %v1418_v42, %v1419_v33  ;;  %v1413_v28 = vmax.f32 %v1411_v12, %v1412_v60 }
 0x280   : > { %v3778_v48 = vpop.f32.mrb[14].mxu0 }
 0x281   : > { %v1428_v54 = vrot.slane %v1427_v7, 2  ;;  %v1435_v62 = vrot.slane %v1434_v9, 4  ;;  %v1442_v59 = vsel %vm1386_vm11, %v3778_v48, -inf  ;;  %v3782_v32 = vpop.f32.mrb[15].mxu0  ;;  %v1421_v61 = vrot.slane %v1420_v49, 1 }
 0x282   : > { %v1441_v44 = vsel %vm1386_vm11, %v3782_v32, -inf }
 0x283   : > { %v1429_v50 = vmax.f32 %v1427_v7, %v1428_v54  ;;  %v1436_v52 = vmax.f32 %v1434_v9, %v1435_v62  ;;  %v1443_v56 = vmax.f32 %v1441_v44, %v1442_v59  ;;  %v1422_v29 = vmax.f32 %v1420_v49, %v1421_v61 }
 0x284   : > { %v3786_v3 = vpop.f32.mrb[16].mxu0 }
 0x285   : > { %v1430_v4 = vrot.slane %v1429_v50, 1  ;;  %v1437_v25 = vrot.slane %v1436_v52, 2  ;;  %v1444_v10 = vrot.slane %v1443_v56, 4  ;;  %v1451_v8 = vsel %vm1386_vm11, %v3786_v3, -inf  ;;  %v3790_v11 = vpop.f32.mrb[17].mxu0 }
 0x286   : > { %v1450_v14 = vsel %vm1386_vm11, %v3790_v11, -inf }
 0x287   : > { %v1438_v38 = vmax.f32 %v1436_v52, %v1437_v25  ;;  %v1445_v45 = vmax.f32 %v1443_v56, %v1444_v10  ;;  %v1452_v20 = vmax.f32 %v1450_v14, %v1451_v8  ;;  %v1431_v24 = vmax.f32 %v1429_v50, %v1430_v4 }
 0x288   : > { %v3794_v58 = vpop.f32.mrb[18].mxu0 }
 0x289   : > { %v1439_v37 = vrot.slane %v1438_v38, 1  ;;  %v1446_v27 = vrot.slane %v1445_v45, 2  ;;  %v1453_v31 = vrot.slane %v1452_v20, 4  ;;  %v1460_v34 = vrot.slane %v3794_v58, 1  ;;  %v2688_v35 = vpop.f32.mrb[19].mxu0 }
 0x28a   : > { %v1461_v42 = vrot.slane %v3794_v58, 2  ;;  %v1462_v39 = vrot.slane %v3794_v58, 3  ;;  %v1463_v46 = vrot.slane %v3794_v58, 4  ;;  %v1464_v16 = vrot.slane %v3794_v58, 5 }
 0x28b   : > { %v1440_v33 = vmax.f32 %v1438_v38, %v1439_v37  ;;  %v1447_v30 = vmax.f32 %v1445_v45, %v1446_v27  ;;  %v1454_v43 = vmax.f32 %v1452_v20, %v1453_v31  ;;  %v1465_v55 = vrot.slane %v3794_v58, 6 }
 0x28c   : > { %v1466_v57 = vrot.slane %v3794_v58, 7  ;;  %v1475_v7 = vmax.f32 %v1395_v15, %v3794_v58  ;;  %v1476_v9 = vmax.f32 %v1404_v19, %v1460_v34  ;;  %v3804_v47 = vmax.f32 %v1413_v28, %v1461_v42 }
 0x28d   : > { %v1448_v12 = vrot.slane %v1447_v30, 1  ;;  %v1455_v49 = vrot.slane %v1454_v43, 2  ;;  %v3806_v54 = vmax.f32 %v1422_v29, %v1462_v39  ;;  %v3808_v62 = vmax.f32 %v1431_v24, %v1463_v46 }
 0x28e   : > { %v3810_v59 = vmax.f32 %v1440_v33, %v1464_v16  ;;  %v1486_v44 = vrot.slane %v1475_v7, %v3604_v17  ;;  %v1490_v51 = vrot.slane %v1476_v9, %v3604_v17  ;;  %v1494_v50 = vrot.slane %v3804_v47, %v3604_v17 }
 0x28f   : > { %v1449_v52 = vmax.f32 %v1447_v30, %v1448_v12  ;;  %v1456_v56 = vmax.f32 %v1454_v43, %v1455_v49  ;;  %v1498_v18 = vrot.slane %v3806_v54, %v3604_v17  ;;  %v1502_v60 = vrot.slane %v3808_v62, %v3604_v17 }
 0x290   : > { %v1506_v61 = vrot.slane %v3810_v59, %v3604_v17  ;;  %v1515_v4 = vsub.f32 %v3734_v2, %v1486_v44  ;;  %v1516_v25 = vsub.f32 %v3730_v63, %v1486_v44  ;;  %v1517_v10 = vsub.f32 %v3742_v6, %v1490_v51 }
 0x291   : > { %v1457_v8 = vrot.slane %v1456_v56, 1  ;;  %v1481_v14 = vmax.f32 %v1449_v52, %v1465_v55  ;;  %v1518_v15 = vsub.f32 %v3738_v5, %v1490_v51  ;;  %v1519_v38 = vsub.f32 %v3750_v21, %v1494_v50 }
 0x292   : > { %v1520_v45 = vsub.f32 %v3746_v36, %v1494_v50  ;;  %v1521_v20 = vsub.f32 %v3758_v23, %v1498_v18  ;;  %v1522_v19 = vsub.f32 %v3754_v53, %v1498_v18  ;;  %v1523_v28 = vsub.f32 %v3766_v13, %v1502_v60 }
 0x293   : > { %v1458_v29 = vmax.f32 %v1456_v56, %v1457_v8  ;;  %v1510_v2 = vrot.slane %v1481_v14, %v3604_v17  ;;  %v1524_v63 = vsub.f32 %v3762_v22, %v1502_v60  ;;  %v1525_v6 = vsub.f32 %v3774_v41, %v1506_v61 }
 0x294   : > { %v1526_v24 = vsub.f32 %v3770_v40, %v1506_v61  ;;  %v1531_v5 = vmul.f32 1.442695, %v1515_v4  ;;  %v1533_v37 = vmul.f32 1.442695, %v1516_v25  ;;  %v1535_v21 = vmul.f32 1.442695, %v1517_v10 }
 0x295   : > { %v1482_v27 = vmax.f32 %v1458_v29, %v1466_v57  ;;  %v1527_v36 = vsub.f32 %v3782_v32, %v1510_v2  ;;  %v1528_v23 = vsub.f32 %v3778_v48, %v1510_v2  ;;  %v1537_v53 = vmul.f32 1.442695, %v1518_v15 }
 0x296   : > { %2854 = vpow2.f32 %v1531_v5  ;;  %v1539_v13 = vmul.f32 1.442695, %v1519_v38  ;;  %v1541_v34 = vmul.f32 1.442695, %v1520_v45  ;;  %v1543_v22 = vmul.f32 1.442695, %v1521_v20 }
 0x297   : > { %v1514_v31 = vrot.slane %v1482_v27, %v3604_v17  ;;  %2856 = vpow2.f32 %v1533_v37  ;;  %v1545_v35 = vmul.f32 1.442695, %v1522_v19  ;;  %v1547_v42 = vmul.f32 1.442695, %v1523_v28 }
 0x298   : > { %2858 = vpow2.f32 %v1535_v21  ;;  %v1571_v32 = vrot.slane %v1476_v9, 7  ;;  %v1573_v48 = vrot.slane %v3804_v47, 6  ;;  %v1549_v39 = vmul.f32 1.442695, %v1524_v63 }
 0x299   : > { %v1529_v41 = vsub.f32 %v3790_v11, %v1514_v31  ;;  %v1530_v40 = vsub.f32 %v3786_v3, %v1514_v31  ;;  %2860 = vpow2.f32 %v1537_v53  ;;  %v1551_v46 = vmul.f32 1.442695, %v1525_v6 }
 0x29a   : > { %2862 = vpow2.f32 %v1539_v13  ;;  %v1553_v16 = vmul.f32 1.442695, %v1526_v24  ;;  %v1555_v17 = vmul.f32 1.442695, %v1527_v36  ;;  %v1572_v33 = vsel %vm582_vm2, %v1571_v32, %v1475_v7 }
 0x29b   : > { %2864 = vpow2.f32 %v1541_v34  ;;  %v1575_v30 = vrot.slane %v3806_v54, 5  ;;  %v1574_v3 = vsel %vm585_vm3, %v1573_v48, %v1572_v33  ;;  %v1577_v11 = vrot.slane %v3808_v62, 4 }
 0x29c   : > { %2866 = vpow2.f32 %v1543_v22  ;;  %v1581_v43 = vrot.slane %v1481_v14, 2  ;;  %v1579_v57 = vrot.slane %v3810_v59, 3  ;;  %v1583_v9 = vrot.slane %v1482_v27, 1 }
 0x29d   : > { %2868 = vpow2.f32 %v1545_v35  ;;  %v1576_v55 = vsel %vm588_vm4, %v1575_v30, %v1574_v3  ;;  %v1557_v47 = vmul.f32 1.442695, %v1528_v23  ;;  %v1559_v7 = vmul.f32 1.442695, %v1529_v41 }
 0x29e   : > { %2870 = vpow2.f32 %v1547_v42  ;;  %v1578_v12 = vsel %vm591_vm5, %v1577_v11, %v1576_v55  ;;  %v1561_v51 = vmul.f32 1.442695, %v1530_v40 }
 0x29f   : > { %2872 = vpow2.f32 %v1549_v39  ;;  %v1580_v54 = vsel %vm594_vm6, %v1579_v57, %v1578_v12 }
 0x2a0   : > { %v2855_v49 = vpop.eup %2854  ;;  %2874 = vpow2.f32 %v1551_v46  ;;  %v1582_v62 = vsel %vm597_vm7, %v1581_v43, %v1580_v54 }
 0x2a1   : > { %v2857_v44 = vpop.eup %2856  ;;  %2876 = vpow2.f32 %v1553_v16  ;;  %v1589_v50 = vsel %vm1386_vm11, %v2855_v49, 0.0  ;;  %2691 = vmatprep.mubr.msk.f32.mxu1 %vm1386_vm11, %v2855_v49  ;;  %v1584_v52 = vsel %vm600_vm8, %v1583_v9, %v1582_v62 }
 0x2a2   : > { %v2859_v59 = vpop.eup %2858  ;;  %2878 = vpow2.f32 %v1555_v17  ;;  %v1590_v56 = vsel %vm1386_vm11, %v2857_v44, 0.0  ;;  %2692 = vmatmul.mubr.msk.f32.vlgmr.msra.gmra.mrb[16].mxu1 %vm1386_vm11, %v2857_v44  ;;  %v1586_v60 = vsub.f32 %v3794_v58, %v1584_v52 }
 0x2a3   : > { %v2861_v18 = vpop.eup %2860  ;;  %2880 = vpow2.f32 %v1557_v47  ;;  %v1591_v61 = vadd.f32 %v1590_v56, %v1589_v50  ;;  %v1598_v4 = vsel %vm1386_vm11, %v2859_v59, 0.0  ;;  %2694 = vmatprep.mubr.msk.f32.mxu1 %vm1386_vm11, %v2859_v59 }
 0x2a4   : > { %v2863_v25 = vpop.eup %2862  ;;  %2882 = vpow2.f32 %v1559_v7  ;;  %v1599_v10 = vsel %vm1386_vm11, %v2861_v18, 0.0  ;;  %v1587_v14 = vmul.f32 1.442695, %v1586_v60 }
 0x2a5   : > { %v2865_v8 = vpop.eup %2864  ;;  %2884 = vpow2.f32 %v1561_v51  ;;  %v1592_v15 = vrot.slane %v1591_v61, 4  ;;  %v1600_v38 = vadd.f32 %v1599_v10, %v1598_v4  ;;  %v1607_v20 = vsel %vm1386_vm11, %v2863_v25, 0.0 }
 0x2a6   : > { %v2867_v45 = vpop.eup %2866  ;;  %v1608_v19 = vsel %vm1386_vm11, %v2865_v8, 0.0  ;;  %2695 = vmatmul.mubr.msk.f32.gmra.mrb[18].mxu1 %vm1386_vm11, %v2861_v18  ;;  %2886 = vpow2.f32 %v1587_v14 }
 0x2a7   : > { %v2869_v58 = vpop.eup %2868  ;;  %v1593_v28 = vadd.f32 %v1592_v15, %v1591_v61  ;;  %v1601_v29 = vrot.slane %v1600_v38, 4  ;;  %v1609_v2 = vadd.f32 %v1608_v19, %v1607_v20  ;;  %2697 = vmatprep.mubr.msk.f32.mxu1 %vm1386_vm11, %v2863_v25  ;;  %v1616_v6 = vsel %vm1386_vm11, %v2867_v45, 0.0 }
 0x2a8   : > { %v2871_v63 = vpop.eup %2870  ;;  %v1617_v24 = vsel %vm1386_vm11, %v2869_v58, 0.0 }
 0x2a9   : > { %v2873_v5 = vpop.eup %2872  ;;  %v1594_v37 = vrot.slane %v1593_v28, 2  ;;  %v1602_v21 = vadd.f32 %v1601_v29, %v1600_v38  ;;  %v1610_v27 = vrot.slane %v1609_v2, 4  ;;  %v1618_v36 = vadd.f32 %v1617_v24, %v1616_v6 }
 0x2aa   : > { %v2875_v23 = vpop.eup %2874  ;;  %v1625_v53 = vsel %vm1386_vm11, %v2871_v63, 0.0  ;;  %v1626_v13 = vsel %vm1386_vm11, %v2873_v5, 0.0  ;;  %2698 = vmatmul.mubr.msk.f32.gmra.mrb[20].mxu1 %vm1386_vm11, %v2865_v8 }
 0x2ab   : > { %v2877_v31 = vpop.eup %2876  ;;  %v1595_v34 = vadd.f32 %v1594_v37, %v1593_v28  ;;  %v1603_v22 = vrot.slane %v1602_v21, 2  ;;  %v1611_v41 = vadd.f32 %v1610_v27, %v1609_v2  ;;  %v1619_v40 = vrot.slane %v1618_v36, 4  ;;  %2700 = vmatprep.mubr.msk.f32.mxu1 %vm1386_vm11, %v2867_v45 }
 0x2ac   : > { %v2879_v35 = vpop.eup %2878  ;;  %v1627_v42 = vadd.f32 %v1626_v13, %v1625_v53  ;;  %v1634_v32 = vsel %vm1386_vm11, %v2875_v23, 0.0  ;;  %v1635_v48 = vsel %vm1386_vm11, %v2877_v31, 0.0 }
 0x2ad   : > { %v2881_v39 = vpop.eup %2880  ;;  %v1596_v46 = vrot.slane %v1595_v34, 1  ;;  %v1604_v16 = vadd.f32 %v1603_v22, %v1602_v21  ;;  %v1612_v17 = vrot.slane %v1611_v41, 2  ;;  %v1620_v33 = vadd.f32 %v1619_v40, %v1618_v36 }
 0x2ae   : > { %v2883_v30 = vpop.eup %2882  ;;  %v1628_v3 = vrot.slane %v1627_v42, 4  ;;  %v1636_v11 = vadd.f32 %v1635_v48, %v1634_v32  ;;  %v1643_v43 = vsel %vm1386_vm11, %v2879_v35, 0.0  ;;  %v1644_v55 = vsel %vm1386_vm11, %v2881_v39, 0.0  ;;  %2701 = vmatmul.mubr.msk.f32.gmra.mrb[22].mxu1 %vm1386_vm11, %v2869_v58  ;;  %v2228_v32 = vld [vmem:[#allocation8 + $0x10] sm:$0xff] }
 0x2af   : > { %v2885_v57 = vpop.eup %2884  ;;  %v1597_v9 = vadd.f32 %v1596_v46, %v1595_v34  ;;  %v1605_v47 = vrot.slane %v1604_v16, 1  ;;  %v1613_v12 = vadd.f32 %v1612_v17, %v1611_v41  ;;  %v1621_v49 = vrot.slane %v1620_v33, 2  ;;  %2703 = vmatprep.mubr.msk.f32.mxu1 %vm1386_vm11, %v2871_v63 }
 0x2b0   : > { %v1629_v7 = vadd.f32 %v1628_v3, %v1627_v42  ;;  %v1637_v54 = vrot.slane %v1636_v11, 4  ;;  %v1645_v44 = vadd.f32 %v1644_v55, %v1643_v43  ;;  %v1652_v51 = vsel %vm1386_vm11, %v2883_v30, 0.0  ;;  %v2887_v62 = vpop.eup %2886  ;;  %v2227_v42 = vld [vmem:[#allocation8 + $0x8] sm:$0xff] }
 0x2b1   : > { %v1606_v50 = vadd.f32 %v1605_v47, %v1604_v16  ;;  %v1614_v59 = vrot.slane %v1613_v12, 1  ;;  %v1622_v52 = vadd.f32 %v1621_v49, %v1620_v33  ;;  %v1653_v56 = vsel %vm1386_vm11, %v2885_v57, 0.0  ;;  %2718 = vmatmul.mubr.msk.f32.vlgmr.msra.gmra.mrb[20].mxu0 %vm1386_vm11, %v2887_v62  ;;  %v2039_v16 = vpop.permute.xlu0 %2038  ;;  %v2041_v33 = vpop.permute.xlu1 %2040 }
 0x2b2   : > { %v1630_v18 = vrot.slane %v1629_v7, 2  ;;  %v1638_v60 = vadd.f32 %v1637_v54, %v1636_v11  ;;  %v1646_v61 = vrot.slane %v1645_v44, 4  ;;  %v1654_v4 = vadd.f32 %v1653_v56, %v1652_v51  ;;  %2704 = vmatmul.mubr.msk.f32.gmra.mrb[24].mxu1 %vm1386_vm11, %v2873_v5  ;;  %2721 = vmatpush3.msk.msra.mxu0 %vm1727_vm10, %v3721_v26 }
 0x2b3   : > { %v1615_v25 = vadd.f32 %v1614_v59, %v1613_v12  ;;  %v1623_v10 = vrot.slane %v1622_v52, 1  ;;  %v1669_v8 = vsel %vm582_vm2, %v1606_v50, %v1597_v9  ;;  %2706 = vmatprep.mubr.msk.f32.mxu1 %vm1386_vm11, %v2875_v23  ;;  %2722 = vmatprep.mubr.msk.f32.mxu0 %vm3087_vm0, %v3088_v1 }
 0x2b4   : > { %v1631_v14 = vadd.f32 %v1630_v18, %v1629_v7  ;;  %v1639_v15 = vrot.slane %v1638_v60, 2  ;;  %v1647_v38 = vadd.f32 %v1646_v61, %v1645_v44  ;;  %v1655_v45 = vrot.slane %v1654_v4, 4  ;;  %2764 = vmatprep.subr.bf16.mxu0 %v3086_v0 }
 0x2b5   : > { %v1624_v20 = vadd.f32 %v1623_v10, %v1622_v52  ;;  %v1670_v19 = vsel %vm585_vm3, %v1615_v25, %v1669_v8  ;;  %v2045_v17 = vpop.permute.xlu0 %2044  ;;  %v2049_v11 = vpop.permute.xlu1 %2048 }
 0x2b6   : > { %v1632_v58 = vrot.slane %v1631_v14, 1  ;;  %v1640_v28 = vadd.f32 %v1639_v15, %v1638_v60  ;;  %v1648_v29 = vrot.slane %v1647_v38, 2  ;;  %v1656_v2 = vadd.f32 %v1655_v45, %v1654_v4  ;;  %2707 = vmatmul.mubr.msk.f32.gmra.mrb[26].mxu1 %vm1386_vm11, %v2877_v31 }
 0x2b7   : > { %v1671_v26 = vsel %vm588_vm4, %v1624_v20, %v1670_v19  ;;  %2709 = vmatprep.mubr.msk.f32.mxu1 %vm1386_vm11, %v2879_v35  ;;  %v2226_v35 = vld [vmem:[#allocation8] sm:$0xff] }
 0x2b8   : > { %v1633_v63 = vadd.f32 %v1632_v58, %v1631_v14  ;;  %v1641_v6 = vrot.slane %v1640_v28, 1  ;;  %v1649_v24 = vadd.f32 %v1648_v29, %v1647_v38  ;;  %v1657_v5 = vrot.slane %v1656_v2, 2 }
 0x2b9   : > { %v2765_v48 = vpack.c.bf16 %v2227_v42, %v2226_v35  ;;  %v2047_v55 = vpop.permute.xlu1 %2046 }
 0x2ba   : > { %v1642_v37 = vadd.f32 %v1641_v6, %v1640_v28  ;;  %v1650_v21 = vrot.slane %v1649_v24, 1  ;;  %v1658_v27 = vadd.f32 %v1657_v5, %v1656_v2  ;;  %v1672_v36 = vsel %vm591_vm5, %v1633_v63, %v1671_v26  ;;  %2710 = vmatmul.mubr.msk.f32.gmra.mrb[28].mxu1 %vm1386_vm11, %v2881_v39  ;;  %v2229_v39 = vld [vmem:[#allocation8 + $0x18] sm:$0xff] }
 0x2bb   : > { %2712 = vmatprep.mubr.msk.f32.mxu1 %vm1386_vm11, %v2883_v30  ;;  %v2768_v46 = vpack.c.bf16 %v2229_v39, %v2228_v32  ;;  %v2043_v30 = vpop.permute.xlu0 %2042 }
 0x2bc   : > { %v1651_v23 = vadd.f32 %v1650_v21, %v1649_v24  ;;  %v1659_v53 = vrot.slane %v1658_v27, 1  ;;  %v1673_v13 = vsel %vm594_vm6, %v1642_v37, %v1672_v36 }
 0x2bd   : > { %v2053_v49 = vpop.permute.xlu1 %2052 }
 0x2be   : > { %v1660_v31 = vadd.f32 %v1659_v53, %v1658_v27  ;;  %v1674_v34 = vsel %vm597_vm7, %v1651_v23, %v1673_v13  ;;  %2713 = vmatmul.mubr.msk.f32.gmra.mrb[30].mxu1 %vm1386_vm11, %v2885_v57 }
 0x2bf   : > { %v2051_v3 = vpop.permute.xlu0 %2050 }
 0x2c0   : > { %v1675_v22 = vsel %vm600_vm8, %v1660_v31, %v1674_v34 }
 0x2c1   : > { %v1677_v41 = vadd.f32 %v2887_v62, %v1675_v22  ;;  %v2057_v61 = vpop.permute.xlu1 %2056 }
 0x2c3   : > { %2888 = vrcp.f32 %v1677_v41  ;;  %v2055_v43 = vpop.permute.xlu0 %2054 }
 0x2c5   : > { %v2061_v24 = vpop.permute.xlu1 %2060 }
 0x2c7   : > { %v3901_v47 = vpop.permute.xlu0 %2058 }
 0x2cb   : > { %v3906_v56 = vpop.permute.xlu0 %2062 }
 0x2cd   : > { %v2889_v40 = vpop.eup %2888 }
 0x2ce   : > { %2723 = vmatmul.mubr.msk.f32.vlgmr.msra.gmra.mrb[22].mxu0 %vm1386_vm11, %v2889_v40 }
 0x2cf   : > { %2733 = vmatprep.mubr.msk.f32.mxu0 %vm3087_vm0, %v3088_v1  ;;  %2766 = vmatpush3.bf16.msra.mxu0 %v2765_v48  ;;  %v3911_v63 = vpop.permute.xlu0 %2066 }
 0x2d0   : > { %2767 = vmatprep.subr.bf16.mxu0 %v3086_v0 }
 0x2d3   : > { %2769 = vmatpush3.bf16.msra.mxu0 %v2768_v46  ;;  %v2175_v41 = vpop.permute.xlu0 %2174 }
 0x375   : > { %v2693_v57 = vpop.f32.mrb[16].mxu1 }
 0x376   : > { %v2087_v1 = vmul.f32 %v2693_v57, %v2041_v33  ;;  %v1797_v9 = vpop.f32.mrb[17].mxu1 }
 0x377   : > { %v2086_v12 = vmul.f32 %v2039_v16, %v1797_v9 }
 0x378   : > { %v2103_v7 = vsel %vm465_vm1, %v2087_v1, 0.0  ;;  %v2065_v1 = vpop.permute.xlu1 %2064 }
 0x379   : > { %v2102_v0 = vsel %vm465_vm1, %v2086_v12, 0.0  ;;  %v2696_v54 = vpop.f32.mrb[18].mxu1 }
 0x37a   : > { %v2104_v44 = vadd.f32 %v2103_v7, %v2102_v0  ;;  %v2089_v51 = vmul.f32 %v2696_v54, %v2045_v17  ;;  %v1807_v62 = vpop.f32.mrb[19].mxu1 }
 0x37b   : > { %v2088_v50 = vmul.f32 %v2043_v30, %v1807_v62 }
 0x37c   : > { %v2105_v59 = vrot.slane %v2104_v44, 4  ;;  %v2112_v52 = vsel %vm465_vm1, %v2089_v51, 0.0 }
 0x37d   : > { %v2111_v18 = vsel %vm465_vm1, %v2088_v50, 0.0  ;;  %v2699_v60 = vpop.f32.mrb[20].mxu1 }
 0x37e   : > { %v2106_v4 = vadd.f32 %v2105_v59, %v2104_v44  ;;  %v2113_v25 = vadd.f32 %v2112_v52, %v2111_v18  ;;  %v2091_v10 = vmul.f32 %v2699_v60, %v2049_v11  ;;  %v1817_v8 = vpop.f32.mrb[21].mxu1 }
 0x37f   : > { %v2090_v14 = vmul.f32 %v2047_v55, %v1817_v8 }
 0x380   : > { %v2107_v15 = vrot.slane %v2106_v4, 2  ;;  %v2114_v38 = vrot.slane %v2113_v25, 4  ;;  %v2121_v45 = vsel %vm465_vm1, %v2091_v10, 0.0 }
 0x381   : > { %v2120_v20 = vsel %vm465_vm1, %v2090_v14, 0.0  ;;  %v2702_v19 = vpop.f32.mrb[22].mxu1 }
 0x382   : > { %v2108_v58 = vadd.f32 %v2107_v15, %v2106_v4  ;;  %v2115_v28 = vadd.f32 %v2114_v38, %v2113_v25  ;;  %v2122_v29 = vadd.f32 %v2121_v45, %v2120_v20  ;;  %v2093_v2 = vmul.f32 %v2702_v19, %v2053_v49  ;;  %v1827_v26 = vpop.f32.mrb[23].mxu1  ;;  %v2069_v45 = vpop.permute.xlu1 %2068 }
 0x383   : > { %v2092_v6 = vmul.f32 %v2051_v3, %v1827_v26 }
 0x384   : > { %v2116_v5 = vrot.slane %v2115_v28, 2  ;;  %v2123_v37 = vrot.slane %v2122_v29, 4  ;;  %v2130_v21 = vsel %vm465_vm1, %v2093_v2, 0.0  ;;  %v2109_v27 = vrot.slane %v2108_v58, 1  ;;  %v1945_v36 = vpop.f32.mrb[20].mxu0 }
 0x385   : > { %v2129_v23 = vsel %vm465_vm1, %v2092_v6, 0.0  ;;  %v2705_v53 = vpop.f32.mrb[24].mxu1  ;;  %v2719_v34 = vpop.f32.mrb[21].mxu0  ;;  %v3915_v39 = vmul.f32 %v2175_v41, %v1945_v36 }
 0x386   : > { %v2117_v13 = vadd.f32 %v2116_v5, %v2115_v28  ;;  %v2124_v31 = vadd.f32 %v2123_v37, %v2122_v29  ;;  %v1837_v22 = vpop.f32.mrb[25].mxu1  ;;  %v2131_v40 = vadd.f32 %v2130_v21, %v2129_v23  ;;  %v2095_v35 = vmul.f32 %v2705_v53, %v2057_v61 }
 0x387   : > { %v2094_v42 = vmul.f32 %v2055_v43, %v1837_v22  ;;  %v2110_v46 = vadd.f32 %v2109_v27, %v2108_v58  ;;  %v2179_v54 = vrot.slane %v3915_v39, 1  ;;  %v2180_v50 = vrot.slane %v3915_v39, 2 }
 0x388   : > { %v2118_v32 = vrot.slane %v2117_v13, 1  ;;  %v2125_v48 = vrot.slane %v2124_v31, 2  ;;  %v2132_v16 = vrot.slane %v2131_v40, 4  ;;  %v2139_v17 = vsel %vm465_vm1, %v2095_v35, 0.0 }
 0x389   : > { %v2138_v33 = vsel %vm465_vm1, %v2094_v42, 0.0  ;;  %v2708_v30 = vpop.f32.mrb[26].mxu1  ;;  %v2194_v59 = vadd.f32 %v3915_v39, %v2110_v46  ;;  %v2181_v5 = vrot.slane %v3915_v39, 3  ;;  %v2182_v53 = vrot.slane %v3915_v39, 4 }
 0x38a   : > { %v2126_v3 = vadd.f32 %v2125_v48, %v2124_v31  ;;  %v2140_v11 = vadd.f32 %v2139_v17, %v2138_v33  ;;  %v2097_v55 = vmul.f32 %v2708_v30, %v2061_v24  ;;  %v1847_v57 = vpop.f32.mrb[27].mxu1  ;;  %v2119_v9 = vadd.f32 %v2118_v32, %v2117_v13 }
 0x38b   : > { %v2133_v12 = vadd.f32 %v2132_v16, %v2131_v40  ;;  %v2096_v43 = vmul.f32 %v3901_v47, %v1847_v57 }
 0x38c   : > { %v2127_v49 = vrot.slane %v2126_v3, 1  ;;  %v2141_v7 = vrot.slane %v2140_v11, 4  ;;  %v2148_v0 = vsel %vm465_vm1, %v2097_v55, 0.0  ;;  %v2195_v10 = vadd.f32 %v2179_v54, %v2119_v9 }
 0x38d   : > { %v2134_v44 = vrot.slane %v2133_v12, 2  ;;  %v2147_v51 = vsel %vm465_vm1, %v2096_v43, 0.0  ;;  %v2711_v62 = vpop.f32.mrb[28].mxu1  ;;  %v2185_v9 = vrot.slane %v3915_v39, 7 }
 0x38e   : > { %v2128_v52 = vadd.f32 %v2127_v49, %v2126_v3  ;;  %v2142_v18 = vadd.f32 %v2141_v7, %v2140_v11  ;;  %v2149_v60 = vadd.f32 %v2148_v0, %v2147_v51  ;;  %v2099_v61 = vmul.f32 %v2711_v62, %v2065_v1  ;;  %v1857_v4 = vpop.f32.mrb[29].mxu1 }
 0x38f   : > { %v2135_v47 = vadd.f32 %v2134_v44, %v2133_v12  ;;  %v2098_v25 = vmul.f32 %v3906_v56, %v1857_v4  ;;  %v2184_v11 = vrot.slane %v3915_v39, 6 }
 0x390   : > { %v2143_v8 = vrot.slane %v2142_v18, 2  ;;  %v2150_v14 = vrot.slane %v2149_v60, 4  ;;  %v2157_v15 = vsel %vm465_vm1, %v2099_v61, 0.0  ;;  %v2196_v38 = vadd.f32 %v2180_v50, %v2128_v52 }
 0x391   : > { %v2136_v20 = vrot.slane %v2135_v47, 1  ;;  %v2156_v19 = vsel %vm465_vm1, %v2098_v25, 0.0  ;;  %v2714_v58 = vpop.f32.mrb[30].mxu1 }
 0x392   : > { %v2144_v28 = vadd.f32 %v2143_v8, %v2142_v18  ;;  %v2151_v29 = vadd.f32 %v2150_v14, %v2149_v60  ;;  %v2158_v2 = vadd.f32 %v2157_v15, %v2156_v19  ;;  %v2101_v26 = vmul.f32 %v2714_v58, %v2069_v45  ;;  %v1867_v6 = vpop.f32.mrb[31].mxu1 }
 0x393   : > { %v2137_v24 = vadd.f32 %v2136_v20, %v2135_v47  ;;  %v2100_v56 = vmul.f32 %v3911_v63, %v1867_v6  ;;  %v2183_v63 = vrot.slane %v3915_v39, 5 }
 0x394   : > { %v2145_v37 = vrot.slane %v2144_v28, 1  ;;  %v2152_v21 = vrot.slane %v2151_v29, 2  ;;  %v2159_v27 = vrot.slane %v2158_v2, 4  ;;  %v2166_v36 = vsel %vm465_vm1, %v2101_v26, 0.0 }
 0x395   : > { %v2197_v23 = vadd.f32 %v2181_v5, %v2137_v24  ;;  %v2165_v13 = vsel %vm465_vm1, %v2100_v56, 0.0  ;;  %v2519_v24 = vld [vmem:[%s4005_s8] ss:$0 sm:$0xff] }
 0x396   : > { %v2146_v31 = vadd.f32 %v2145_v37, %v2144_v28  ;;  %v2153_v34 = vadd.f32 %v2152_v21, %v2151_v29  ;;  %v2160_v22 = vadd.f32 %v2159_v27, %v2158_v2  ;;  %v2167_v41 = vadd.f32 %v2166_v36, %v2165_v13 }
 0x398   : > { %v2198_v40 = vadd.f32 %v2182_v53, %v2146_v31  ;;  %v2154_v35 = vrot.slane %v2153_v34, 1  ;;  %v2161_v42 = vrot.slane %v2160_v22, 2  ;;  %v2168_v32 = vrot.slane %v2167_v41, 4 }
 0x39a   : > { %v2155_v48 = vadd.f32 %v2154_v35, %v2153_v34  ;;  %v2162_v46 = vadd.f32 %v2161_v42, %v2160_v22  ;;  %v2169_v16 = vadd.f32 %v2168_v32, %v2167_v41 }
 0x39c   : > { %v2199_v17 = vadd.f32 %v2183_v63, %v2155_v48  ;;  %v2163_v33 = vrot.slane %v2162_v46, 1  ;;  %v2170_v30 = vrot.slane %v2169_v16, 2 }
 0x39e   : > { %v2164_v3 = vadd.f32 %v2163_v33, %v2162_v46  ;;  %v2171_v55 = vadd.f32 %v2170_v30, %v2169_v16 }
 0x3a0   : > { %v2200_v57 = vadd.f32 %v2184_v11, %v2164_v3  ;;  %v2172_v1 = vrot.slane %v2171_v55, 1 }
 0x3a1   : > { %v2018_v12 = vpop.f32.mrb[22].mxu0 }
 0x3a2   : > { %v2173_v43 = vadd.f32 %v2172_v1, %v2171_v55  ;;  %v2203_v49 = vrot.slane %v2018_v12, 1  ;;  %v2204_v7 = vrot.slane %v2018_v12, 2  ;;  %v2205_v0 = vrot.slane %v2018_v12, 3  ;;  %v2724_v54 = vpop.f32.mrb[23].mxu0 }
 0x3a3   : > { %v2218_v44 = vmul.f32 %v2194_v59, %v2018_v12  ;;  %v2206_v51 = vrot.slane %v2018_v12, 4  ;;  %v2207_v62 = vrot.slane %v2018_v12, 5  ;;  %v2208_v50 = vrot.slane %v2018_v12, 6 }
 0x3a4   : > { %v2201_v52 = vadd.f32 %v2185_v9, %v2173_v43  ;;  %v2219_v18 = vmul.f32 %v2203_v49, %v2195_v10  ;;  %v2220_v60 = vmul.f32 %v2204_v7, %v2196_v38  ;;  %v2209_v61 = vrot.slane %v2018_v12, 7 }
 0x3a5   : > { %v2221_v4 = vmul.f32 %v2205_v0, %v2197_v23  ;;  %v2222_v47 = vmul.f32 %v2206_v51, %v2198_v40  ;;  %v2223_v25 = vmul.f32 %v2207_v62, %v2199_v17  ;;  %v2224_v8 = vmul.f32 %v2208_v50, %v2200_v57 }
 0x3a6   : > { %v2245_v14 = vrot.slane %v2219_v18, 7  ;;  %v2225_v39 = vmul.f32 %v2209_v61, %v2201_v52  ;;  %v2247_v15 = vrot.slane %v2220_v60, 6 }
 0x3a7   : > { %v2249_v20 = vrot.slane %v2221_v4, 5  ;;  %v2251_v19 = vrot.slane %v2222_v47, 4  ;;  %v2253_v10 = vrot.slane %v2223_v25, 3  ;;  %v2255_v29 = vrot.slane %v2224_v8, 2 }
 0x3a8   : > { %v2246_v45 = vsel %vm582_vm2, %v2245_v14, %v2218_v44  ;;  %v2257_v38 = vrot.slane %v2225_v39, 1 }
 0x3a9   : > { %v2248_v59 = vsel %vm585_vm3, %v2247_v15, %v2246_v45 }
 0x3aa   : > { %v2250_v58 = vsel %vm588_vm4, %v2249_v20, %v2248_v59 }
 0x3ab   : > { %v2252_v28 = vsel %vm591_vm5, %v2251_v19, %v2250_v58 }
 0x3ac   : > { %v2254_v2 = vsel %vm594_vm6, %v2253_v10, %v2252_v28 }
 0x3ad   : > { %v2256_v26 = vsel %vm597_vm7, %v2255_v29, %v2254_v2 }
 0x3ae   : > { %v2258_v6 = vsel %vm600_vm8, %v2257_v38, %v2256_v26 }
 0x3af   : > { %2734 = vmatmul.mubr.msk.f32.vlgmr.msra.gmra.mrb[24].mxu0 %vm465_vm1, %v2258_v6 }
 0x482   : > { %v2327_v5 = vpop.f32.mrb[24].mxu0 }
 0x483   : > { %v2328_v56 = vadd.f32 %v2519_v24, %v2327_v5  ;;  %v2735_v37 = vpop.f32.mrb[25].mxu0 }
 0x485   : > { %2331 = vst.msk [vmem:[%s447_s30] sm:$0xff] %vm889_vm9, %v2328_v56 }
 0x486   : > { %3017 = shalt.err (!%p3014_p13)
}
 0x487   : > { %s3018_s15 = scalar_lea.hbm %s3952_s5, 128  ;;  %s3022_s29 = scalar_lea.hbm %s4036_s11, 256 }
 0x488   : > { %p3019_p0 = scmp.ne.s32.totalorder %s3952_s5, %s3018_s15  ;;  %p3023_p9 = scmp.lt.u32.totalorder %s3952_s5, %s4036_s11 }
 0x489   : > { %p3024_p12 = scmp.lt.u32.totalorder %s3022_s29, %s3018_s15  ;;  %p3026_p1 = scmp.lt.u32.totalorder %s3018_s15, %s3952_s5 }
 0x48a   : > { %p3020_p5 = pnand %p3019_p0, %p3296_p6 }
 0x48b   : > { %p3025_p2 = por %p3024_p12, %p3023_p9 }
 0x48c   : > { %p3021_p11 = pneg %p3020_p5 }
 0x48d   : > { %p3027_p4 = por %p3026_p1, %p3025_p2 }
 0x48f   : > { %p3028_p8 = pnand %p3027_p4, %p3021_p11 }
 0x491   : > { %3031 = shalt.err (!%p3028_p8)
}
 0x492   : > { %2784 = dma.vmem_to_hbm [thread:$0]  (%p3296_p6), %s3954_s26, 128, %s3952_s5, %s2333_s12  }
 0x493 PF: > { %s4037_s27 = sld [smem:[#allocation15_spill]]  ;;  %s4038_s14 = sld [smem:[#allocation16_spill]] }
 0x494   : > { %p4040_p7 = scmp.ge.s32.totalorder %s3078_s20, 2 }
 0x499   : > { %s2358_s21 = sand.u32 1, %s4037_s27   ;;  %p4039_p3 = scmp.ne.s32.totalorder %s4038_s14, 0 }
 0x49a   : > { %s2359_s23 = scalar_lea.sflag [#allocation4], %s2358_s21 }
 0x49b   : > { %p2801_p10 = pnand %p4040_p7, %p4039_p3 }
 0x49d   : > { %3061 = dma.done.wait (!%p2801_p10), %s2359_s23, 128  }
 0x49e   : > { %3063 = vsyncadd (!%p2801_p10), %s2359_s23, 4294967168  ;;  %p26_p13 = scmp.ge.s32.totalorder %s3282_s28, 4   ;;  %s4041_s17 = smov %s3070_s18 }
 0x49f   : > { %s4042_s18 = smov %s3074_s19  ;;  %s4043_s19 = smov %s3292_s24 }
 0x4a0   : > { %s4044_s20 = smov %s3282_s28  ;;  %28 = sbr.rel (!%p26_p13) target bundleno = 10 (0xa), region = 121 }
 0x4a7   :  { %2364 = vsyncpa [#allocation3], 1 }
 0x4a8   :  { %2366 = vsyncpa [#allocation3 + $0x1], 1 }
 0x4a9   :  { %2367 = vsyncpa [#allocation6], 1 }
 0x4aa   :  { %2368 = vsyncpa [#allocation9], 1 }
 0x4ab   :  { %2369 = vsyncpa [#allocation4], 1 }
 0x4ac   :  { %2371 = vsyncpa [#allocation4 + $0x1], 1 }

</bundles_post_ra>
